<compile_context>
chip_gen: v7x
topology: tpu7x:2x2x1
jax: 0.10.0
libtpu: 0.0.40
codegen_flags: <defaults>
</compile_context>

<pallas_src>
import functools

import jax
import jax.numpy as jnp
import numpy as np
from jax.experimental import pallas as pl
from jax.experimental.pallas import tpu as pltpu

GN_GROUPS = 32
GN_EPS = 1e-6
LRELU_SLOPE = 0.2
_HI = jax.lax.Precision.HIGHEST   # only for the tiny GN group-mixing dots

# column indices inside the consolidated (2C, 10) column-vector parameter array
_CV_GN1_G, _CV_GN1_B, _CV_BST1, _CV_GN2_G, _CV_GN2_B = 0, 1, 2, 3, 4
_CV_B1, _CV_B2, _CV_BSK, _CV_BSC2, _CV_BSH2 = 5, 6, 7, 8, 9


# --------------------------------- kernel ----------------------------------

def _fuse_sft_kernel(enc_ref, dec_ref,
                     cv_ref, w1_ref, wcat_ref, wsk_ref,
                     mix1_ref, mix2_ref, masks_ref,
                     out_ref,
                     cat_ref, pad_ref, slab_ref,
                     *, w, width, hw, hwp, base, b_blk, mix_gn1, mix_gn2):
    C = dec_ref.shape[1]
    C2 = 2 * C

    # ---- zero only the per-image halo columns of the flat padded buffer ----
    # (kept unconditional: every grid step / every megacore core must run it)
    trail = hwp - base - hw
    for b in range(b_blk):
        s = b * hwp
        pad_ref[:, s:s + base] = jnp.zeros((C2, base), jnp.bfloat16)
        pad_ref[:, s + base + hw:s + hwp] = jnp.zeros((C2, trail), jnp.bfloat16)

    # Column-edge masks for dw = -1 / +1 taps.  Applied with a select (vsel)
    # instead of a bf16 multiply (no emulated bf16 VALU work on v5e).
    mask_l = masks_ref[0:1, :] != 0.0
    mask_r = masks_ref[1:2, :] != 0.0

    def cvec(col, rows):
        return cv_ref[:rows, col:col + 1]                      # (rows, 1) f32

    def fill_pad(x, cin):
        # x: (cin, b_blk*hw) f32 -> bf16 interior, one lane-aligned store/image
        for b in range(b_blk):
            s = b * hwp
            pad_ref[:cin, s + base:s + base + hw] = (
                x[:, b * hw:(b + 1) * hw].astype(jnp.bfloat16))

    def build_slab(cin, src_row, dst_row):
        # 9 shifted windows of pad rows [src_row, src_row+cin) -> slab rows
        # [dst_row, dst_row + 9*cin), lane columns [b*hw, (b+1)*hw) per image.
        t = 0
        for dh in (-1, 0, 1):
            for dw in (-1, 0, 1):
                for b in range(b_blk):
                    start = b * hwp + base + dh * width + dw
                    xs = pad_ref[src_row:src_row + cin, start:start + hw]
                    if dw == -1:
                        xs = jnp.where(mask_l, xs, 0)
                    elif dw == 1:
                        xs = jnp.where(mask_r, xs, 0)
                    slab_ref[dst_row + t * cin:dst_row + (t + 1) * cin,
                             b * hw:(b + 1) * hw] = xs
                t += 1

    def conv3x3(x, cin, w_mat, bias_col):
        fill_pad(x, cin)
        build_slab(cin, 0, 0)
        out = jnp.dot(w_mat, slab_ref[:9 * cin, :],
                      preferred_element_type=jnp.float32)
        return out + bias_col                                  # (Cout, BHW) f32

    def group_norm(x, mix_ref, g_col, b_col, do_mix):
        # per-image (per b) channel stats, averaged within each GN group
        inv_hw = 1.0 / hw
        outs = []
        for b in range(b_blk):
            xb = x[:, b * hw:(b + 1) * hw]
            mean = jnp.sum(xb, axis=1, keepdims=True) * inv_hw       # (c, 1)
            msq = jnp.sum(xb * xb, axis=1, keepdims=True) * inv_hw   # (c, 1)
            if do_mix:  # group size > 1: mix stats with block-diagonal matrix
                # TODO(synk): replace these tiny (c,c)@(c,1) mixing dots with a
                # pure-VPU sublane group reduction to avoid MXU result pops.
                mean = jnp.dot(mix_ref[...], mean,
                               preferred_element_type=jnp.float32, precision=_HI)
                msq = jnp.dot(mix_ref[...], msq,
                              preferred_element_type=jnp.float32, precision=_HI)
            var = jnp.maximum(msq - mean * mean, 0.0)   # clamp E[x^2]-E[x]^2
            inv = jax.lax.rsqrt(var + GN_EPS)
            outs.append((xb - mean) * (inv * g_col) + b_col)
        return outs[0] if b_blk == 1 else jnp.concatenate(outs, axis=1)

    def swish(v):
        return v * jax.nn.sigmoid(v)

    # concat([enc, dec], channel) lives in VMEM so it can be re-read later for
    # the 1x1 skip conv (keeps vreg live ranges short).
    for b in range(b_blk):
        cat_ref[:C, b * hw:(b + 1) * hw] = enc_ref[b].astype(jnp.float32)
        cat_ref[C:, b * hw:(b + 1) * hw] = dec_ref[b].astype(jnp.float32)

    # ---- encode_enc = ResBlock(2C -> C) ----
    h = swish(group_norm(cat_ref[...], mix1_ref,
                         cvec(_CV_GN1_G, C2), cvec(_CV_GN1_B, C2), mix_gn1))
    h = conv3x3(h, C2, w1_ref[...], cvec(_CV_B1, C))                 # (C, BHW)
    h = swish(group_norm(h, mix2_ref,
                         cvec(_CV_GN2_G, C), cvec(_CV_GN2_B, C), mix_gn2))
    h = conv3x3(h, C, wcat_ref[C2:C2 + C, :], cvec(_CV_B2, C))       # (C, BHW)
    skip = jnp.dot(wsk_ref[...], cat_ref[...].astype(jnp.bfloat16),
                   preferred_element_type=jnp.float32) + cvec(_CV_BSK, C)
    enc_feat = h + skip                                              # (C, BHW)

    # ---- stage-1 scale/shift convs fused along Cout: (C -> 2C) ----
    st = conv3x3(enc_feat, C, wcat_ref[:C2, :], cvec(_CV_BST1, C2))  # (2C, BHW)
    st = jnp.where(st >= 0, st, LRELU_SLOPE * st)                    # LeakyReLU

    # ---- stage-2: TWO dense (C -> C) convs sharing one pad fill ----
    # (replaces the half-zero block-diagonal (2C -> 2C) conv: half the MACs)
    fill_pad(st, C2)
    build_slab(C, 0, 0)          # scale path (s1 = st[:C])  -> slab[0 : 9C)
    build_slab(C, C, 9 * C)      # shift path (t1 = st[C:])  -> slab[9C : 18C)
    scale = jnp.dot(wcat_ref[3 * C:4 * C, :], slab_ref[:9 * C, :],
                    preferred_element_type=jnp.float32) + cvec(_CV_BSC2, C)
    shift = jnp.dot(wcat_ref[4 * C:5 * C, :], slab_ref[9 * C:18 * C, :],
                    preferred_element_type=jnp.float32) + cvec(_CV_BSH2, C)

    # ---- SFT fuse: out = dec + w * (dec * scale + shift) ----
    for b in range(b_blk):
        dec = dec_ref[b].astype(jnp.float32)
        lo, hi = b * hw, (b + 1) * hw
        out = dec + w * (dec * scale[:, lo:hi] + shift[:, lo:hi])
        out_ref[b] = out.astype(out_ref.dtype)


# -------------------------------- wrapper -----------------------------------

def _mix_matrix(c, groups):
    cg = c // groups
    gid = np.arange(c) // cg
    m = (gid[:, None] == gid[None, :]).astype(np.float32) / cg
    return jnp.asarray(m)


def _round_up(x, m):
    return (x + m - 1) // m * m


def _pick_b_blk(n, c, hw):
    # Largest divisor of n that (a) keeps the im2col slab under ~4 MiB and
    # (b) leaves a grid of >= 2 steps so megacore / double-buffering get work.
    cap = max(1, (4 << 20) // (18 * c * hw * 2))
    best = 1
    for d in range(1, n + 1):
        if n % d == 0 and d <= cap and (n // d >= 2 or n == 1):
            best = d
    return best


def fuse_sft_block(enc_feat, dec_feat, params, w=1.0):
    """enc_feat, dec_feat: (N, C, H, W) float32 (NCHW, like PyTorch)."""
    N, C, H, W = dec_feat.shape
    assert enc_feat.shape == dec_feat.shape
    HW = H * W
    C2 = 2 * C
    assert C2 % GN_GROUPS == 0 and C % GN_GROUPS == 0
    cg1 = C2 // GN_GROUPS
    cg2 = C // GN_GROUPS

    b_blk = _pick_b_blk(N, C, HW)
    grid_n = N // b_blk

    enc2 = enc_feat.reshape(N, C, HW)
    dec2 = dec_feat.reshape(N, C, HW)

    # ---- host-side parameter prep (layout plumbing, done once) ----
    def prep_conv(w_hwio):            # (3,3,Cin,Cout) -> (Cout, 9*Cin) bf16
        cout, cin = w_hwio.shape[3], w_hwio.shape[2]
        return (jnp.transpose(w_hwio, (3, 0, 1, 2))
                .reshape(cout, 9 * cin).astype(jnp.bfloat16))

    w1 = prep_conv(params["conv1_w"])                                # (C, 18C)
    wst1 = prep_conv(jnp.concatenate([params["scale1_w"],
                                      params["shift1_w"]], axis=3))  # (2C, 9C)
    w2 = prep_conv(params["conv2_w"])                                # (C, 9C)
    wsc2 = prep_conv(params["scale2_w"])                             # (C, 9C)
    wsh2 = prep_conv(params["shift2_w"])                             # (C, 9C)
    wcat = jnp.concatenate([wst1, w2, wsc2, wsh2], axis=0)           # (5C, 9C)
    wsk = jnp.transpose(params["skip_w"]).astype(jnp.bfloat16)       # (C, 2C)

    def colv(v):                       # (1, c) -> (2C,) zero-padded f32
        v = jnp.reshape(v, (-1,)).astype(jnp.float32)
        return jnp.pad(v, (0, C2 - v.shape[0]))

    colvecs = jnp.stack([
        colv(params["gn1_gamma"]), colv(params["gn1_beta"]),
        colv(jnp.concatenate([jnp.reshape(params["scale1_b"], (-1,)),
                              jnp.reshape(params["shift1_b"], (-1,))])),
        colv(params["gn2_gamma"]), colv(params["gn2_beta"]),
        colv(params["conv1_b"]), colv(params["conv2_b"]),
        colv(params["skip_b"]),
        colv(params["scale2_b"]), colv(params["shift2_b"]),
    ], axis=1)                                                       # (2C, 10)

    mix1 = _mix_matrix(C2, GN_GROUPS)        # (2C, 2C) f32
    mix2 = _mix_matrix(C, GN_GROUPS)         # (C, C)  f32 (unused if cg2 == 1)

    # column-edge masks for dw = -1 / +1 conv taps (f32; compared in-kernel)
    colw = np.arange(HW) % W
    masks = jnp.asarray(np.stack([(colw != 0),
                                  (colw != W - 1)]).astype(np.float32))  # (2,HW)

    base = _round_up(W + 1, 128)             # lane-aligned interior start
    hwp = _round_up(base + HW + W + 1, 128)  # per-image padded flat width

    weights = [colvecs, w1, wcat, wsk, mix1, mix2, masks]

    img_spec = pl.BlockSpec((b_blk, C, HW), lambda n: (n, 0, 0))

    def full_spec(p):
        nd = p.ndim
        return pl.BlockSpec(p.shape, lambda n, _nd=nd: (0,) * _nd)

    kernel = functools.partial(
        _fuse_sft_kernel, w=float(w), width=W, hw=HW, hwp=hwp, base=base,
        b_blk=b_blk, mix_gn1=(cg1 > 1), mix_gn2=(cg2 > 1))

    # Scratch footprint (concat f32 + padded bf16 + im2col slab bf16).
    scratch_bytes = (C2 * b_blk * HW * 4 + C2 * b_blk * hwp * 2
                     + 9 * C2 * b_blk * HW * 2)
    io_bytes = 3 * 2 * b_blk * C * HW * 4          # double-buffered in/out
    vmem_limit = int(min(64 << 20, max(32 << 20, 2 * (scratch_bytes + io_bytes))))

    # TODO(synk): for large H*W (CodeFormer 128^2+ fuse levels) add an H-tile
    # grid axis (needs a 1-row halo + two-pass GroupNorm stats) and cast the
    # image inputs to bf16 so scratch/pipeline buffers fit v7x's 64 MiB VMEM.
    out = pl.pallas_call(
        kernel,
        out_shape=jax.ShapeDtypeStruct((N, C, HW), dec_feat.dtype),
        grid_spec=pltpu.PrefetchScalarGridSpec(
            num_scalar_prefetch=0,
            grid=(grid_n,),
            in_specs=[img_spec, img_spec] + [full_spec(p) for p in weights],
            out_specs=img_spec,
            scratch_shapes=[
                pltpu.VMEM((C2, b_blk * HW), jnp.float32),       # concat buffer
                pltpu.VMEM((C2, b_blk * hwp), jnp.bfloat16),     # padded buffer
                pltpu.VMEM((9 * C2, b_blk * HW), jnp.bfloat16),  # im2col slab
            ],
        ),
        compiler_params=pltpu.CompilerParams(
            dimension_semantics=("parallel",),
            vmem_limit_bytes=vmem_limit),
    )(enc2, dec2, *weights)
    return out.reshape(N, C, H, W)


# ------------------------- params & pure-JAX reference ----------------------

def init_params(key, in_ch, out_ch):
    c2 = 2 * in_ch
    ks = list(jax.random.split(key, 16))

    def conv_w(k, kh, kw, cin, cout):
        return (jax.random.normal(k, (kh, kw, cin, cout), jnp.float32)
                / np.sqrt(kh * kw * cin))

    def bias(k, cout):
        return 0.05 * jax.random.normal(k, (1, cout), jnp.float32)

    return {
        "gn1_gamma": 1.0 + 0.1 * jax.random.normal(ks[0], (1, c2), jnp.float32),
        "gn1_beta": 0.1 * jax.random.normal(ks[1], (1, c2), jnp.float32),
        "conv1_w": conv_w(ks[2], 3, 3, c2, out_ch),
        "conv1_b": bias(ks[3], out_ch),
        "gn2_gamma": 1.0 + 0.1 * jax.random.normal(ks[4], (1, out_ch), jnp.float32),
        "gn2_beta": 0.1 * jax.random.normal(ks[5], (1, out_ch), jnp.float32),
        "conv2_w": conv_w(ks[6], 3, 3, out_ch, out_ch),
        "conv2_b": bias(ks[7], out_ch),
        "skip_w": jax.random.normal(ks[8], (c2, out_ch), jnp.float32) / np.sqrt(c2),
        "skip_b": bias(ks[9], out_ch),
        "scale1_w": conv_w(ks[10], 3, 3, in_ch, out_ch),
        "scale1_b": bias(ks[11], out_ch),
        "scale2_w": conv_w(ks[12], 3, 3, out_ch, out_ch),
        "scale2_b": bias(ks[13], out_ch),
        "shift1_w": conv_w(ks[14], 3, 3, in_ch, out_ch),
        "shift1_b": bias(ks[15], out_ch),
        "shift2_w": conv_w(jax.random.fold_in(key, 100), 3, 3, out_ch, out_ch),
        "shift2_b": 0.05 * jax.random.normal(jax.random.fold_in(key, 101),
                                             (1, out_ch), jnp.float32),
    }


def reference_forward(enc_feat, dec_feat, p, w=1.0):
    def conv3x3(x, wgt, b):
        y = jax.lax.conv_general_dilated(
            x, wgt, (1, 1), "SAME",
            dimension_numbers=("NCHW", "HWIO", "NCHW"), precision=_HI)
        return y + b.reshape(1, -1, 1, 1)

    def gnorm(x, gamma, beta):
        n, c, hh, ww = x.shape
        g = GN_GROUPS
        xg = x.reshape(n, g, c // g, hh, ww)
        mean = jnp.mean(xg, axis=(2, 3, 4), keepdims=True)
        var = jnp.mean((xg - mean) ** 2, axis=(2, 3, 4), keepdims=True)
        xn = (xg - mean) / jnp.sqrt(var + GN_EPS)
        return (xn.reshape(n, c, hh, ww) * gamma.reshape(1, -1, 1, 1)
                + beta.reshape(1, -1, 1, 1))

    swish = lambda x: x * jax.nn.sigmoid(x)
    lrelu = lambda x: jnp.where(x >= 0, x, LRELU_SLOPE * x)

    x = jnp.concatenate([enc_feat, dec_feat], axis=1)
    h = conv3x3(swish(gnorm(x, p["gn1_gamma"], p["gn1_beta"])),
                p["conv1_w"], p["conv1_b"])
    h = conv3x3(swish(gnorm(h, p["gn2_gamma"], p["gn2_beta"])),
                p["conv2_w"], p["conv2_b"])
    skip = (jnp.einsum("nchw,cd->ndhw", x, p["skip_w"], precision=_HI)
            + p["skip_b"].reshape(1, -1, 1, 1))
    ef = h + skip
    scale = conv3x3(lrelu(conv3x3(ef, p["scale1_w"], p["scale1_b"])),
                    p["scale2_w"], p["scale2_b"])
    shift = conv3x3(lrelu(conv3x3(ef, p["shift1_w"], p["shift1_b"])),
                    p["shift2_w"], p["shift2_b"])
    return dec_feat + w * (dec_feat * scale + shift)


# ---------------------------------- main ------------------------------------

if __name__ == "__main__":
    # in_ch = out_ch = 32 (CodeFormer uses >=32 channels; GroupNorm(32) needs it)
    N, C, H, W = 2, 32, 16, 16
    key = jax.random.PRNGKey(0)
    k_enc, k_dec, k_par = jax.random.split(key, 3)

    enc_feat = jax.random.normal(k_enc, (N, C, H, W), jnp.float32)
    dec_feat = jax.random.normal(k_dec, (N, C, H, W), jnp.float32)
    params = init_params(k_par, C, C)

    out = jax.block_until_ready(fuse_sft_block(enc_feat, dec_feat, params, w=1.0))
    ref = jax.block_until_ready(reference_forward(enc_feat, dec_feat, params, w=1.0))

    out_np, ref_np = np.asarray(out), np.asarray(ref)
    # Kernel uses bf16 MXU operands (f32 accumulation) vs an f32/HIGHEST
    # reference; tolerance reflects bf16 operand rounding across three stacked
    # 3x3 convs.  Mean abs error stays well below 1e-2.
    assert float(np.mean(np.abs(out_np - ref_np))) < 1e-2
    np.testing.assert_allclose(out_np, ref_np, rtol=4e-2, atol=4e-2)

    print("KERNEL_OK")
</pallas_src>

<mosaic_0001>
module attributes {stable_mosaic.version = 11 : i64} {
  func.func @_fuse_sft_kernel(%arg0: i32, %arg1: memref<1x32x256xf32, #tpu.memory_space<vmem>>, %arg2: memref<1x32x256xf32, #tpu.memory_space<vmem>>, %arg3: memref<64x10xf32, #tpu.memory_space<vmem>>, %arg4: memref<32x576xbf16, #tpu.memory_space<vmem>>, %arg5: memref<160x288xbf16, #tpu.memory_space<vmem>>, %arg6: memref<32x64xbf16, #tpu.memory_space<vmem>>, %arg7: memref<64x64xf32, #tpu.memory_space<vmem>>, %arg8: memref<32x32xf32, #tpu.memory_space<vmem>>, %arg9: memref<2x256xf32, #tpu.memory_space<vmem>>, %arg10: memref<1x32x256xf32, #tpu.memory_space<vmem>>, %arg11: memref<64x256xf32, #tpu.memory_space<vmem>>, %arg12: memref<64x512xbf16, #tpu.memory_space<vmem>>, %arg13: memref<576x256xbf16, #tpu.memory_space<vmem>>) attributes {dimension_semantics = [#tpu.dimension_semantics<parallel>], iteration_bounds = array<i64: 2>, scalar_prefetch = 0 : i64, scratch_operands = 3 : i64, tpu.core_type = #tpu.core_type<tc>, window_params = [{transform_indices = @transform_0, window_bounds = array<i64: 1, 32, 256>}, {transform_indices = @transform_1, window_bounds = array<i64: 1, 32, 256>}, {pipeline_mode = #tpu.pipeline_mode<synchronous>, transform_indices = @transform_2, window_bounds = array<i64: 64, 10>}, {pipeline_mode = #tpu.pipeline_mode<synchronous>, transform_indices = @transform_3, window_bounds = array<i64: 32, 576>}, {pipeline_mode = #tpu.pipeline_mode<synchronous>, transform_indices = @transform_4, window_bounds = array<i64: 160, 288>}, {pipeline_mode = #tpu.pipeline_mode<synchronous>, transform_indices = @transform_5, window_bounds = array<i64: 32, 64>}, {pipeline_mode = #tpu.pipeline_mode<synchronous>, transform_indices = @transform_6, window_bounds = array<i64: 64, 64>}, {pipeline_mode = #tpu.pipeline_mode<synchronous>, transform_indices = @transform_7, window_bounds = array<i64: 32, 32>}, {pipeline_mode = #tpu.pipeline_mode<synchronous>, transform_indices = @transform_8, window_bounds = array<i64: 2, 256>}, {transform_indices = @transform_9, window_bounds = array<i64: 1, 32, 256>}]} {
    %cst = arith.constant 0.000000e+00 : bf16
    %0 = vector.broadcast %cst : bf16 to vector<64x128xbf16>
    %c0 = arith.constant 0 : index
    %c0_0 = arith.constant 0 : index
    %1 = vector.load %arg12[%c0, %c0_0] : memref<64x512xbf16, #tpu.memory_space<vmem>>, vector<64x128xbf16>
    tpu.vector_store %arg12[%c0, %c0_0], %0 {strides = array<i32>} : memref<64x512xbf16, #tpu.memory_space<vmem>>, vector<64x128xbf16>,
    %cst_1 = arith.constant 0.000000e+00 : bf16
    %2 = vector.broadcast %cst_1 : bf16 to vector<64x128xbf16>
    %c0_2 = arith.constant 0 : index
    %c384 = arith.constant 384 : index
    %3 = vector.load %arg12[%c0_2, %c384] : memref<64x512xbf16, #tpu.memory_space<vmem>>, vector<64x128xbf16>
    tpu.vector_store %arg12[%c0_2, %c384], %2 {strides = array<i32>} : memref<64x512xbf16, #tpu.memory_space<vmem>>, vector<64x128xbf16>,
    %c0_3 = arith.constant 0 : index
    %c0_4 = arith.constant 0 : index
    %4 = vector.load %arg9[%c0_3, %c0_4] : memref<2x256xf32, #tpu.memory_space<vmem>>, vector<1x256xf32>
    %cst_5 = arith.constant 0.000000e+00 : f32
    %5 = vector.broadcast %cst_5 : f32 to vector<1x256xf32>
    %6 = arith.cmpf one, %4, %5 : vector<1x256xf32>
    %c1 = arith.constant 1 : index
    %c0_6 = arith.constant 0 : index
    %7 = vector.load %arg9[%c1, %c0_6] : memref<2x256xf32, #tpu.memory_space<vmem>>, vector<1x256xf32>
    %cst_7 = arith.constant 0.000000e+00 : f32
    %8 = vector.broadcast %cst_7 : f32 to vector<1x256xf32>
    %9 = arith.cmpf one, %7, %8 : vector<1x256xf32>
    %c0_8 = arith.constant 0 : index
    %c0_9 = arith.constant 0 : index
    %c0_10 = arith.constant 0 : index
    %10 = vector.load %arg1[%c0_8, %c0_9, %c0_10] : memref<1x32x256xf32, #tpu.memory_space<vmem>>, vector<1x32x256xf32>
    %11 = vector.shape_cast %10 : vector<1x32x256xf32> to vector<32x256xf32>
    %c0_11 = arith.constant 0 : index
    %c0_12 = arith.constant 0 : index
    %12 = vector.load %arg11[%c0_11, %c0_12] : memref<64x256xf32, #tpu.memory_space<vmem>>, vector<32x256xf32>
    tpu.vector_store %arg11[%c0_11, %c0_12], %11 {strides = array<i32>} : memref<64x256xf32, #tpu.memory_space<vmem>>, vector<32x256xf32>,
    %c0_13 = arith.constant 0 : index
    %c0_14 = arith.constant 0 : index
    %c0_15 = arith.constant 0 : index
    %13 = vector.load %arg2[%c0_13, %c0_14, %c0_15] : memref<1x32x256xf32, #tpu.memory_space<vmem>>, vector<1x32x256xf32>
    %14 = vector.shape_cast %13 : vector<1x32x256xf32> to vector<32x256xf32>
    %c32 = arith.constant 32 : index
    %c0_16 = arith.constant 0 : index
    %15 = vector.load %arg11[%c32, %c0_16] : memref<64x256xf32, #tpu.memory_space<vmem>>, vector<32x256xf32>
    tpu.vector_store %arg11[%c32, %c0_16], %14 {strides = array<i32>} : memref<64x256xf32, #tpu.memory_space<vmem>>, vector<32x256xf32>,
    %c0_17 = arith.constant 0 : index
    %c0_18 = arith.constant 0 : index
    %16 = vector.load %arg11[%c0_17, %c0_18] : memref<64x256xf32, #tpu.memory_space<vmem>>, vector<64x256xf32>
    %c0_19 = arith.constant 0 : index
    %c0_20 = arith.constant 0 : index
    %17 = vector.load %arg3[%c0_19, %c0_20] : memref<64x10xf32, #tpu.memory_space<vmem>>, vector<64x1xf32>
    %c0_21 = arith.constant 0 : index
    %c1_22 = arith.constant 1 : index
    %18 = vector.load %arg3[%c0_21, %c1_22] : memref<64x10xf32, #tpu.memory_space<vmem>>, vector<64x1xf32>
    %cst_23 = arith.constant dense<0.000000e+00> : vector<64xf32>
    %19 = vector.multi_reduction <add>, %16, %cst_23 [1] : vector<64x256xf32> to vector<64xf32>
    %20 = vector.shape_cast %19 : vector<64xf32> to vector<64x1xf32>
    %cst_24 = arith.constant 3.906250e-03 : f32
    %21 = vector.broadcast %cst_24 : f32 to vector<64x1xf32>
    %22 = arith.mulf %20, %21 : vector<64x1xf32>
    %23 = arith.mulf %16, %16 : vector<64x256xf32>
    %cst_25 = arith.constant dense<0.000000e+00> : vector<64xf32>
    %24 = vector.multi_reduction <add>, %23, %cst_25 [1] : vector<64x256xf32> to vector<64xf32>
    %25 = vector.shape_cast %24 : vector<64xf32> to vector<64x1xf32>
    %cst_26 = arith.constant 3.906250e-03 : f32
    %26 = vector.broadcast %cst_26 : f32 to vector<64x1xf32>
    %27 = arith.mulf %25, %26 : vector<64x1xf32>
    %c0_27 = arith.constant 0 : index
    %c0_28 = arith.constant 0 : index
    %28 = vector.load %arg7[%c0_27, %c0_28] : memref<64x64xf32, #tpu.memory_space<vmem>>, vector<64x64xf32>
    %cst_29 = arith.constant dense<0.000000e+00> : vector<64x1xf32>
    %29 = tpu.matmul %28, %22, %cst_29 {dimension_numbers = #tpu.dot_dimension_numbers<[1], [0], [0], [1], [0, 0, 1, 1], [], []>, precision = #tpu.contract_precision<fp32>} : vector<64x64xf32>, vector<64x1xf32>, vector<64x1xf32> -> vector<64x1xf32>
    %c0_30 = arith.constant 0 : index
    %c0_31 = arith.constant 0 : index
    %30 = vector.load %arg7[%c0_30, %c0_31] : memref<64x64xf32, #tpu.memory_space<vmem>>, vector<64x64xf32>
    %cst_32 = arith.constant dense<0.000000e+00> : vector<64x1xf32>
    %31 = tpu.matmul %30, %27, %cst_32 {dimension_numbers = #tpu.dot_dimension_numbers<[1], [0], [0], [1], [0, 0, 1, 1], [], []>, precision = #tpu.contract_precision<fp32>} : vector<64x64xf32>, vector<64x1xf32>, vector<64x1xf32> -> vector<64x1xf32>
    %32 = arith.mulf %29, %29 : vector<64x1xf32>
    %33 = arith.subf %31, %32 : vector<64x1xf32>
    %cst_33 = arith.constant 0.000000e+00 : f32
    %34 = vector.broadcast %cst_33 : f32 to vector<64x1xf32>
    %35 = arith.maximumf %33, %34 : vector<64x1xf32>
    %cst_34 = arith.constant 9.99999997E-7 : f32
    %36 = vector.broadcast %cst_34 : f32 to vector<64x1xf32>
    %37 = arith.addf %35, %36 : vector<64x1xf32>
    %38 = math.rsqrt %37 : vector<64x1xf32>
    %39 = vector.broadcast %29 : vector<64x1xf32> to vector<64x256xf32>
    %40 = arith.subf %16, %39 : vector<64x256xf32>
    %41 = arith.mulf %38, %17 : vector<64x1xf32>
    %42 = vector.broadcast %41 : vector<64x1xf32> to vector<64x256xf32>
    %43 = arith.mulf %40, %42 : vector<64x256xf32>
    %44 = vector.broadcast %18 : vector<64x1xf32> to vector<64x256xf32>
    %45 = arith.addf %43, %44 : vector<64x256xf32>
    %46 = arith.negf %45 : vector<64x256xf32>
    %47 = math.exp %46 : vector<64x256xf32>
    %cst_35 = arith.constant 1.000000e+00 : f32
    %48 = vector.broadcast %cst_35 : f32 to vector<64x256xf32>
    %49 = arith.addf %48, %47 : vector<64x256xf32>
    %50 = arith.divf %48, %49 : vector<64x256xf32>
    %51 = arith.mulf %45, %50 : vector<64x256xf32>
    %c0_36 = arith.constant 0 : index
    %c0_37 = arith.constant 0 : index
    %52 = vector.load %arg4[%c0_36, %c0_37] : memref<32x576xbf16, #tpu.memory_space<vmem>>, vector<32x576xbf16>
    %c0_38 = arith.constant 0 : index
    %c5 = arith.constant 5 : index
    %53 = vector.load %arg3[%c0_38, %c5] : memref<64x10xf32, #tpu.memory_space<vmem>>, vector<32x1xf32>
    %54 = arith.truncf %51 : vector<64x256xf32> to vector<64x256xbf16>
    %c0_39 = arith.constant 0 : index
    %c128 = arith.constant 128 : index
    %55 = vector.load %arg12[%c0_39, %c128] : memref<64x512xbf16, #tpu.memory_space<vmem>>, vector<64x256xbf16>
    tpu.vector_store %arg12[%c0_39, %c128], %54 {strides = array<i32>} : memref<64x512xbf16, #tpu.memory_space<vmem>>, vector<64x256xbf16>,
    %c0_40 = arith.constant 0 : index
    %c111 = arith.constant 111 : index
    %56 = vector.load %arg12[%c0_40, %c111] : memref<64x512xbf16, #tpu.memory_space<vmem>>, vector<64x256xbf16>
    %c0_i32 = arith.constant 0 : i32
    %57 = arith.sitofp %c0_i32 : i32 to bf16
    %58 = vector.shape_cast %6 : vector<1x256xi1> to vector<1x256xi1>
    %59 = vector.broadcast %58 : vector<1x256xi1> to vector<64x256xi1>
    %60 = vector.broadcast %57 : bf16 to vector<64x256xbf16>
    %61 = arith.select %59, %56, %60 : vector<64x256xi1>, vector<64x256xbf16>
    %c0_41 = arith.constant 0 : index
    %c0_42 = arith.constant 0 : index
    %62 = vector.load %arg13[%c0_41, %c0_42] : memref<576x256xbf16, #tpu.memory_space<vmem>>, vector<64x256xbf16>
    tpu.vector_store %arg13[%c0_41, %c0_42], %61 {strides = array<i32>} : memref<576x256xbf16, #tpu.memory_space<vmem>>, vector<64x256xbf16>,
    %c0_43 = arith.constant 0 : index
    %c112 = arith.constant 112 : index
    %63 = vector.load %arg12[%c0_43, %c112] : memref<64x512xbf16, #tpu.memory_space<vmem>>, vector<64x256xbf16>
    %c64 = arith.constant 64 : index
    %c0_44 = arith.constant 0 : index
    %64 = vector.load %arg13[%c64, %c0_44] : memref<576x256xbf16, #tpu.memory_space<vmem>>, vector<64x256xbf16>
    tpu.vector_store %arg13[%c64, %c0_44], %63 {strides = array<i32>} : memref<576x256xbf16, #tpu.memory_space<vmem>>, vector<64x256xbf16>,
    %c0_45 = arith.constant 0 : index
    %c113 = arith.constant 113 : index
    %65 = vector.load %arg12[%c0_45, %c113] : memref<64x512xbf16, #tpu.memory_space<vmem>>, vector<64x256xbf16>
    %c0_i32_46 = arith.constant 0 : i32
    %66 = arith.sitofp %c0_i32_46 : i32 to bf16
    %67 = vector.shape_cast %9 : vector<1x256xi1> to vector<1x256xi1>
    %68 = vector.broadcast %67 : vector<1x256xi1> to vector<64x256xi1>
    %69 = vector.broadcast %66 : bf16 to vector<64x256xbf16>
    %70 = arith.select %68, %65, %69 : vector<64x256xi1>, vector<64x256xbf16>
    %c128_47 = arith.constant 128 : index
    %c0_48 = arith.constant 0 : index
    %71 = vector.load %arg13[%c128_47, %c0_48] : memref<576x256xbf16, #tpu.memory_space<vmem>>, vector<64x256xbf16>
    tpu.vector_store %arg13[%c128_47, %c0_48], %70 {strides = array<i32>} : memref<576x256xbf16, #tpu.memory_space<vmem>>, vector<64x256xbf16>,
    %c0_49 = arith.constant 0 : index
    %c127 = arith.constant 127 : index
    %72 = vector.load %arg12[%c0_49, %c127] : memref<64x512xbf16, #tpu.memory_space<vmem>>, vector<64x256xbf16>
    %c0_i32_50 = arith.constant 0 : i32
    %73 = arith.sitofp %c0_i32_50 : i32 to bf16
    %74 = vector.shape_cast %6 : vector<1x256xi1> to vector<1x256xi1>
    %75 = vector.broadcast %74 : vector<1x256xi1> to vector<64x256xi1>
    %76 = vector.broadcast %73 : bf16 to vector<64x256xbf16>
    %77 = arith.select %75, %72, %76 : vector<64x256xi1>, vector<64x256xbf16>
    %c192 = arith.constant 192 : index
    %c0_51 = arith.constant 0 : index
    %78 = vector.load %arg13[%c192, %c0_51] : memref<576x256xbf16, #tpu.memory_space<vmem>>, vector<64x256xbf16>
    tpu.vector_store %arg13[%c192, %c0_51], %77 {strides = array<i32>} : memref<576x256xbf16, #tpu.memory_space<vmem>>, vector<64x256xbf16>,
    %c0_52 = arith.constant 0 : index
    %c128_53 = arith.constant 128 : index
    %79 = vector.load %arg12[%c0_52, %c128_53] : memref<64x512xbf16, #tpu.memory_space<vmem>>, vector<64x256xbf16>
    %c256 = arith.constant 256 : index
    %c0_54 = arith.constant 0 : index
    %80 = vector.load %arg13[%c256, %c0_54] : memref<576x256xbf16, #tpu.memory_space<vmem>>, vector<64x256xbf16>
    tpu.vector_store %arg13[%c256, %c0_54], %79 {strides = array<i32>} : memref<576x256xbf16, #tpu.memory_space<vmem>>, vector<64x256xbf16>,
    %c0_55 = arith.constant 0 : index
    %c129 = arith.constant 129 : index
    %81 = vector.load %arg12[%c0_55, %c129] : memref<64x512xbf16, #tpu.memory_space<vmem>>, vector<64x256xbf16>
    %c0_i32_56 = arith.constant 0 : i32
    %82 = arith.sitofp %c0_i32_56 : i32 to bf16
    %83 = vector.shape_cast %9 : vector<1x256xi1> to vector<1x256xi1>
    %84 = vector.broadcast %83 : vector<1x256xi1> to vector<64x256xi1>
    %85 = vector.broadcast %82 : bf16 to vector<64x256xbf16>
    %86 = arith.select %84, %81, %85 : vector<64x256xi1>, vector<64x256xbf16>
    %c320 = arith.constant 320 : index
    %c0_57 = arith.constant 0 : index
    %87 = vector.load %arg13[%c320, %c0_57] : memref<576x256xbf16, #tpu.memory_space<vmem>>, vector<64x256xbf16>
    tpu.vector_store %arg13[%c320, %c0_57], %86 {strides = array<i32>} : memref<576x256xbf16, #tpu.memory_space<vmem>>, vector<64x256xbf16>,
    %c0_58 = arith.constant 0 : index
    %c143 = arith.constant 143 : index
    %88 = vector.load %arg12[%c0_58, %c143] : memref<64x512xbf16, #tpu.memory_space<vmem>>, vector<64x256xbf16>
    %c0_i32_59 = arith.constant 0 : i32
    %89 = arith.sitofp %c0_i32_59 : i32 to bf16
    %90 = vector.shape_cast %6 : vector<1x256xi1> to vector<1x256xi1>
    %91 = vector.broadcast %90 : vector<1x256xi1> to vector<64x256xi1>
    %92 = vector.broadcast %89 : bf16 to vector<64x256xbf16>
    %93 = arith.select %91, %88, %92 : vector<64x256xi1>, vector<64x256xbf16>
    %c384_60 = arith.constant 384 : index
    %c0_61 = arith.constant 0 : index
    %94 = vector.load %arg13[%c384_60, %c0_61] : memref<576x256xbf16, #tpu.memory_space<vmem>>, vector<64x256xbf16>
    tpu.vector_store %arg13[%c384_60, %c0_61], %93 {strides = array<i32>} : memref<576x256xbf16, #tpu.memory_space<vmem>>, vector<64x256xbf16>,
    %c0_62 = arith.constant 0 : index
    %c144 = arith.constant 144 : index
    %95 = vector.load %arg12[%c0_62, %c144] : memref<64x512xbf16, #tpu.memory_space<vmem>>, vector<64x256xbf16>
    %c448 = arith.constant 448 : index
    %c0_63 = arith.constant 0 : index
    %96 = vector.load %arg13[%c448, %c0_63] : memref<576x256xbf16, #tpu.memory_space<vmem>>, vector<64x256xbf16>
    tpu.vector_store %arg13[%c448, %c0_63], %95 {strides = array<i32>} : memref<576x256xbf16, #tpu.memory_space<vmem>>, vector<64x256xbf16>,
    %c0_64 = arith.constant 0 : index
    %c145 = arith.constant 145 : index
    %97 = vector.load %arg12[%c0_64, %c145] : memref<64x512xbf16, #tpu.memory_space<vmem>>, vector<64x256xbf16>
    %c0_i32_65 = arith.constant 0 : i32
    %98 = arith.sitofp %c0_i32_65 : i32 to bf16
    %99 = vector.shape_cast %9 : vector<1x256xi1> to vector<1x256xi1>
    %100 = vector.broadcast %99 : vector<1x256xi1> to vector<64x256xi1>
    %101 = vector.broadcast %98 : bf16 to vector<64x256xbf16>
    %102 = arith.select %100, %97, %101 : vector<64x256xi1>, vector<64x256xbf16>
    %c512 = arith.constant 512 : index
    %c0_66 = arith.constant 0 : index
    %103 = vector.load %arg13[%c512, %c0_66] : memref<576x256xbf16, #tpu.memory_space<vmem>>, vector<64x256xbf16>
    tpu.vector_store %arg13[%c512, %c0_66], %102 {strides = array<i32>} : memref<576x256xbf16, #tpu.memory_space<vmem>>, vector<64x256xbf16>,
    %c0_67 = arith.constant 0 : index
    %c0_68 = arith.constant 0 : index
    %104 = vector.load %arg13[%c0_67, %c0_68] : memref<576x256xbf16, #tpu.memory_space<vmem>>, vector<576x256xbf16>
    %cst_69 = arith.constant dense<0.000000e+00> : vector<32x256xf32>
    %105 = tpu.matmul %52, %104, %cst_69 {dimension_numbers = #tpu.dot_dimension_numbers<[1], [0], [0], [1], [0, 0, 1, 1], [], []>} : vector<32x576xbf16>, vector<576x256xbf16>, vector<32x256xf32> -> vector<32x256xf32>
    %106 = vector.broadcast %53 : vector<32x1xf32> to vector<32x256xf32>
    %107 = arith.addf %105, %106 : vector<32x256xf32>
    %c0_70 = arith.constant 0 : index
    %c3 = arith.constant 3 : index
    %108 = vector.load %arg3[%c0_70, %c3] : memref<64x10xf32, #tpu.memory_space<vmem>>, vector<32x1xf32>
    %c0_71 = arith.constant 0 : index
    %c4 = arith.constant 4 : index
    %109 = vector.load %arg3[%c0_71, %c4] : memref<64x10xf32, #tpu.memory_space<vmem>>, vector<32x1xf32>
    %cst_72 = arith.constant dense<0.000000e+00> : vector<32xf32>
    %110 = vector.multi_reduction <add>, %107, %cst_72 [1] : vector<32x256xf32> to vector<32xf32>
    %111 = vector.shape_cast %110 : vector<32xf32> to vector<32x1xf32>
    %cst_73 = arith.constant 3.906250e-03 : f32
    %112 = vector.broadcast %cst_73 : f32 to vector<32x1xf32>
    %113 = arith.mulf %111, %112 : vector<32x1xf32>
    %114 = arith.mulf %107, %107 : vector<32x256xf32>
    %cst_74 = arith.constant dense<0.000000e+00> : vector<32xf32>
    %115 = vector.multi_reduction <add>, %114, %cst_74 [1] : vector<32x256xf32> to vector<32xf32>
    %116 = vector.shape_cast %115 : vector<32xf32> to vector<32x1xf32>
    %cst_75 = arith.constant 3.906250e-03 : f32
    %117 = vector.broadcast %cst_75 : f32 to vector<32x1xf32>
    %118 = arith.mulf %116, %117 : vector<32x1xf32>
    %119 = arith.mulf %113, %113 : vector<32x1xf32>
    %120 = arith.subf %118, %119 : vector<32x1xf32>
    %cst_76 = arith.constant 0.000000e+00 : f32
    %121 = vector.broadcast %cst_76 : f32 to vector<32x1xf32>
    %122 = arith.maximumf %120, %121 : vector<32x1xf32>
    %cst_77 = arith.constant 9.99999997E-7 : f32
    %123 = vector.broadcast %cst_77 : f32 to vector<32x1xf32>
    %124 = arith.addf %122, %123 : vector<32x1xf32>
    %125 = math.rsqrt %124 : vector<32x1xf32>
    %126 = vector.broadcast %113 : vector<32x1xf32> to vector<32x256xf32>
    %127 = arith.subf %107, %126 : vector<32x256xf32>
    %128 = arith.mulf %125, %108 : vector<32x1xf32>
    %129 = vector.broadcast %128 : vector<32x1xf32> to vector<32x256xf32>
    %130 = arith.mulf %127, %129 : vector<32x256xf32>
    %131 = vector.broadcast %109 : vector<32x1xf32> to vector<32x256xf32>
    %132 = arith.addf %130, %131 : vector<32x256xf32>
    %133 = arith.negf %132 : vector<32x256xf32>
    %134 = math.exp %133 : vector<32x256xf32>
    %cst_78 = arith.constant 1.000000e+00 : f32
    %135 = vector.broadcast %cst_78 : f32 to vector<32x256xf32>
    %136 = arith.addf %135, %134 : vector<32x256xf32>
    %137 = arith.divf %135, %136 : vector<32x256xf32>
    %138 = arith.mulf %132, %137 : vector<32x256xf32>
    %c64_79 = arith.constant 64 : index
    %c0_80 = arith.constant 0 : index
    %139 = vector.load %arg5[%c64_79, %c0_80] : memref<160x288xbf16, #tpu.memory_space<vmem>>, vector<32x288xbf16>
    %c0_81 = arith.constant 0 : index
    %c6 = arith.constant 6 : index
    %140 = vector.load %arg3[%c0_81, %c6] : memref<64x10xf32, #tpu.memory_space<vmem>>, vector<32x1xf32>
    %141 = arith.truncf %138 : vector<32x256xf32> to vector<32x256xbf16>
    %c0_82 = arith.constant 0 : index
    %c128_83 = arith.constant 128 : index
    %142 = vector.load %arg12[%c0_82, %c128_83] : memref<64x512xbf16, #tpu.memory_space<vmem>>, vector<32x256xbf16>
    tpu.vector_store %arg12[%c0_82, %c128_83], %141 {strides = array<i32>} : memref<64x512xbf16, #tpu.memory_space<vmem>>, vector<32x256xbf16>,
    %c0_84 = arith.constant 0 : index
    %c111_85 = arith.constant 111 : index
    %143 = vector.load %arg12[%c0_84, %c111_85] : memref<64x512xbf16, #tpu.memory_space<vmem>>, vector<32x256xbf16>
    %c0_i32_86 = arith.constant 0 : i32
    %144 = arith.sitofp %c0_i32_86 : i32 to bf16
    %145 = vector.shape_cast %6 : vector<1x256xi1> to vector<1x256xi1>
    %146 = vector.broadcast %145 : vector<1x256xi1> to vector<32x256xi1>
    %147 = vector.broadcast %144 : bf16 to vector<32x256xbf16>
    %148 = arith.select %146, %143, %147 : vector<32x256xi1>, vector<32x256xbf16>
    %c0_87 = arith.constant 0 : index
    %c0_88 = arith.constant 0 : index
    %149 = vector.load %arg13[%c0_87, %c0_88] : memref<576x256xbf16, #tpu.memory_space<vmem>>, vector<32x256xbf16>
    tpu.vector_store %arg13[%c0_87, %c0_88], %148 {strides = array<i32>} : memref<576x256xbf16, #tpu.memory_space<vmem>>, vector<32x256xbf16>,
    %c0_89 = arith.constant 0 : index
    %c112_90 = arith.constant 112 : index
    %150 = vector.load %arg12[%c0_89, %c112_90] : memref<64x512xbf16, #tpu.memory_space<vmem>>, vector<32x256xbf16>
    %c32_91 = arith.constant 32 : index
    %c0_92 = arith.constant 0 : index
    %151 = vector.load %arg13[%c32_91, %c0_92] : memref<576x256xbf16, #tpu.memory_space<vmem>>, vector<32x256xbf16>
    tpu.vector_store %arg13[%c32_91, %c0_92], %150 {strides = array<i32>} : memref<576x256xbf16, #tpu.memory_space<vmem>>, vector<32x256xbf16>,
    %c0_93 = arith.constant 0 : index
    %c113_94 = arith.constant 113 : index
    %152 = vector.load %arg12[%c0_93, %c113_94] : memref<64x512xbf16, #tpu.memory_space<vmem>>, vector<32x256xbf16>
    %c0_i32_95 = arith.constant 0 : i32
    %153 = arith.sitofp %c0_i32_95 : i32 to bf16
    %154 = vector.shape_cast %9 : vector<1x256xi1> to vector<1x256xi1>
    %155 = vector.broadcast %154 : vector<1x256xi1> to vector<32x256xi1>
    %156 = vector.broadcast %153 : bf16 to vector<32x256xbf16>
    %157 = arith.select %155, %152, %156 : vector<32x256xi1>, vector<32x256xbf16>
    %c64_96 = arith.constant 64 : index
    %c0_97 = arith.constant 0 : index
    %158 = vector.load %arg13[%c64_96, %c0_97] : memref<576x256xbf16, #tpu.memory_space<vmem>>, vector<32x256xbf16>
    tpu.vector_store %arg13[%c64_96, %c0_97], %157 {strides = array<i32>} : memref<576x256xbf16, #tpu.memory_space<vmem>>, vector<32x256xbf16>,
    %c0_98 = arith.constant 0 : index
    %c127_99 = arith.constant 127 : index
    %159 = vector.load %arg12[%c0_98, %c127_99] : memref<64x512xbf16, #tpu.memory_space<vmem>>, vector<32x256xbf16>
    %c0_i32_100 = arith.constant 0 : i32
    %160 = arith.sitofp %c0_i32_100 : i32 to bf16
    %161 = vector.shape_cast %6 : vector<1x256xi1> to vector<1x256xi1>
    %162 = vector.broadcast %161 : vector<1x256xi1> to vector<32x256xi1>
    %163 = vector.broadcast %160 : bf16 to vector<32x256xbf16>
    %164 = arith.select %162, %159, %163 : vector<32x256xi1>, vector<32x256xbf16>
    %c96 = arith.constant 96 : index
    %c0_101 = arith.constant 0 : index
    %165 = vector.load %arg13[%c96, %c0_101] : memref<576x256xbf16, #tpu.memory_space<vmem>>, vector<32x256xbf16>
    tpu.vector_store %arg13[%c96, %c0_101], %164 {strides = array<i32>} : memref<576x256xbf16, #tpu.memory_space<vmem>>, vector<32x256xbf16>,
    %c0_102 = arith.constant 0 : index
    %c128_103 = arith.constant 128 : index
    %166 = vector.load %arg12[%c0_102, %c128_103] : memref<64x512xbf16, #tpu.memory_space<vmem>>, vector<32x256xbf16>
    %c128_104 = arith.constant 128 : index
    %c0_105 = arith.constant 0 : index
    %167 = vector.load %arg13[%c128_104, %c0_105] : memref<576x256xbf16, #tpu.memory_space<vmem>>, vector<32x256xbf16>
    tpu.vector_store %arg13[%c128_104, %c0_105], %166 {strides = array<i32>} : memref<576x256xbf16, #tpu.memory_space<vmem>>, vector<32x256xbf16>,
    %c0_106 = arith.constant 0 : index
    %c129_107 = arith.constant 129 : index
    %168 = vector.load %arg12[%c0_106, %c129_107] : memref<64x512xbf16, #tpu.memory_space<vmem>>, vector<32x256xbf16>
    %c0_i32_108 = arith.constant 0 : i32
    %169 = arith.sitofp %c0_i32_108 : i32 to bf16
    %170 = vector.shape_cast %9 : vector<1x256xi1> to vector<1x256xi1>
    %171 = vector.broadcast %170 : vector<1x256xi1> to vector<32x256xi1>
    %172 = vector.broadcast %169 : bf16 to vector<32x256xbf16>
    %173 = arith.select %171, %168, %172 : vector<32x256xi1>, vector<32x256xbf16>
    %c160 = arith.constant 160 : index
    %c0_109 = arith.constant 0 : index
    %174 = vector.load %arg13[%c160, %c0_109] : memref<576x256xbf16, #tpu.memory_space<vmem>>, vector<32x256xbf16>
    tpu.vector_store %arg13[%c160, %c0_109], %173 {strides = array<i32>} : memref<576x256xbf16, #tpu.memory_space<vmem>>, vector<32x256xbf16>,
    %c0_110 = arith.constant 0 : index
    %c143_111 = arith.constant 143 : index
    %175 = vector.load %arg12[%c0_110, %c143_111] : memref<64x512xbf16, #tpu.memory_space<vmem>>, vector<32x256xbf16>
    %c0_i32_112 = arith.constant 0 : i32
    %176 = arith.sitofp %c0_i32_112 : i32 to bf16
    %177 = vector.shape_cast %6 : vector<1x256xi1> to vector<1x256xi1>
    %178 = vector.broadcast %177 : vector<1x256xi1> to vector<32x256xi1>
    %179 = vector.broadcast %176 : bf16 to vector<32x256xbf16>
    %180 = arith.select %178, %175, %179 : vector<32x256xi1>, vector<32x256xbf16>
    %c192_113 = arith.constant 192 : index
    %c0_114 = arith.constant 0 : index
    %181 = vector.load %arg13[%c192_113, %c0_114] : memref<576x256xbf16, #tpu.memory_space<vmem>>, vector<32x256xbf16>
    tpu.vector_store %arg13[%c192_113, %c0_114], %180 {strides = array<i32>} : memref<576x256xbf16, #tpu.memory_space<vmem>>, vector<32x256xbf16>,
    %c0_115 = arith.constant 0 : index
    %c144_116 = arith.constant 144 : index
    %182 = vector.load %arg12[%c0_115, %c144_116] : memref<64x512xbf16, #tpu.memory_space<vmem>>, vector<32x256xbf16>
    %c224 = arith.constant 224 : index
    %c0_117 = arith.constant 0 : index
    %183 = vector.load %arg13[%c224, %c0_117] : memref<576x256xbf16, #tpu.memory_space<vmem>>, vector<32x256xbf16>
    tpu.vector_store %arg13[%c224, %c0_117], %182 {strides = array<i32>} : memref<576x256xbf16, #tpu.memory_space<vmem>>, vector<32x256xbf16>,
    %c0_118 = arith.constant 0 : index
    %c145_119 = arith.constant 145 : index
    %184 = vector.load %arg12[%c0_118, %c145_119] : memref<64x512xbf16, #tpu.memory_space<vmem>>, vector<32x256xbf16>
    %c0_i32_120 = arith.constant 0 : i32
    %185 = arith.sitofp %c0_i32_120 : i32 to bf16
    %186 = vector.shape_cast %9 : vector<1x256xi1> to vector<1x256xi1>
    %187 = vector.broadcast %186 : vector<1x256xi1> to vector<32x256xi1>
    %188 = vector.broadcast %185 : bf16 to vector<32x256xbf16>
    %189 = arith.select %187, %184, %188 : vector<32x256xi1>, vector<32x256xbf16>
    %c256_121 = arith.constant 256 : index
    %c0_122 = arith.constant 0 : index
    %190 = vector.load %arg13[%c256_121, %c0_122] : memref<576x256xbf16, #tpu.memory_space<vmem>>, vector<32x256xbf16>
    tpu.vector_store %arg13[%c256_121, %c0_122], %189 {strides = array<i32>} : memref<576x256xbf16, #tpu.memory_space<vmem>>, vector<32x256xbf16>,
    %c0_123 = arith.constant 0 : index
    %c0_124 = arith.constant 0 : index
    %191 = vector.load %arg13[%c0_123, %c0_124] : memref<576x256xbf16, #tpu.memory_space<vmem>>, vector<288x256xbf16>
    %cst_125 = arith.constant dense<0.000000e+00> : vector<32x256xf32>
    %192 = tpu.matmul %139, %191, %cst_125 {dimension_numbers = #tpu.dot_dimension_numbers<[1], [0], [0], [1], [0, 0, 1, 1], [], []>} : vector<32x288xbf16>, vector<288x256xbf16>, vector<32x256xf32> -> vector<32x256xf32>
    %193 = vector.broadcast %140 : vector<32x1xf32> to vector<32x256xf32>
    %194 = arith.addf %192, %193 : vector<32x256xf32>
    %c0_126 = arith.constant 0 : index
    %c0_127 = arith.constant 0 : index
    %195 = vector.load %arg6[%c0_126, %c0_127] : memref<32x64xbf16, #tpu.memory_space<vmem>>, vector<32x64xbf16>
    %c0_128 = arith.constant 0 : index
    %c0_129 = arith.constant 0 : index
    %196 = vector.load %arg11[%c0_128, %c0_129] : memref<64x256xf32, #tpu.memory_space<vmem>>, vector<64x256xf32>
    %197 = arith.truncf %196 : vector<64x256xf32> to vector<64x256xbf16>
    %cst_130 = arith.constant dense<0.000000e+00> : vector<32x256xf32>
    %198 = tpu.matmul %195, %197, %cst_130 {dimension_numbers = #tpu.dot_dimension_numbers<[1], [0], [0], [1], [0, 0, 1, 1], [], []>} : vector<32x64xbf16>, vector<64x256xbf16>, vector<32x256xf32> -> vector<32x256xf32>
    %c0_131 = arith.constant 0 : index
    %c7 = arith.constant 7 : index
    %199 = vector.load %arg3[%c0_131, %c7] : memref<64x10xf32, #tpu.memory_space<vmem>>, vector<32x1xf32>
    %200 = vector.broadcast %199 : vector<32x1xf32> to vector<32x256xf32>
    %201 = arith.addf %198, %200 : vector<32x256xf32>
    %202 = arith.addf %194, %201 : vector<32x256xf32>
    %c0_132 = arith.constant 0 : index
    %c0_133 = arith.constant 0 : index
    %203 = vector.load %arg5[%c0_132, %c0_133] : memref<160x288xbf16, #tpu.memory_space<vmem>>, vector<64x288xbf16>
    %c0_134 = arith.constant 0 : index
    %c2 = arith.constant 2 : index
    %204 = vector.load %arg3[%c0_134, %c2] : memref<64x10xf32, #tpu.memory_space<vmem>>, vector<64x1xf32>
    %205 = arith.truncf %202 : vector<32x256xf32> to vector<32x256xbf16>
    %c0_135 = arith.constant 0 : index
    %c128_136 = arith.constant 128 : index
    %206 = vector.load %arg12[%c0_135, %c128_136] : memref<64x512xbf16, #tpu.memory_space<vmem>>, vector<32x256xbf16>
    tpu.vector_store %arg12[%c0_135, %c128_136], %205 {strides = array<i32>} : memref<64x512xbf16, #tpu.memory_space<vmem>>, vector<32x256xbf16>,
    %c0_137 = arith.constant 0 : index
    %c111_138 = arith.constant 111 : index
    %207 = vector.load %arg12[%c0_137, %c111_138] : memref<64x512xbf16, #tpu.memory_space<vmem>>, vector<32x256xbf16>
    %c0_i32_139 = arith.constant 0 : i32
    %208 = arith.sitofp %c0_i32_139 : i32 to bf16
    %209 = vector.shape_cast %6 : vector<1x256xi1> to vector<1x256xi1>
    %210 = vector.broadcast %209 : vector<1x256xi1> to vector<32x256xi1>
    %211 = vector.broadcast %208 : bf16 to vector<32x256xbf16>
    %212 = arith.select %210, %207, %211 : vector<32x256xi1>, vector<32x256xbf16>
    %c0_140 = arith.constant 0 : index
    %c0_141 = arith.constant 0 : index
    %213 = vector.load %arg13[%c0_140, %c0_141] : memref<576x256xbf16, #tpu.memory_space<vmem>>, vector<32x256xbf16>
    tpu.vector_store %arg13[%c0_140, %c0_141], %212 {strides = array<i32>} : memref<576x256xbf16, #tpu.memory_space<vmem>>, vector<32x256xbf16>,
    %c0_142 = arith.constant 0 : index
    %c112_143 = arith.constant 112 : index
    %214 = vector.load %arg12[%c0_142, %c112_143] : memref<64x512xbf16, #tpu.memory_space<vmem>>, vector<32x256xbf16>
    %c32_144 = arith.constant 32 : index
    %c0_145 = arith.constant 0 : index
    %215 = vector.load %arg13[%c32_144, %c0_145] : memref<576x256xbf16, #tpu.memory_space<vmem>>, vector<32x256xbf16>
    tpu.vector_store %arg13[%c32_144, %c0_145], %214 {strides = array<i32>} : memref<576x256xbf16, #tpu.memory_space<vmem>>, vector<32x256xbf16>,
    %c0_146 = arith.constant 0 : index
    %c113_147 = arith.constant 113 : index
    %216 = vector.load %arg12[%c0_146, %c113_147] : memref<64x512xbf16, #tpu.memory_space<vmem>>, vector<32x256xbf16>
    %c0_i32_148 = arith.constant 0 : i32
    %217 = arith.sitofp %c0_i32_148 : i32 to bf16
    %218 = vector.shape_cast %9 : vector<1x256xi1> to vector<1x256xi1>
    %219 = vector.broadcast %218 : vector<1x256xi1> to vector<32x256xi1>
    %220 = vector.broadcast %217 : bf16 to vector<32x256xbf16>
    %221 = arith.select %219, %216, %220 : vector<32x256xi1>, vector<32x256xbf16>
    %c64_149 = arith.constant 64 : index
    %c0_150 = arith.constant 0 : index
    %222 = vector.load %arg13[%c64_149, %c0_150] : memref<576x256xbf16, #tpu.memory_space<vmem>>, vector<32x256xbf16>
    tpu.vector_store %arg13[%c64_149, %c0_150], %221 {strides = array<i32>} : memref<576x256xbf16, #tpu.memory_space<vmem>>, vector<32x256xbf16>,
    %c0_151 = arith.constant 0 : index
    %c127_152 = arith.constant 127 : index
    %223 = vector.load %arg12[%c0_151, %c127_152] : memref<64x512xbf16, #tpu.memory_space<vmem>>, vector<32x256xbf16>
    %c0_i32_153 = arith.constant 0 : i32
    %224 = arith.sitofp %c0_i32_153 : i32 to bf16
    %225 = vector.shape_cast %6 : vector<1x256xi1> to vector<1x256xi1>
    %226 = vector.broadcast %225 : vector<1x256xi1> to vector<32x256xi1>
    %227 = vector.broadcast %224 : bf16 to vector<32x256xbf16>
    %228 = arith.select %226, %223, %227 : vector<32x256xi1>, vector<32x256xbf16>
    %c96_154 = arith.constant 96 : index
    %c0_155 = arith.constant 0 : index
    %229 = vector.load %arg13[%c96_154, %c0_155] : memref<576x256xbf16, #tpu.memory_space<vmem>>, vector<32x256xbf16>
    tpu.vector_store %arg13[%c96_154, %c0_155], %228 {strides = array<i32>} : memref<576x256xbf16, #tpu.memory_space<vmem>>, vector<32x256xbf16>,
    %c0_156 = arith.constant 0 : index
    %c128_157 = arith.constant 128 : index
    %230 = vector.load %arg12[%c0_156, %c128_157] : memref<64x512xbf16, #tpu.memory_space<vmem>>, vector<32x256xbf16>
    %c128_158 = arith.constant 128 : index
    %c0_159 = arith.constant 0 : index
    %231 = vector.load %arg13[%c128_158, %c0_159] : memref<576x256xbf16, #tpu.memory_space<vmem>>, vector<32x256xbf16>
    tpu.vector_store %arg13[%c128_158, %c0_159], %230 {strides = array<i32>} : memref<576x256xbf16, #tpu.memory_space<vmem>>, vector<32x256xbf16>,
    %c0_160 = arith.constant 0 : index
    %c129_161 = arith.constant 129 : index
    %232 = vector.load %arg12[%c0_160, %c129_161] : memref<64x512xbf16, #tpu.memory_space<vmem>>, vector<32x256xbf16>
    %c0_i32_162 = arith.constant 0 : i32
    %233 = arith.sitofp %c0_i32_162 : i32 to bf16
    %234 = vector.shape_cast %9 : vector<1x256xi1> to vector<1x256xi1>
    %235 = vector.broadcast %234 : vector<1x256xi1> to vector<32x256xi1>
    %236 = vector.broadcast %233 : bf16 to vector<32x256xbf16>
    %237 = arith.select %235, %232, %236 : vector<32x256xi1>, vector<32x256xbf16>
    %c160_163 = arith.constant 160 : index
    %c0_164 = arith.constant 0 : index
    %238 = vector.load %arg13[%c160_163, %c0_164] : memref<576x256xbf16, #tpu.memory_space<vmem>>, vector<32x256xbf16>
    tpu.vector_store %arg13[%c160_163, %c0_164], %237 {strides = array<i32>} : memref<576x256xbf16, #tpu.memory_space<vmem>>, vector<32x256xbf16>,
    %c0_165 = arith.constant 0 : index
    %c143_166 = arith.constant 143 : index
    %239 = vector.load %arg12[%c0_165, %c143_166] : memref<64x512xbf16, #tpu.memory_space<vmem>>, vector<32x256xbf16>
    %c0_i32_167 = arith.constant 0 : i32
    %240 = arith.sitofp %c0_i32_167 : i32 to bf16
    %241 = vector.shape_cast %6 : vector<1x256xi1> to vector<1x256xi1>
    %242 = vector.broadcast %241 : vector<1x256xi1> to vector<32x256xi1>
    %243 = vector.broadcast %240 : bf16 to vector<32x256xbf16>
    %244 = arith.select %242, %239, %243 : vector<32x256xi1>, vector<32x256xbf16>
    %c192_168 = arith.constant 192 : index
    %c0_169 = arith.constant 0 : index
    %245 = vector.load %arg13[%c192_168, %c0_169] : memref<576x256xbf16, #tpu.memory_space<vmem>>, vector<32x256xbf16>
    tpu.vector_store %arg13[%c192_168, %c0_169], %244 {strides = array<i32>} : memref<576x256xbf16, #tpu.memory_space<vmem>>, vector<32x256xbf16>,
    %c0_170 = arith.constant 0 : index
    %c144_171 = arith.constant 144 : index
    %246 = vector.load %arg12[%c0_170, %c144_171] : memref<64x512xbf16, #tpu.memory_space<vmem>>, vector<32x256xbf16>
    %c224_172 = arith.constant 224 : index
    %c0_173 = arith.constant 0 : index
    %247 = vector.load %arg13[%c224_172, %c0_173] : memref<576x256xbf16, #tpu.memory_space<vmem>>, vector<32x256xbf16>
    tpu.vector_store %arg13[%c224_172, %c0_173], %246 {strides = array<i32>} : memref<576x256xbf16, #tpu.memory_space<vmem>>, vector<32x256xbf16>,
    %c0_174 = arith.constant 0 : index
    %c145_175 = arith.constant 145 : index
    %248 = vector.load %arg12[%c0_174, %c145_175] : memref<64x512xbf16, #tpu.memory_space<vmem>>, vector<32x256xbf16>
    %c0_i32_176 = arith.constant 0 : i32
    %249 = arith.sitofp %c0_i32_176 : i32 to bf16
    %250 = vector.shape_cast %9 : vector<1x256xi1> to vector<1x256xi1>
    %251 = vector.broadcast %250 : vector<1x256xi1> to vector<32x256xi1>
    %252 = vector.broadcast %249 : bf16 to vector<32x256xbf16>
    %253 = arith.select %251, %248, %252 : vector<32x256xi1>, vector<32x256xbf16>
    %c256_177 = arith.constant 256 : index
    %c0_178 = arith.constant 0 : index
    %254 = vector.load %arg13[%c256_177, %c0_178] : memref<576x256xbf16, #tpu.memory_space<vmem>>, vector<32x256xbf16>
    tpu.vector_store %arg13[%c256_177, %c0_178], %253 {strides = array<i32>} : memref<576x256xbf16, #tpu.memory_space<vmem>>, vector<32x256xbf16>,
    %c0_179 = arith.constant 0 : index
    %c0_180 = arith.constant 0 : index
    %255 = vector.load %arg13[%c0_179, %c0_180] : memref<576x256xbf16, #tpu.memory_space<vmem>>, vector<288x256xbf16>
    %cst_181 = arith.constant dense<0.000000e+00> : vector<64x256xf32>
    %256 = tpu.matmul %203, %255, %cst_181 {dimension_numbers = #tpu.dot_dimension_numbers<[1], [0], [0], [1], [0, 0, 1, 1], [], []>} : vector<64x288xbf16>, vector<288x256xbf16>, vector<64x256xf32> -> vector<64x256xf32>
    %257 = vector.broadcast %204 : vector<64x1xf32> to vector<64x256xf32>
    %258 = arith.addf %256, %257 : vector<64x256xf32>
    %cst_182 = arith.constant 0.000000e+00 : f32
    %259 = vector.broadcast %cst_182 : f32 to vector<64x256xf32>
    %260 = arith.cmpf oge, %258, %259 : vector<64x256xf32>
    %cst_183 = arith.constant 2.000000e-01 : f32
    %261 = vector.broadcast %cst_183 : f32 to vector<64x256xf32>
    %262 = arith.mulf %261, %258 : vector<64x256xf32>
    %263 = arith.select %260, %258, %262 : vector<64x256xi1>, vector<64x256xf32>
    %264 = arith.truncf %263 : vector<64x256xf32> to vector<64x256xbf16>
    %c0_184 = arith.constant 0 : index
    %c128_185 = arith.constant 128 : index
    %265 = vector.load %arg12[%c0_184, %c128_185] : memref<64x512xbf16, #tpu.memory_space<vmem>>, vector<64x256xbf16>
    tpu.vector_store %arg12[%c0_184, %c128_185], %264 {strides = array<i32>} : memref<64x512xbf16, #tpu.memory_space<vmem>>, vector<64x256xbf16>,
    %c0_186 = arith.constant 0 : index
    %c111_187 = arith.constant 111 : index
    %266 = vector.load %arg12[%c0_186, %c111_187] : memref<64x512xbf16, #tpu.memory_space<vmem>>, vector<32x256xbf16>
    %c0_i32_188 = arith.constant 0 : i32
    %267 = arith.sitofp %c0_i32_188 : i32 to bf16
    %268 = vector.shape_cast %6 : vector<1x256xi1> to vector<1x256xi1>
    %269 = vector.broadcast %268 : vector<1x256xi1> to vector<32x256xi1>
    %270 = vector.broadcast %267 : bf16 to vector<32x256xbf16>
    %271 = arith.select %269, %266, %270 : vector<32x256xi1>, vector<32x256xbf16>
    %c0_189 = arith.constant 0 : index
    %c0_190 = arith.constant 0 : index
    %272 = vector.load %arg13[%c0_189, %c0_190] : memref<576x256xbf16, #tpu.memory_space<vmem>>, vector<32x256xbf16>
    tpu.vector_store %arg13[%c0_189, %c0_190], %271 {strides = array<i32>} : memref<576x256xbf16, #tpu.memory_space<vmem>>, vector<32x256xbf16>,
    %c0_191 = arith.constant 0 : index
    %c112_192 = arith.constant 112 : index
    %273 = vector.load %arg12[%c0_191, %c112_192] : memref<64x512xbf16, #tpu.memory_space<vmem>>, vector<32x256xbf16>
    %c32_193 = arith.constant 32 : index
    %c0_194 = arith.constant 0 : index
    %274 = vector.load %arg13[%c32_193, %c0_194] : memref<576x256xbf16, #tpu.memory_space<vmem>>, vector<32x256xbf16>
    tpu.vector_store %arg13[%c32_193, %c0_194], %273 {strides = array<i32>} : memref<576x256xbf16, #tpu.memory_space<vmem>>, vector<32x256xbf16>,
    %c0_195 = arith.constant 0 : index
    %c113_196 = arith.constant 113 : index
    %275 = vector.load %arg12[%c0_195, %c113_196] : memref<64x512xbf16, #tpu.memory_space<vmem>>, vector<32x256xbf16>
    %c0_i32_197 = arith.constant 0 : i32
    %276 = arith.sitofp %c0_i32_197 : i32 to bf16
    %277 = vector.shape_cast %9 : vector<1x256xi1> to vector<1x256xi1>
    %278 = vector.broadcast %277 : vector<1x256xi1> to vector<32x256xi1>
    %279 = vector.broadcast %276 : bf16 to vector<32x256xbf16>
    %280 = arith.select %278, %275, %279 : vector<32x256xi1>, vector<32x256xbf16>
    %c64_198 = arith.constant 64 : index
    %c0_199 = arith.constant 0 : index
    %281 = vector.load %arg13[%c64_198, %c0_199] : memref<576x256xbf16, #tpu.memory_space<vmem>>, vector<32x256xbf16>
    tpu.vector_store %arg13[%c64_198, %c0_199], %280 {strides = array<i32>} : memref<576x256xbf16, #tpu.memory_space<vmem>>, vector<32x256xbf16>,
    %c0_200 = arith.constant 0 : index
    %c127_201 = arith.constant 127 : index
    %282 = vector.load %arg12[%c0_200, %c127_201] : memref<64x512xbf16, #tpu.memory_space<vmem>>, vector<32x256xbf16>
    %c0_i32_202 = arith.constant 0 : i32
    %283 = arith.sitofp %c0_i32_202 : i32 to bf16
    %284 = vector.shape_cast %6 : vector<1x256xi1> to vector<1x256xi1>
    %285 = vector.broadcast %284 : vector<1x256xi1> to vector<32x256xi1>
    %286 = vector.broadcast %283 : bf16 to vector<32x256xbf16>
    %287 = arith.select %285, %282, %286 : vector<32x256xi1>, vector<32x256xbf16>
    %c96_203 = arith.constant 96 : index
    %c0_204 = arith.constant 0 : index
    %288 = vector.load %arg13[%c96_203, %c0_204] : memref<576x256xbf16, #tpu.memory_space<vmem>>, vector<32x256xbf16>
    tpu.vector_store %arg13[%c96_203, %c0_204], %287 {strides = array<i32>} : memref<576x256xbf16, #tpu.memory_space<vmem>>, vector<32x256xbf16>,
    %c0_205 = arith.constant 0 : index
    %c128_206 = arith.constant 128 : index
    %289 = vector.load %arg12[%c0_205, %c128_206] : memref<64x512xbf16, #tpu.memory_space<vmem>>, vector<32x256xbf16>
    %c128_207 = arith.constant 128 : index
    %c0_208 = arith.constant 0 : index
    %290 = vector.load %arg13[%c128_207, %c0_208] : memref<576x256xbf16, #tpu.memory_space<vmem>>, vector<32x256xbf16>
    tpu.vector_store %arg13[%c128_207, %c0_208], %289 {strides = array<i32>} : memref<576x256xbf16, #tpu.memory_space<vmem>>, vector<32x256xbf16>,
    %c0_209 = arith.constant 0 : index
    %c129_210 = arith.constant 129 : index
    %291 = vector.load %arg12[%c0_209, %c129_210] : memref<64x512xbf16, #tpu.memory_space<vmem>>, vector<32x256xbf16>
    %c0_i32_211 = arith.constant 0 : i32
    %292 = arith.sitofp %c0_i32_211 : i32 to bf16
    %293 = vector.shape_cast %9 : vector<1x256xi1> to vector<1x256xi1>
    %294 = vector.broadcast %293 : vector<1x256xi1> to vector<32x256xi1>
    %295 = vector.broadcast %292 : bf16 to vector<32x256xbf16>
    %296 = arith.select %294, %291, %295 : vector<32x256xi1>, vector<32x256xbf16>
    %c160_212 = arith.constant 160 : index
    %c0_213 = arith.constant 0 : index
    %297 = vector.load %arg13[%c160_212, %c0_213] : memref<576x256xbf16, #tpu.memory_space<vmem>>, vector<32x256xbf16>
    tpu.vector_store %arg13[%c160_212, %c0_213], %296 {strides = array<i32>} : memref<576x256xbf16, #tpu.memory_space<vmem>>, vector<32x256xbf16>,
    %c0_214 = arith.constant 0 : index
    %c143_215 = arith.constant 143 : index
    %298 = vector.load %arg12[%c0_214, %c143_215] : memref<64x512xbf16, #tpu.memory_space<vmem>>, vector<32x256xbf16>
    %c0_i32_216 = arith.constant 0 : i32
    %299 = arith.sitofp %c0_i32_216 : i32 to bf16
    %300 = vector.shape_cast %6 : vector<1x256xi1> to vector<1x256xi1>
    %301 = vector.broadcast %300 : vector<1x256xi1> to vector<32x256xi1>
    %302 = vector.broadcast %299 : bf16 to vector<32x256xbf16>
    %303 = arith.select %301, %298, %302 : vector<32x256xi1>, vector<32x256xbf16>
    %c192_217 = arith.constant 192 : index
    %c0_218 = arith.constant 0 : index
    %304 = vector.load %arg13[%c192_217, %c0_218] : memref<576x256xbf16, #tpu.memory_space<vmem>>, vector<32x256xbf16>
    tpu.vector_store %arg13[%c192_217, %c0_218], %303 {strides = array<i32>} : memref<576x256xbf16, #tpu.memory_space<vmem>>, vector<32x256xbf16>,
    %c0_219 = arith.constant 0 : index
    %c144_220 = arith.constant 144 : index
    %305 = vector.load %arg12[%c0_219, %c144_220] : memref<64x512xbf16, #tpu.memory_space<vmem>>, vector<32x256xbf16>
    %c224_221 = arith.constant 224 : index
    %c0_222 = arith.constant 0 : index
    %306 = vector.load %arg13[%c224_221, %c0_222] : memref<576x256xbf16, #tpu.memory_space<vmem>>, vector<32x256xbf16>
    tpu.vector_store %arg13[%c224_221, %c0_222], %305 {strides = array<i32>} : memref<576x256xbf16, #tpu.memory_space<vmem>>, vector<32x256xbf16>,
    %c0_223 = arith.constant 0 : index
    %c145_224 = arith.constant 145 : index
    %307 = vector.load %arg12[%c0_223, %c145_224] : memref<64x512xbf16, #tpu.memory_space<vmem>>, vector<32x256xbf16>
    %c0_i32_225 = arith.constant 0 : i32
    %308 = arith.sitofp %c0_i32_225 : i32 to bf16
    %309 = vector.shape_cast %9 : vector<1x256xi1> to vector<1x256xi1>
    %310 = vector.broadcast %309 : vector<1x256xi1> to vector<32x256xi1>
    %311 = vector.broadcast %308 : bf16 to vector<32x256xbf16>
    %312 = arith.select %310, %307, %311 : vector<32x256xi1>, vector<32x256xbf16>
    %c256_226 = arith.constant 256 : index
    %c0_227 = arith.constant 0 : index
    %313 = vector.load %arg13[%c256_226, %c0_227] : memref<576x256xbf16, #tpu.memory_space<vmem>>, vector<32x256xbf16>
    tpu.vector_store %arg13[%c256_226, %c0_227], %312 {strides = array<i32>} : memref<576x256xbf16, #tpu.memory_space<vmem>>, vector<32x256xbf16>,
    %c32_228 = arith.constant 32 : index
    %c111_229 = arith.constant 111 : index
    %314 = vector.load %arg12[%c32_228, %c111_229] : memref<64x512xbf16, #tpu.memory_space<vmem>>, vector<32x256xbf16>
    %c0_i32_230 = arith.constant 0 : i32
    %315 = arith.sitofp %c0_i32_230 : i32 to bf16
    %316 = vector.shape_cast %6 : vector<1x256xi1> to vector<1x256xi1>
    %317 = vector.broadcast %316 : vector<1x256xi1> to vector<32x256xi1>
    %318 = vector.broadcast %315 : bf16 to vector<32x256xbf16>
    %319 = arith.select %317, %314, %318 : vector<32x256xi1>, vector<32x256xbf16>
    %c288 = arith.constant 288 : index
    %c0_231 = arith.constant 0 : index
    %320 = vector.load %arg13[%c288, %c0_231] : memref<576x256xbf16, #tpu.memory_space<vmem>>, vector<32x256xbf16>
    tpu.vector_store %arg13[%c288, %c0_231], %319 {strides = array<i32>} : memref<576x256xbf16, #tpu.memory_space<vmem>>, vector<32x256xbf16>,
    %c32_232 = arith.constant 32 : index
    %c112_233 = arith.constant 112 : index
    %321 = vector.load %arg12[%c32_232, %c112_233] : memref<64x512xbf16, #tpu.memory_space<vmem>>, vector<32x256xbf16>
    %c320_234 = arith.constant 320 : index
    %c0_235 = arith.constant 0 : index
    %322 = vector.load %arg13[%c320_234, %c0_235] : memref<576x256xbf16, #tpu.memory_space<vmem>>, vector<32x256xbf16>
    tpu.vector_store %arg13[%c320_234, %c0_235], %321 {strides = array<i32>} : memref<576x256xbf16, #tpu.memory_space<vmem>>, vector<32x256xbf16>,
    %c32_236 = arith.constant 32 : index
    %c113_237 = arith.constant 113 : index
    %323 = vector.load %arg12[%c32_236, %c113_237] : memref<64x512xbf16, #tpu.memory_space<vmem>>, vector<32x256xbf16>
    %c0_i32_238 = arith.constant 0 : i32
    %324 = arith.sitofp %c0_i32_238 : i32 to bf16
    %325 = vector.shape_cast %9 : vector<1x256xi1> to vector<1x256xi1>
    %326 = vector.broadcast %325 : vector<1x256xi1> to vector<32x256xi1>
    %327 = vector.broadcast %324 : bf16 to vector<32x256xbf16>
    %328 = arith.select %326, %323, %327 : vector<32x256xi1>, vector<32x256xbf16>
    %c352 = arith.constant 352 : index
    %c0_239 = arith.constant 0 : index
    %329 = vector.load %arg13[%c352, %c0_239] : memref<576x256xbf16, #tpu.memory_space<vmem>>, vector<32x256xbf16>
    tpu.vector_store %arg13[%c352, %c0_239], %328 {strides = array<i32>} : memref<576x256xbf16, #tpu.memory_space<vmem>>, vector<32x256xbf16>,
    %c32_240 = arith.constant 32 : index
    %c127_241 = arith.constant 127 : index
    %330 = vector.load %arg12[%c32_240, %c127_241] : memref<64x512xbf16, #tpu.memory_space<vmem>>, vector<32x256xbf16>
    %c0_i32_242 = arith.constant 0 : i32
    %331 = arith.sitofp %c0_i32_242 : i32 to bf16
    %332 = vector.shape_cast %6 : vector<1x256xi1> to vector<1x256xi1>
    %333 = vector.broadcast %332 : vector<1x256xi1> to vector<32x256xi1>
    %334 = vector.broadcast %331 : bf16 to vector<32x256xbf16>
    %335 = arith.select %333, %330, %334 : vector<32x256xi1>, vector<32x256xbf16>
    %c384_243 = arith.constant 384 : index
    %c0_244 = arith.constant 0 : index
    %336 = vector.load %arg13[%c384_243, %c0_244] : memref<576x256xbf16, #tpu.memory_space<vmem>>, vector<32x256xbf16>
    tpu.vector_store %arg13[%c384_243, %c0_244], %335 {strides = array<i32>} : memref<576x256xbf16, #tpu.memory_space<vmem>>, vector<32x256xbf16>,
    %c32_245 = arith.constant 32 : index
    %c128_246 = arith.constant 128 : index
    %337 = vector.load %arg12[%c32_245, %c128_246] : memref<64x512xbf16, #tpu.memory_space<vmem>>, vector<32x256xbf16>
    %c416 = arith.constant 416 : index
    %c0_247 = arith.constant 0 : index
    %338 = vector.load %arg13[%c416, %c0_247] : memref<576x256xbf16, #tpu.memory_space<vmem>>, vector<32x256xbf16>
    tpu.vector_store %arg13[%c416, %c0_247], %337 {strides = array<i32>} : memref<576x256xbf16, #tpu.memory_space<vmem>>, vector<32x256xbf16>,
    %c32_248 = arith.constant 32 : index
    %c129_249 = arith.constant 129 : index
    %339 = vector.load %arg12[%c32_248, %c129_249] : memref<64x512xbf16, #tpu.memory_space<vmem>>, vector<32x256xbf16>
    %c0_i32_250 = arith.constant 0 : i32
    %340 = arith.sitofp %c0_i32_250 : i32 to bf16
    %341 = vector.shape_cast %9 : vector<1x256xi1> to vector<1x256xi1>
    %342 = vector.broadcast %341 : vector<1x256xi1> to vector<32x256xi1>
    %343 = vector.broadcast %340 : bf16 to vector<32x256xbf16>
    %344 = arith.select %342, %339, %343 : vector<32x256xi1>, vector<32x256xbf16>
    %c448_251 = arith.constant 448 : index
    %c0_252 = arith.constant 0 : index
    %345 = vector.load %arg13[%c448_251, %c0_252] : memref<576x256xbf16, #tpu.memory_space<vmem>>, vector<32x256xbf16>
    tpu.vector_store %arg13[%c448_251, %c0_252], %344 {strides = array<i32>} : memref<576x256xbf16, #tpu.memory_space<vmem>>, vector<32x256xbf16>,
    %c32_253 = arith.constant 32 : index
    %c143_254 = arith.constant 143 : index
    %346 = vector.load %arg12[%c32_253, %c143_254] : memref<64x512xbf16, #tpu.memory_space<vmem>>, vector<32x256xbf16>
    %c0_i32_255 = arith.constant 0 : i32
    %347 = arith.sitofp %c0_i32_255 : i32 to bf16
    %348 = vector.shape_cast %6 : vector<1x256xi1> to vector<1x256xi1>
    %349 = vector.broadcast %348 : vector<1x256xi1> to vector<32x256xi1>
    %350 = vector.broadcast %347 : bf16 to vector<32x256xbf16>
    %351 = arith.select %349, %346, %350 : vector<32x256xi1>, vector<32x256xbf16>
    %c480 = arith.constant 480 : index
    %c0_256 = arith.constant 0 : index
    %352 = vector.load %arg13[%c480, %c0_256] : memref<576x256xbf16, #tpu.memory_space<vmem>>, vector<32x256xbf16>
    tpu.vector_store %arg13[%c480, %c0_256], %351 {strides = array<i32>} : memref<576x256xbf16, #tpu.memory_space<vmem>>, vector<32x256xbf16>,
    %c32_257 = arith.constant 32 : index
    %c144_258 = arith.constant 144 : index
    %353 = vector.load %arg12[%c32_257, %c144_258] : memref<64x512xbf16, #tpu.memory_space<vmem>>, vector<32x256xbf16>
    %c512_259 = arith.constant 512 : index
    %c0_260 = arith.constant 0 : index
    %354 = vector.load %arg13[%c512_259, %c0_260] : memref<576x256xbf16, #tpu.memory_space<vmem>>, vector<32x256xbf16>
    tpu.vector_store %arg13[%c512_259, %c0_260], %353 {strides = array<i32>} : memref<576x256xbf16, #tpu.memory_space<vmem>>, vector<32x256xbf16>,
    %c32_261 = arith.constant 32 : index
    %c145_262 = arith.constant 145 : index
    %355 = vector.load %arg12[%c32_261, %c145_262] : memref<64x512xbf16, #tpu.memory_space<vmem>>, vector<32x256xbf16>
    %c0_i32_263 = arith.constant 0 : i32
    %356 = arith.sitofp %c0_i32_263 : i32 to bf16
    %357 = vector.shape_cast %9 : vector<1x256xi1> to vector<1x256xi1>
    %358 = vector.broadcast %357 : vector<1x256xi1> to vector<32x256xi1>
    %359 = vector.broadcast %356 : bf16 to vector<32x256xbf16>
    %360 = arith.select %358, %355, %359 : vector<32x256xi1>, vector<32x256xbf16>
    %c544 = arith.constant 544 : index
    %c0_264 = arith.constant 0 : index
    %361 = vector.load %arg13[%c544, %c0_264] : memref<576x256xbf16, #tpu.memory_space<vmem>>, vector<32x256xbf16>
    tpu.vector_store %arg13[%c544, %c0_264], %360 {strides = array<i32>} : memref<576x256xbf16, #tpu.memory_space<vmem>>, vector<32x256xbf16>,
    %c96_265 = arith.constant 96 : index
    %c0_266 = arith.constant 0 : index
    %362 = vector.load %arg5[%c96_265, %c0_266] : memref<160x288xbf16, #tpu.memory_space<vmem>>, vector<32x288xbf16>
    %c0_267 = arith.constant 0 : index
    %c0_268 = arith.constant 0 : index
    %363 = vector.load %arg13[%c0_267, %c0_268] : memref<576x256xbf16, #tpu.memory_space<vmem>>, vector<288x256xbf16>
    %cst_269 = arith.constant dense<0.000000e+00> : vector<32x256xf32>
    %364 = tpu.matmul %362, %363, %cst_269 {dimension_numbers = #tpu.dot_dimension_numbers<[1], [0], [0], [1], [0, 0, 1, 1], [], []>} : vector<32x288xbf16>, vector<288x256xbf16>, vector<32x256xf32> -> vector<32x256xf32>
    %c0_270 = arith.constant 0 : index
    %c8 = arith.constant 8 : index
    %365 = vector.load %arg3[%c0_270, %c8] : memref<64x10xf32, #tpu.memory_space<vmem>>, vector<32x1xf32>
    %366 = vector.broadcast %365 : vector<32x1xf32> to vector<32x256xf32>
    %367 = arith.addf %364, %366 : vector<32x256xf32>
    %c128_271 = arith.constant 128 : index
    %c0_272 = arith.constant 0 : index
    %368 = vector.load %arg5[%c128_271, %c0_272] : memref<160x288xbf16, #tpu.memory_space<vmem>>, vector<32x288xbf16>
    %c288_273 = arith.constant 288 : index
    %c0_274 = arith.constant 0 : index
    %369 = vector.load %arg13[%c288_273, %c0_274] : memref<576x256xbf16, #tpu.memory_space<vmem>>, vector<288x256xbf16>
    %cst_275 = arith.constant dense<0.000000e+00> : vector<32x256xf32>
    %370 = tpu.matmul %368, %369, %cst_275 {dimension_numbers = #tpu.dot_dimension_numbers<[1], [0], [0], [1], [0, 0, 1, 1], [], []>} : vector<32x288xbf16>, vector<288x256xbf16>, vector<32x256xf32> -> vector<32x256xf32>
    %c0_276 = arith.constant 0 : index
    %c9 = arith.constant 9 : index
    %371 = vector.load %arg3[%c0_276, %c9] : memref<64x10xf32, #tpu.memory_space<vmem>>, vector<32x1xf32>
    %372 = vector.broadcast %371 : vector<32x1xf32> to vector<32x256xf32>
    %373 = arith.addf %370, %372 : vector<32x256xf32>
    %c0_277 = arith.constant 0 : index
    %c0_278 = arith.constant 0 : index
    %c0_279 = arith.constant 0 : index
    %374 = vector.load %arg2[%c0_277, %c0_278, %c0_279] : memref<1x32x256xf32, #tpu.memory_space<vmem>>, vector<1x32x256xf32>
    %375 = vector.shape_cast %374 : vector<1x32x256xf32> to vector<32x256xf32>
    %376 = arith.mulf %375, %367 : vector<32x256xf32>
    %377 = arith.addf %376, %373 : vector<32x256xf32>
    %cst_280 = arith.constant 1.000000e+00 : f32
    %378 = vector.broadcast %cst_280 : f32 to vector<32x256xf32>
    %379 = arith.mulf %378, %377 : vector<32x256xf32>
    %380 = arith.addf %375, %379 : vector<32x256xf32>
    %c0_281 = arith.constant 0 : index
    %c0_282 = arith.constant 0 : index
    %c0_283 = arith.constant 0 : index
    %381 = vector.load %arg10[%c0_281, %c0_282, %c0_283] : memref<1x32x256xf32, #tpu.memory_space<vmem>>, vector<1x32x256xf32>
    %382 = vector.shape_cast %381 : vector<1x32x256xf32> to vector<32x256xf32>
    %383 = vector.shape_cast %380 : vector<32x256xf32> to vector<1x32x256xf32>
    tpu.vector_store %arg10[%c0_281, %c0_282, %c0_283], %383 {strides = array<i32>} : memref<1x32x256xf32, #tpu.memory_space<vmem>>, vector<1x32x256xf32>,
    return
  }
  func.func @transform_0(%arg0: i32) -> (i32, i32, i32) {
    %c0_i32 = arith.constant 0 : i32
    %c0_i32_0 = arith.constant 0 : i32
    %c0_i32_1 = arith.constant 0 : i32
    return %arg0, %c0_i32, %c0_i32_0 : i32, i32, i32
  }
  func.func @transform_1(%arg0: i32) -> (i32, i32, i32) {
    %c0_i32 = arith.constant 0 : i32
    %c0_i32_0 = arith.constant 0 : i32
    %c0_i32_1 = arith.constant 0 : i32
    return %arg0, %c0_i32, %c0_i32_0 : i32, i32, i32
  }
  func.func @transform_2(%arg0: i32) -> (i32, i32) {
    %c0_i32 = arith.constant 0 : i32
    %c0_i32_0 = arith.constant 0 : i32
    %c0_i32_1 = arith.constant 0 : i32
    return %c0_i32, %c0_i32_0 : i32, i32
  }
  func.func @transform_3(%arg0: i32) -> (i32, i32) {
    %c0_i32 = arith.constant 0 : i32
    %c0_i32_0 = arith.constant 0 : i32
    %c0_i32_1 = arith.constant 0 : i32
    return %c0_i32, %c0_i32_0 : i32, i32
  }
  func.func @transform_4(%arg0: i32) -> (i32, i32) {
    %c0_i32 = arith.constant 0 : i32
    %c0_i32_0 = arith.constant 0 : i32
    %c0_i32_1 = arith.constant 0 : i32
    return %c0_i32, %c0_i32_0 : i32, i32
  }
  func.func @transform_5(%arg0: i32) -> (i32, i32) {
    %c0_i32 = arith.constant 0 : i32
    %c0_i32_0 = arith.constant 0 : i32
    %c0_i32_1 = arith.constant 0 : i32
    return %c0_i32, %c0_i32_0 : i32, i32
  }
  func.func @transform_6(%arg0: i32) -> (i32, i32) {
    %c0_i32 = arith.constant 0 : i32
    %c0_i32_0 = arith.constant 0 : i32
    %c0_i32_1 = arith.constant 0 : i32
    return %c0_i32, %c0_i32_0 : i32, i32
  }
  func.func @transform_7(%arg0: i32) -> (i32, i32) {
    %c0_i32 = arith.constant 0 : i32
    %c0_i32_0 = arith.constant 0 : i32
    %c0_i32_1 = arith.constant 0 : i32
    return %c0_i32, %c0_i32_0 : i32, i32
  }
  func.func @transform_8(%arg0: i32) -> (i32, i32) {
    %c0_i32 = arith.constant 0 : i32
    %c0_i32_0 = arith.constant 0 : i32
    %c0_i32_1 = arith.constant 0 : i32
    return %c0_i32, %c0_i32_0 : i32, i32
  }
  func.func @transform_9(%arg0: i32) -> (i32, i32, i32) {
    %c0_i32 = arith.constant 0 : i32
    %c0_i32_0 = arith.constant 0 : i32
    %c0_i32_1 = arith.constant 0 : i32
    return %arg0, %c0_i32, %c0_i32_0 : i32, i32, i32
  }
}

</mosaic_0001>

<bundles_post_ra>
// kernel: tpu_custom_call.1
= control target key start
LH: loop header
LB: loop body
LE: loop exit
PB: predicated region body
PF: predicated region fallthrough
CT: control target
= control target key end

     0   :  { %s10822_s0 = inlined_call_operand.hbm [shape: f32[2,32,256], index: 0, kind: input, shape index: {}]   ;;  %s10823_s1 = inlined_call_operand.hbm [shape: f32[2,32,256], index: 1, kind: input, shape index: {}]   ;;  %s10824_s2 = inlined_call_operand.vmem [shape: f32[64,10], index: 2, kind: input, shape index: {}]   ;;  %s10825_s3 = inlined_call_operand.vmem [shape: bf16[32,576], index: 3, kind: input, shape index: {}]   ;;  %s10826_s4 = inlined_call_operand.hbm [shape: bf16[160,288], index: 4, kind: input, shape index: {}]   ;;  %s10827_s5 = inlined_call_operand.vmem [shape: bf16[32,64], index: 5, kind: input, shape index: {}]   ;;  %s10828_s6 = inlined_call_operand.hbm [shape: f32[64,64], index: 6, kind: input, shape index: {}]   ;;  %s10829_s7 = inlined_call_operand.hbm [shape: f32[32,32], index: 7, kind: input, shape index: {}]   ;;  %s10830_s8 = inlined_call_operand.vmem [shape: f32[2,256], index: 8, kind: input, shape index: {}]   ;;  %s10831_s9 = inlined_call_operand.hbm [shape: f32[2,32,256], index: 9, kind: output, shape index: {}]  }
   0x1   :  { %10892 = sst [smem:[#allocation38_spill]] %s10822_s0 }
   0x2   :  { %10893 = sst [smem:[#allocation39_spill]] %s10826_s4 }
   0x3   :  { %10894 = sst [smem:[#allocation40_spill]] %s10828_s6 }
   0x4   :  { %10895 = sst [smem:[#allocation41_spill]] %s10831_s9 }
   0x5   :  { %14 = vsyncpa [#allocation6], 0 }
   0x6   :  { %16 = vsyncpa [#allocation6 + $0x1], 0 }
   0x7   :  { %17 = vsyncpa [#allocation9], 0 }
   0x8   :  { %19 = vsyncpa [#allocation9 + $0x1], 0 }
   0x9   :  { %20 = vsyncpa [#allocation12], 0 }
   0xa   :  { %21 = vsyncpa [#allocation7], 0 }
   0xb   :  { %23 = vsyncpa [#allocation7 + $0x1], 0  ;;  %s8453_s30 = smov 0   ;;  %s8455_s10 = smov 0  }
   0xc   :  { %s8457_s11 = smov 0   ;;  %s8459_s12 = smov 0  }
   0xd LB: > { %10896 = sst [smem:[#allocation20_spill]] %s8358_s30  ;;  %s8474_s13 = sadd.s32 4294967295, %s8370_s12   ;;  %s8370_s12 = sphi %s8459_s12, %s11096_s12   ;;  %s8366_s11 = sphi %s8457_s11, %s11095_s11   ;;  %s8362_s10 = sphi %s8455_s10, %s11094_s10   ;;  %s8358_s30 = sphi %s8453_s30, %s11093_s30  }
   0xe   : > { %s6560_s14 = sadd.s32 4294967294, %s8370_s12   ;;  %p49_p0 = scmp.ne.s32.totalorder %s8362_s10, %s8358_s30 }
   0xf   : > { %p10832_p1 = scmp.eq.s32.totalorder %s8474_s13, 0  ;;  %p252_p3 = scmp.eq.s32.totalorder %s6560_s14, 1 }
  0x10   : > { %p6561_p5 = scmp.ge.s32.totalorder %s8370_s12, 1  ;;  %p259_p7 = scmp.lt.s32.totalorder %s8370_s12, 3 }
  0x11   : > { %p8483_p4 = por %p10832_p1, %p49_p0  ;;  %p8488_p6 = por %p252_p3, %p49_p0 }
  0x12   : > { %p8493_p8 = pnand %p6561_p5, %p259_p7  ;;  %s8372_s18 = smov [#allocation10]  }
  0x13   : > { %s10897_s15 = scalar_select %p8483_p4, 1, 0 }
  0x14   : > { %s10898_s16 = scalar_select %p8488_p6, 1, 0 }
  0x15   : > { %s10900_s17 = scalar_select %p8493_p8, 1, 0 }
  0x16   : > { %10899 = sst [smem:[#allocation21_spill]] %s10898_s16  ;;  %s277_s19 = sshll.u32 %s8372_s18, 4  ;;  %s8497_s19 = int_to_ptr.vmem [resolvable:$true] %s277_s19 }
  0x17   : > { %p7606_p9 = pneg %p8493_p8  ;;  %s8373_s21 = smov [#allocation11]  }
  0x18   : > { %s293_s22 = sshll.u32 %s8373_s21, 4  ;;  %s10902_s4 = sld [smem:[#allocation39_spill]]  ;;  %s8508_s22 = int_to_ptr.vmem [resolvable:$true] %s293_s22 }
  0x19   : > { %p8504_p11 = pnand %p7606_p9, %p10832_p1 }
  0x1b   : > { %p8518_p13 = pneg %p8504_p11 }
  0x1e   : > { %s8148_s25 = scalar_lea.hbm %s10902_s4, 3840 }
  0x1f   : > { %p8149_p12 = scmp.ne.s32.totalorder %s10902_s4, %s8148_s25  ;;  %p8155_p5 = scmp.lt.u32.totalorder %s8148_s25, %s10902_s4 }
  0x21   : > { %p8151_p0 = pnand %p8518_p13, %p8149_p12 }
  0x23   : > { %p8152_p3 = pneg %p8151_p0 }
  0x25   : > { %p8157_p7 = pnand %p8155_p5, %p8152_p3 }
  0x27   : > { %8160 = shalt.err (!%p8157_p7)
}
  0x28   : > { %s8161_s18 = scalar_lea.vmem %s8497_s19, 3840  ;;  %p8169_p2 = scmp.lt.s32.totalorder %s8497_s19, %s8497_s19 }
  0x29   : > { %p8162_p9 = scmp.ne.s32.totalorder %s8497_s19, %s8161_s18  ;;  %p8170_p6 = scmp.lt.s32.totalorder %s8161_s18, %s8161_s18 }
  0x2b   : > { %p8164_p10 = pnand %p8162_p9, %p8518_p13  ;;  %p8171_p12 = por %p8170_p6, %p8169_p2 }
  0x2d   : > { %p8165_p1 = pneg %p8164_p10 }
  0x2f   : > { %p8172_p0 = pnand %p8171_p12, %p8165_p1 }
  0x31   : > { %8175 = shalt.err (!%p8172_p0)
}
  0x32   : > { %s8374_s21 = smov 192   ;;  %s8375_s23 = smov 12  }
  0x33   : > { %7609 = dma.hbm_to_vmem [thread:$0]  (!%p8504_p11), %s10902_s4, 3840, %s8497_s19, [#allocation9], %s8374_s21, %s8374_s21, %s8375_s23  }
  0x34   : > { %s10904_s6 = sld [smem:[#allocation40_spill]] }
  0x3a   : > { %s8176_s29 = scalar_lea.hbm %s10904_s6, 1024 }
  0x3b   : > { %p8177_p2 = scmp.ne.s32.totalorder %s10904_s6, %s8176_s29  ;;  %p8183_p10 = scmp.lt.u32.totalorder %s8176_s29, %s10904_s6 }
  0x3d   : > { %p8179_p1 = pnand %p8177_p2, %p8518_p13 }
  0x3f   : > { %p8180_p6 = pneg %p8179_p1 }
  0x41   : > { %p8185_p3 = pnand %p8183_p10, %p8180_p6 }
  0x43   : > { %8188 = shalt.err (!%p8185_p3)
}
  0x44   : > { %s8189_s19 = scalar_lea.vmem %s8508_s22, 1024  ;;  %p8197_p12 = scmp.lt.s32.totalorder %s8508_s22, %s8508_s22 }
  0x45   : > { %p8190_p5 = scmp.ne.s32.totalorder %s8508_s22, %s8189_s19  ;;  %p8198_p0 = scmp.lt.s32.totalorder %s8189_s19, %s8189_s19 }
  0x47   : > { %p8192_p7 = pnand %p8190_p5, %p8518_p13  ;;  %p8199_p2 = por %p8198_p0, %p8197_p12 }
  0x49   : > { %p8193_p9 = pneg %p8192_p7 }
  0x4b   : > { %p8200_p1 = pnand %p8199_p2, %p8193_p9 }
  0x4d   : > { %8203 = shalt.err (!%p8200_p1)
}
  0x4e   : > { %s8376_s16 = smov 128   ;;  %s8377_s30 = smov 8  }
  0x4f   : > { %7612 = dma.hbm_to_vmem [thread:$0]  (!%p8504_p11), %s10904_s6, 1024, %s8508_s22, [#allocation12], %s8376_s16, %s8376_s16, %s8377_s30  }
  0x50   : > { %s8378_s24 = smov [#allocation13]   ;;  %s8563_s26 = sadd.s32 1, %s8370_s12  }
  0x51   : > { %s306_s25 = sshll.u32 %s8378_s24, 4  ;;  %s8204_s14 = scalar_lea.hbm %s10829_s7, 512  ;;  %s307_s25 = int_to_ptr.vmem [resolvable:$true] %s306_s25 }
  0x52   : > { %p8205_p6 = scmp.ne.s32.totalorder %s10829_s7, %s8204_s14  ;;  %p8211_p5 = scmp.lt.u32.totalorder %s8204_s14, %s10829_s7 }
  0x54   : > { %p8207_p10 = pnand %p8205_p6, %p8518_p13 }
  0x56   : > { %p8208_p3 = pneg %p8207_p10 }
  0x58   : > { %p8213_p7 = pnand %p8211_p5, %p8208_p3 }
  0x5a   : > { %8216 = shalt.err (!%p8213_p7)
}
  0x5b   : > { %s8217_s22 = scalar_lea.vmem %s307_s25, 512  ;;  %p8225_p2 = scmp.lt.s32.totalorder %s307_s25, %s307_s25 }
  0x5c   : > { %p8218_p9 = scmp.ne.s32.totalorder %s307_s25, %s8217_s22  ;;  %p8226_p1 = scmp.lt.s32.totalorder %s8217_s22, %s8217_s22 }
  0x5e   : > { %p8220_p12 = pnand %p8218_p9, %p8518_p13  ;;  %p8227_p4 = por %p8226_p1, %p8225_p2 }
  0x60   : > { %p8221_p0 = pneg %p8220_p12 }
  0x62   : > { %p8228_p8 = pnand %p8227_p4, %p8221_p0 }
  0x64   : > { %8231 = shalt.err (!%p8228_p8)
}
  0x65   : > { %7615 = dma.hbm_to_vmem [thread:$0]  (!%p8504_p11), %s10829_s7, 512, %s307_s25, [#allocation12], %s8376_s16, %s8376_s16, %s8377_s30  }
  0x66   : > { %s33_s4 = ssub.s32 %s8370_s12, %s8563_s26  ;;  %s36_s9 = sadd.s32 1, %s8366_s11 }
  0x67   : > { %p34_p4 = scmp.eq.s32.totalorder %s33_s4, 0  ;;  %p43_p8 = scmp.ne.s32.totalorder %s8366_s11, %s8362_s10 }
  0x68   : > { %p44_p13 = scmp.eq.s32.totalorder %s8370_s12, 0  ;;  %p7630_p6 = scmp.lt.s32.totalorder %s8370_s12, 2 }
  0x69   : > { %s8591_s20 = scalar_select %p34_p4, %s8366_s11, %s36_s9  }
  0x6a   : > { %p45_p10 = por %p44_p13, %p43_p8  ;;  %p10905_p3 = scmp.eq.s32.totalorder %s8474_s13, 1 }
  0x6b   : > { %s323_s24 = sand.u32 1, %s8366_s11   ;;  %s6665_s27 = sshll.u32 %s8370_s12, 10 }
  0x6c   : > { %p8595_p5 = por %p10905_p3, %p43_p8  ;;  %s8601_s29 = sshll.u32 %s323_s24, 6 }
  0x6d   : > { %s10907_s0 = sld [smem:[#allocation38_spill]]  ;;  %s327_s14 = scalar_lea.vmem [#allocation5], %s8601_s29 }
  0x6e   : > { %s334_s18 = sshll.u32 %s327_s14, 4  ;;  %p8611_p11 = pnand %p7630_p6, %p45_p10  ;;  %s8615_s18 = int_to_ptr.vmem [resolvable:$true] %s334_s18 }
  0x6f   : > { %s8617_s22 = scalar_lea.sflag [#allocation6], %s323_s24 }
  0x70   : > { %p8234_p9 = pneg %p8611_p11 }
  0x73   : > { %s8608_s25 = scalar_lea.hbm %s10907_s0, %s6665_s27  ;;  %s8237_s9 = scalar_lea.hbm %s10907_s0, 2048 }
  0x74   : > { %s8232_s21 = scalar_lea.hbm %s8608_s25, 1024  ;;  %p8238_p2 = scmp.lt.u32.totalorder %s8608_s25, %s10907_s0 }
  0x75   : > { %p8233_p7 = scmp.ne.s32.totalorder %s8608_s25, %s8232_s21  ;;  %p8239_p1 = scmp.lt.u32.totalorder %s8237_s9, %s8232_s21 }
  0x76   : > { %p8241_p8 = scmp.lt.u32.totalorder %s8232_s21, %s8608_s25 }
  0x77   : > { %p8235_p12 = pnand %p8234_p9, %p8233_p7  ;;  %p8240_p4 = por %p8239_p1, %p8238_p2 }
  0x79   : > { %p8236_p0 = pneg %p8235_p12  ;;  %p8242_p13 = por %p8241_p8, %p8240_p4 }
  0x7b   : > { %p8243_p6 = pnand %p8242_p13, %p8236_p0 }
  0x7d   : > { %8246 = shalt.err (!%p8243_p6)
}
  0x7e   : > { %s8247_s24 = scalar_lea.vmem %s8615_s18, 1024  ;;  %s8379_s14 = smov [#allocation5]  }
  0x7f   : > { %p8248_p10 = scmp.ne.s32.totalorder %s8615_s18, %s8247_s24  ;;  %s8252_s23 = sshll.u32 %s8379_s14, 4  ;;  %s8253_s23 = int_to_ptr.vmem [resolvable:$false] %s8252_s23 }
  0x80   : > { %s8254_s4 = scalar_lea.vmem %s8253_s23, 2048  ;;  %p8255_p12 = scmp.lt.s32.totalorder %s8615_s18, %s8253_s23 }
  0x81   : > { %p8250_p3 = pnand %p8248_p10, %p8234_p9  ;;  %p8256_p2 = scmp.lt.s32.totalorder %s8254_s4, %s8247_s24 }
  0x83   : > { %p8251_p7 = pneg %p8250_p3  ;;  %p8257_p1 = por %p8256_p2, %p8255_p12 }
  0x85   : > { %p8258_p4 = pnand %p8257_p1, %p8251_p7 }
  0x87   : > { %8261 = shalt.err (!%p8258_p4)
}
  0x88   : > { %s8380_s21 = smov 256   ;;  %s8381_s9 = smov 16  }
  0x89   : > { %7619 = dma.hbm_to_vmem [thread:$0]  (!%p8611_p11), %s8608_s25, 1024, %s8615_s18, %s8617_s22, %s8380_s21, %s8380_s21, %s8381_s9  }
  0x8a   : > { %s8653_s24 = scalar_lea.hbm %s10823_s1, %s6665_s27  ;;  %s348_s14 = scalar_lea.vmem [#allocation8], %s8601_s29 }
  0x8b   : > { %s355_s23 = sshll.u32 %s348_s14, 4  ;;  %s344_s4 = sand.u32 1, %s8370_s12   ;;  %s8657_s23 = int_to_ptr.vmem [resolvable:$true] %s355_s23 }
  0x8c   : > { %s8659_s0 = scalar_lea.sflag [#allocation9], %s344_s4  ;;  %s8262_s6 = scalar_lea.hbm %s8653_s24, 1024 }
  0x8d   : > { %p8263_p0 = scmp.ne.s32.totalorder %s8653_s24, %s8262_s6  ;;  %s8267_s18 = scalar_lea.hbm %s10823_s1, 2048 }
  0x8e   : > { %p8268_p6 = scmp.lt.u32.totalorder %s8653_s24, %s10823_s1  ;;  %p8269_p10 = scmp.lt.u32.totalorder %s8267_s18, %s8262_s6 }
  0x8f   : > { %p8265_p8 = pnand %p8263_p0, %p8234_p9  ;;  %p8271_p7 = scmp.lt.u32.totalorder %s8262_s6, %s8653_s24 }
  0x90   : > { %p8270_p3 = por %p8269_p10, %p8268_p6 }
  0x91   : > { %p8266_p13 = pneg %p8265_p8 }
  0x92   : > { %p8272_p12 = por %p8271_p7, %p8270_p3 }
  0x94   : > { %p8273_p2 = pnand %p8272_p12, %p8266_p13 }
  0x96   : > { %8276 = shalt.err (!%p8273_p2)
}
  0x97   : > { %s8277_s29 = scalar_lea.vmem %s8657_s23, 1024  ;;  %s8382_s30 = smov [#allocation8]  }
  0x98   : > { %p8278_p1 = scmp.ne.s32.totalorder %s8657_s23, %s8277_s29  ;;  %s8282_s14 = sshll.u32 %s8382_s30, 4  ;;  %s8283_s14 = int_to_ptr.vmem [resolvable:$false] %s8282_s14 }
  0x99   : > { %s8284_s4 = scalar_lea.vmem %s8283_s14, 2048  ;;  %p8285_p8 = scmp.lt.s32.totalorder %s8657_s23, %s8283_s14 }
  0x9a   : > { %p8280_p4 = pnand %p8278_p1, %p8234_p9  ;;  %p8286_p6 = scmp.lt.s32.totalorder %s8284_s4, %s8277_s29 }
  0x9c   : > { %p8281_p0 = pneg %p8280_p4  ;;  %p8287_p10 = por %p8286_p6, %p8285_p8 }
  0x9e   : > { %p8288_p3 = pnand %p8287_p10, %p8281_p0 }
  0xa0   : > { %8291 = shalt.err (!%p8288_p3)
}
  0xa1   : > { %7622 = dma.hbm_to_vmem [thread:$0]  (!%p8611_p11), %s8653_s24, 1024, %s8657_s23, %s8659_s0, %s8380_s21, %s8380_s21, %s8381_s9  }
  0xa2   : > { %p10909_p9 = scmp.ne.s32.totalorder %s10900_s17, 0 }
  0xa4   : > { %367 = sbr.rel (%p10909_p9) target bundleno = 3107 (0xc23), region = 56 }
  0xab   : > { %s8691_s6 = sand.u32 1, %s8362_s10   ;;  %p10910_p13 = scmp.ne.s32.totalorder %s10897_s15, 0 }
  0xac   : > { %s8694_s25 = sshll.u32 %s8691_s6, 6  ;;  %s370_s19 = scalar_lea.sflag [#allocation6], %s8691_s6 }
  0xad   : > { %s8698_s27 = scalar_lea.vmem [#allocation5], %s8694_s25 }
  0xae   : > { %8337 = dma.done.wait (%p10910_p13), %s370_s19, 1024  }
  0xaf   : > { %8339 = vsyncadd (%p10910_p13), %s370_s19, 4294966272  ;;  %s378_s0 = sand.u32 1, %s8474_s13   ;;  %s8706_s21 = scalar_lea.vmem [#allocation8], %s8694_s25 }
  0xb0   : > { %s379_s17 = scalar_lea.sflag [#allocation9], %s378_s0 }
  0xb1   : > { %8341 = dma.done.wait (%p10910_p13), %s379_s17, 1024  }
  0xb2   : > { %8343 = vsyncadd (%p10910_p13), %s379_s17, 4294966272  ;;  %p10911_p11 = scmp.eq.s32.totalorder %s8474_s13, 0 }
  0xb4   : > { %8345 = dma.done.wait (%p10911_p11), [#allocation9], 3840   ;;  %p10912_p7 = pmov %p10911_p11 }
  0xb6   : > { %8347 = vsyncadd (%p10912_p7), [#allocation9], 4294963456  ;;  %p10913_p12 = pmov %p10912_p7 }
  0xb7   : > { %p10914_p2 = pmov %p10912_p7 }
  0xb8   : > { %8349 = dma.done.wait (%p10913_p12), [#allocation12], 1536  }
  0xb9   : > { %8351 = vsyncadd (%p10914_p2), [#allocation12], 4294965760  ;;  %v456_v0 = vld [vmem:[%s8698_s27 + $0x30] sm:$0xff]  ;;  %v457_v1 = vld [vmem:[%s8698_s27 + $0x38] sm:$0xff]  ;;  %vm594_vm0 = vcmask 523264   ;;  %s10887_s16 = smov 111  }
  0xba   : > { %v450_v2 = vld [vmem:[%s8698_s27] sm:$0xff]  ;;  %v515_v3 = vadd.f32 %v457_v1, %v456_v0  ;;  %v451_v4 = vld [vmem:[%s8698_s27 + $0x8] sm:$0xff]  ;;  %v452_v6 = vld [vmem:[%s8698_s27 + $0x10] sm:$0xff]  ;;  %v544_v17 = vmul.f32 %v456_v0, %v456_v0  ;;  %v545_v18 = vmul.f32 %v457_v1, %v457_v1  ;;  %s10889_s29 = smov 113   ;;  %s8387_s30 = smov 127   ;;  %vm2692_vm9 = vcmask 908288  }
  0xbb   : > { %v538_v5 = vmul.f32 %v450_v2, %v450_v2  ;;  %v453_v7 = vld [vmem:[%s8698_s27 + $0x18] sm:$0xff]  ;;  %v506_v8 = vadd.f32 %v451_v4, %v450_v2  ;;  %v539_v9 = vmul.f32 %v451_v4, %v451_v4  ;;  %v540_v10 = vmul.f32 %v452_v6, %v452_v6  ;;  %v454_v14 = vld [vmem:[%s8698_s27 + $0x20] sm:$0xff]  ;;  %v455_v15 = vld [vmem:[%s8698_s27 + $0x28] sm:$0xff]  ;;  %s8388_s14 = smov 17   ;;  %s8389_s4 = smov 16  }
  0xbc   : > { %516 = vadd.xlane.f32.xlu1 %v515_v3  ;;  %v541_v11 = vmul.f32 %v453_v7, %v453_v7  ;;  %v509_v13 = vadd.f32 %v453_v7, %v452_v6  ;;  %v512_v19 = vadd.f32 %v455_v15, %v454_v14  ;;  %v542_v20 = vmul.f32 %v454_v14, %v454_v14  ;;  %v468_v22 = vld [vmem:[%s8706_s21 + $0x10] sm:$0xff]  ;;  %v469_v23 = vld [vmem:[%s8706_s21 + $0x18] sm:$0xff]  ;;  %v466_v25 = vld [vmem:[%s8706_s21] sm:$0xff]  ;;  %s8390_s19 = smov 1   ;;  %s8391_s0 = smov 15  }
  0xbd   : > { %507 = vadd.xlane.f32.xlu0 %v506_v8  ;;  %v554_v12 = vadd.f32 %v539_v9, %v538_v5  ;;  %v543_v21 = vmul.f32 %v455_v15, %v455_v15  ;;  %v563_v24 = vadd.f32 %v545_v18, %v544_v17  ;;  %v467_v26 = vld [vmem:[%s8706_s21 + $0x8] sm:$0xff]  ;;  %v521_v28 = vadd.f32 %v469_v23, %v468_v22  ;;  %v472_v34 = vld [vmem:[%s8706_s21 + $0x30] sm:$0xff]  ;;  %v473_v35 = vld [vmem:[%s8706_s21 + $0x38] sm:$0xff]  ;;  %s10885_s9 = smov 112  }
  0xbe   : > { %v557_v16 = vadd.f32 %v541_v11, %v540_v10  ;;  %v548_v29 = vmul.f32 %v468_v22, %v468_v22  ;;  %v549_v30 = vmul.f32 %v469_v23, %v469_v23  ;;  %v518_v31 = vadd.f32 %v467_v26, %v466_v25  ;;  %v470_v37 = vld [vmem:[%s8706_s21 + $0x20] sm:$0xff]  ;;  %v471_v38 = vld [vmem:[%s8706_s21 + $0x28] sm:$0xff]  ;;  %v586_v48 = vld [vmem:[#allocation11] sm:$0xff] }
  0xbf   : > { %v560_v27 = vadd.f32 %v543_v21, %v542_v20  ;;  %v546_v32 = vmul.f32 %v466_v25, %v466_v25  ;;  %v547_v33 = vmul.f32 %v467_v26, %v467_v26  ;;  %v527_v40 = vadd.f32 %v473_v35, %v472_v34  ;;  %v587_v55 = vld [vmem:[#allocation11 + $0x8] sm:$0xff]  ;;  %v588_v56 = vld [vmem:[#allocation11 + $0x10] sm:$0xff]  ;;  %v589_v59 = vld [vmem:[#allocation11 + $0x18] sm:$0xff] }
  0xc0   : > { %555 = vadd.xlane.f32.xlu1 %v554_v12  ;;  %v569_v36 = vadd.f32 %v549_v30, %v548_v29  ;;  %v552_v41 = vmul.f32 %v472_v34, %v472_v34  ;;  %v553_v42 = vmul.f32 %v473_v35, %v473_v35  ;;  %v524_v43 = vadd.f32 %v471_v38, %v470_v37  ;;  %v590_v1 = vld [vmem:[#allocation11 + $0x20] sm:$0xff]  ;;  %v591_v5 = vld [vmem:[#allocation11 + $0x28] sm:$0xff]  ;;  %v8776_v14 = vld [vmem:[%s10824_s2] sm:$0xff] }
  0xc1   : > { %510 = vadd.xlane.f32.xlu0 %v509_v13  ;;  %v566_v39 = vadd.f32 %v547_v33, %v546_v32  ;;  %v550_v44 = vmul.f32 %v470_v37, %v470_v37  ;;  %v551_v45 = vmul.f32 %v471_v38, %v471_v38  ;;  %v596_v49 = vsel %vm594_vm0, %v586_v48, 0  ;;  %10919 = vst [vmem:[#allocation26_spill] sm:$0xff] %v8776_v14  ;;  %v8785_v18 = vld [vmem:[%s10824_s2 + $0x18] sm:$0xff]  ;;  %v592_v30 = vld [vmem:[#allocation11 + $0x30] sm:$0xff]  ;;  %v593_v34 = vld [vmem:[#allocation11 + $0x38] sm:$0xff] }
  0xc2   : > { %v575_v46 = vadd.f32 %v553_v42, %v552_v41  ;;  %v8737_v50 = vand.u32 4294901760, %v596_v49  ;;  %v599_v57 = vsel %vm594_vm0, %v587_v55, 0  ;;  %v602_v58 = vsel %vm594_vm0, %v588_v56, 0  ;;  %10920 = vst [vmem:[#allocation27_spill] sm:$0xff] %v8785_v18 }
  0xc3   : > { %v572_v47 = vadd.f32 %v551_v45, %v550_v44  ;;  %v8749_v60 = vand.u32 4294901760, %v599_v57  ;;  %v8751_v61 = vand.u32 4294901760, %v602_v58  ;;  %v605_v62 = vsel %vm594_vm0, %v589_v59, 0  ;;  %v8821_v44 = vld [vmem:[%s10824_s2 + $0x10] sm:$0xff] }
  0xc4   : > { %558 = vadd.xlane.f32.xlu1 %v557_v16  ;;  %v8740_v51 = vsub.f32 %v596_v49, %v8737_v50  ;;  %v8757_v0 = vand.u32 4294901760, %v605_v62  ;;  %v608_v7 = vsel %vm594_vm0, %v590_v1, 0  ;;  %v611_v13 = vsel %vm594_vm0, %v591_v5, 0  ;;  %10923 = vst [vmem:[#allocation30_spill] sm:$0xff] %v8821_v44 }
  0xc5   : > { %513 = vadd.xlane.f32.xlu0 %v512_v19  ;;  %v8755_v63 = vsub.f32 %v599_v57, %v8749_v60  ;;  %v8760_v3 = vsub.f32 %v602_v58, %v8751_v61  ;;  %v8778_v16 = vand.u32 4294901760, %v608_v7  ;;  %v10838_v17 = vmov 1  }
  0xc6   : > { %v8743_v52 = vand.u32 4294901760, %v8740_v51  ;;  %v8767_v9 = vsub.f32 %v605_v62, %v8757_v0  ;;  %7695 = vset.pattern.permute.xlu1 %v10838_v17  ;;  %7696 = vset.pattern.permute.xlu0 %v10838_v17  ;;  %v8791_v23 = vand.u32 4294901760, %v611_v13  ;;  %v617_v49 = vsel %vm594_vm0, %v593_v34, 0 }
  0xc7   : > { %v8763_v6 = vand.u32 4294901760, %v8755_v63  ;;  %v8770_v12 = vand.u32 4294901760, %v8760_v3  ;;  %v8804_v33 = vsub.f32 %v608_v7, %v8778_v16  ;;  %v8849_v7 = vand.u32 4294901760, %v617_v49 }
  0xc8   : > { %564 = vadd.xlane.f32.xlu1 %v563_v24  ;;  %10915 = vst [vmem:[#allocation22_spill] sm:$0xff] %v8743_v52  ;;  %v695_v53 = vsub.f32 %v8740_v51, %v8743_v52  ;;  %10917 = vst [vmem:[#allocation24_spill] sm:$0xff] %v8767_v9  ;;  %v8796_v24 = vld [vmem:[%s10824_s2 + $0x8] sm:$0xff]  ;;  %v8801_v29 = vand.u32 4294901760, %v8767_v9  ;;  %v8815_v42 = vsub.f32 %v611_v13, %v8791_v23  ;;  %vm2880_vm12 = vcmask 924672  }
  0xc9   : > { %561 = vadd.xlane.f32.xlu0 %v560_v27  ;;  %10916 = vst [vmem:[#allocation23_spill] sm:$0xff] %v8763_v6  ;;  %10918 = vst [vmem:[#allocation25_spill] sm:$0xff] %v8770_v12  ;;  %v705_v21 = vsub.f32 %v8755_v63, %v8763_v6  ;;  %v8835_v57 = vand.u32 4294901760, %v8804_v33  ;;  %vm10879_vm15 = vcmask 1039360  }
  0xca   : > { %v696_v54 = vand.u32 4294901760, %v695_v53  ;;  %10921 = vst [vmem:[#allocation28_spill] sm:$0xff] %v8796_v24  ;;  %10922 = vst [vmem:[#allocation29_spill] sm:$0xff] %v8801_v29  ;;  %v725_v48 = vsub.f32 %v8767_v9, %v8801_v29  ;;  %v8847_v5 = vand.u32 4294901760, %v8815_v42 }
  0xcb   : > { %v8808_v38 = vand.u32 4294901760, %v705_v21 }
  0xcc   : > { %522 = vadd.xlane.f32.xlu1 %v521_v28  ;;  %6876 = vmatprep.mubr.f32.mxu0 %v696_v54  ;;  %v715_v28 = vsub.f32 %v8760_v3, %v8770_v12  ;;  %10924 = vst [vmem:[#allocation31_spill] sm:$0xff] %v8847_v5 }
  0xcd   : > { %519 = vadd.xlane.f32.xlu0 %v518_v31  ;;  %7044 = vmatprep.mubr.f32.mxu1 %v696_v54 }
  0xd0   : > { %570 = vadd.xlane.f32.xlu1 %v569_v36 }
  0xd1   : > { %567 = vadd.xlane.f32.xlu0 %v566_v39  ;;  %v10842_v39 = vmov 0  }
  0xd4   : > { %528 = vadd.xlane.f32.xlu1 %v527_v40 }
  0xd5   : > { %525 = vadd.xlane.f32.xlu0 %v524_v43  ;;  %v614_v43 = vsel %vm594_vm0, %v592_v30, 0 }
  0xd6   : > { %v8841_v1 = vand.u32 4294901760, %v614_v43 }
  0xd8   : > { %576 = vadd.xlane.f32.xlu1 %v575_v46 }
  0xd9   : > { %573 = vadd.xlane.f32.xlu0 %v572_v47  ;;  %v8824_v47 = vand.u32 4294901760, %v715_v28 }
  0xe9   : > { %2457 = vperm.xlu1 %7695, %v8776_v14  }
  0xed   : > { %2462 = vperm.xlu1 %7695, %v8796_v24  }
  0xef   : > { %2472 = vperm.xlu0 %7696, %v8785_v18  }
  0xf1   : > { %2467 = vperm.xlu1 %7695, %v8821_v44  }
  0xf3   : > { %7698 = vset.pattern.permute.xlu0 %v10842_v39 }
 0x149   : > { %v517_v2 = vpop.xlane.xlu1 %516 }
 0x14a   : > { %v508_v4 = vpop.xlane.xlu0 %507  ;;  %v533_v8 = vmul.f32 0.00390625, %v517_v2 }
 0x14b   : > { %v530_v10 = vmul.f32 0.00390625, %v508_v4 }
 0x14c   : > { %v629_v22 = vand.u32 4294901760, %v533_v8 }
 0x14d   : > { %v556_v11 = vpop.xlane.xlu1 %555  ;;  %v620_v25 = vand.u32 4294901760, %v530_v10 }
 0x14e   : > { %v511_v15 = vpop.xlane.xlu0 %510  ;;  %v578_v19 = vmul.f32 0.00390625, %v556_v11  ;;  %v8812_v40 = vsub.f32 %v533_v8, %v629_v22  ;;  %v8854_v8 = vld [vmem:[%s10824_s2 + $0x20] sm:$0xff] }
 0x14f   : > { %v531_v20 = vmul.f32 0.00390625, %v511_v15  ;;  %v8829_v53 = vsub.f32 %v530_v10, %v620_v25  ;;  %10925 = vst [vmem:[#allocation32_spill] sm:$0xff] %v8854_v8  ;;  %2477 = vperm.xlu1 %7695, %v8854_v8  }
 0x150   : > { %v1458_v35 = vand.u32 4294901760, %v578_v19  ;;  %v10840_v2 = vand.u32 4294901760, %v8812_v40 }
 0x151   : > { %v623_v26 = vand.u32 4294901760, %v531_v20  ;;  %v559_v27 = vpop.xlane.xlu1 %558  ;;  %v10841_v21 = vand.u32 4294901760, %v8829_v53 }
 0x152   : > { %v579_v31 = vmul.f32 0.00390625, %v559_v27  ;;  %v514_v32 = vpop.xlane.xlu0 %513  ;;  %v8837_v58 = vsub.f32 %v578_v19, %v1458_v35  ;;  %v8866_v27 = vand.u32 4294901760, %v725_v48  ;;  %v8880_v34 = vsub.f32 %v8812_v40, %v10840_v2 }
 0x153   : > { %v8806_v36 = vpack.c.bf16 %v623_v26, %v620_v25  ;;  %v532_v37 = vmul.f32 0.00390625, %v514_v32  ;;  %v8856_v10 = vsub.f32 %v531_v20, %v623_v26  ;;  %7697 = vset.pattern.permute.xlu1 %v10842_v39 }
 0x154   : > { %v1461_v41 = vand.u32 4294901760, %v579_v31  ;;  %v10844_v26 = vand.u32 4294901760, %v8837_v58 }
 0x155   : > { %v626_v45 = vand.u32 4294901760, %v532_v37  ;;  %7197 = vmatprep.subr.bf16.mxu0 %v8806_v36  ;;  %v565_v46 = vpop.xlane.xlu1 %564 }
 0x156   : > { %v8831_v54 = vpack.c.bf16 %v1461_v41, %v1458_v35  ;;  %v581_v55 = vmul.f32 0.00390625, %v565_v46  ;;  %7199 = vmatpush3.bf16.msra.mxu0 %v8806_v36  ;;  %v562_v56 = vpop.xlane.xlu0 %561  ;;  %v8858_v11 = vsub.f32 %v579_v31, %v1461_v41  ;;  %v8874_v31 = vsub.f32 %v614_v43, %v8841_v1 }
 0x157   : > { %v8839_v59 = vpack.c.bf16 %v629_v22, %v626_v45  ;;  %v580_v62 = vmul.f32 0.00390625, %v562_v56  ;;  %v8860_v13 = vsub.f32 %v532_v37, %v626_v45  ;;  %v8885_v37 = vsub.f32 %v617_v49, %v8849_v7 }
 0x158   : > { %v1467_v4 = vand.u32 4294901760, %v581_v55  ;;  %7293 = vmatprep.subr.bf16.mxu1 %v8831_v54  ;;  %v10847_v41 = vand.u32 4294901760, %v8856_v10  ;;  %v10852_v45 = vand.u32 4294901760, %v8858_v11  ;;  %v776_v49 = vsub.f32 %v8829_v53, %v10841_v21 }
 0x159   : > { %v1464_v15 = vand.u32 4294901760, %v580_v62  ;;  %7201 = vmatprep.subr.bf16.mxu0 %v8839_v59  ;;  %7295 = vmatpush3.bf16.msra.mxu1 %v8831_v54  ;;  %v523_v19 = vpop.xlane.xlu1 %522  ;;  %v10850_v43 = vand.u32 4294901760, %v8860_v13 }
 0x15a   : > { %v535_v22 = vmul.f32 0.00390625, %v523_v19  ;;  %7203 = vmatpush3.bf16.msra.mxu0 %v8839_v59  ;;  %v520_v25 = vpop.xlane.xlu0 %519  ;;  %v8891_v56 = vsub.f32 %v581_v55, %v1467_v4  ;;  %v1614_v55 = vsub.f32 %v8837_v58, %v10844_v26  ;;  %v777_v8 = vand.u32 4294901760, %v776_v49 }
 0x15b   : > { %v8871_v28 = vpack.c.bf16 %v1467_v4, %v1464_v15  ;;  %v534_v30 = vmul.f32 0.00390625, %v520_v25  ;;  %v8893_v19 = vsub.f32 %v580_v62, %v1464_v15  ;;  %v798_v15 = vand.u32 4294901760, %v8880_v34 }
 0x15c   : > { %v635_v32 = vand.u32 4294901760, %v535_v22  ;;  %v1615_v14 = vand.u32 4294901760, %v1614_v55 }
 0x15d   : > { %10926 = vst [vmem:[#allocation33_spill] sm:$0xff] %v8871_v28  ;;  %v632_v46 = vand.u32 4294901760, %v534_v30  ;;  %7297 = vmatprep.subr.bf16.mxu1 %v8871_v28  ;;  %v571_v48 = vpop.xlane.xlu1 %570  ;;  %v10930_v55 = vand.u32 4294901760, %v8893_v19 }
 0x15e   : > { %v583_v25 = vmul.f32 0.00390625, %v571_v48  ;;  %7299 = vmatpush3.bf16.msra.mxu1 %v8871_v28  ;;  %v568_v17 = vpop.xlane.xlu0 %567  ;;  %v8899_v2 = vsub.f32 %v535_v22, %v635_v32  ;;  %v8911_v48 = vand.u32 4294901760, %v8874_v31 }
 0x15f   : > { %v8901_v35 = vpack.c.bf16 %v635_v32, %v632_v46  ;;  %v582_v20 = vmul.f32 0.00390625, %v568_v17  ;;  %v8907_v62 = vsub.f32 %v534_v30, %v632_v46  ;;  %v783_v17 = vsub.f32 %v8856_v10, %v10847_v41 }
 0x160   : > { %v1473_v4 = vand.u32 4294901760, %v583_v25  ;;  %10928 = vst [vmem:[#allocation35_spill] sm:$0xff] %v8911_v48  ;;  %v790_v32 = vsub.f32 %v8860_v13, %v10850_v43  ;;  %v1621_v30 = vsub.f32 %v8858_v11, %v10852_v45 }
 0x161   : > { %10927 = vst [vmem:[#allocation34_spill] sm:$0xff] %v8901_v35  ;;  %v1470_v21 = vand.u32 4294901760, %v582_v20  ;;  %7205 = vmatprep.subr.bf16.mxu0 %v8901_v35  ;;  %v529_v22 = vpop.xlane.xlu1 %528  ;;  %v784_v46 = vand.u32 4294901760, %v783_v17 }
 0x162   : > { %v537_v39 = vmul.f32 0.00390625, %v529_v22  ;;  %7207 = vmatpush3.bf16.msra.mxu0 %v8901_v35  ;;  %v526_v26 = vpop.xlane.xlu0 %525  ;;  %v8930_v24 = vsub.f32 %v583_v25, %v1473_v4  ;;  %v791_v12 = vand.u32 4294901760, %v790_v32  ;;  %v1622_v49 = vand.u32 4294901760, %v1621_v30 }
 0x163   : > { %v8927_v41 = vpack.c.bf16 %v1473_v4, %v1470_v21  ;;  %v536_v18 = vmul.f32 0.00390625, %v526_v26  ;;  %v8932_v45 = vsub.f32 %v582_v20, %v1470_v21  ;;  %v1628_v25 = vsub.f32 %v8893_v19, %v10930_v55 }
 0x164   : > { %v641_v34 = vand.u32 4294901760, %v537_v39  ;;  %v10931_v21 = vand.u32 4294901760, %v8891_v56  ;;  %v10933_v55 = vand.u32 4294901760, %v8907_v62  ;;  %v7308_v30 = vpack.c.bf16 %v1622_v49, %v1615_v14 }
 0x165   : > { %10929 = vst [vmem:[#allocation36_spill] sm:$0xff] %v8927_v41  ;;  %v638_v29 = vand.u32 4294901760, %v536_v18  ;;  %7301 = vmatprep.subr.bf16.mxu1 %v8927_v41  ;;  %v577_v22 = vpop.xlane.xlu1 %576 }
 0x166   : > { %v8935_v6 = vsub.f32 %v537_v39, %v641_v34  ;;  %v585_v44 = vmul.f32 0.00390625, %v577_v22  ;;  %7303 = vmatpush3.bf16.msra.mxu1 %v8927_v41  ;;  %v574_v26 = vpop.xlane.xlu0 %573  ;;  %v1635_v20 = vsub.f32 %v8891_v56, %v10931_v21  ;;  %v10932_v39 = vand.u32 4294901760, %v8899_v2 }
 0x167   : > { %v8944_v4 = vpack.c.bf16 %v641_v34, %v638_v29  ;;  %v8946_v43 = vsub.f32 %v536_v18, %v638_v29  ;;  %v584_v17 = vmul.f32 0.00390625, %v574_v26  ;;  %v804_v41 = vsub.f32 %v8907_v62, %v10933_v55 }
 0x168   : > { %v811_v32 = vsub.f32 %v8899_v2, %v10932_v39  ;;  %v1479_v52 = vand.u32 4294901760, %v585_v44  ;;  %v7212_v29 = vpack.c.bf16 %v784_v46, %v777_v8  ;;  %v7216_v39 = vpack.c.bf16 %v798_v15, %v791_v12 }
 0x169   : > { %v1476_v18 = vand.u32 4294901760, %v584_v17  ;;  %7209 = vmatprep.subr.bf16.mxu0 %v8944_v4  ;;  %v8963_v22 = vand.u32 4294901760, %v8885_v37  ;;  %v1629_v21 = vand.u32 4294901760, %v1628_v25  ;;  %v1636_v34 = vand.u32 4294901760, %v1635_v20 }
 0x16a   : > { %v8959_v26 = vsub.f32 %v585_v44, %v1479_v52  ;;  %7211 = vmatpush3.bf16.msra.mxu0 %v8944_v4  ;;  %v805_v35 = vand.u32 4294901760, %v804_v41  ;;  %v812_v9 = vand.u32 4294901760, %v811_v32  ;;  %v10935_v8 = vand.u32 4294901760, %v8932_v45 }
 0x16b   : > { %10934 = vst [vmem:[#allocation37_spill] sm:$0xff] %v8963_v22  ;;  %v8965_v28 = vpack.c.bf16 %v1479_v52, %v1476_v18  ;;  %v8967_v55 = vsub.f32 %v584_v17, %v1476_v18  ;;  %7213 = vmatprep.subr.bf16.mxu0 %v7212_v29  ;;  %v10936_v46 = vand.u32 4294901760, %v8930_v24  ;;  %v10937_v15 = vand.u32 4294901760, %v8946_v43 }
 0x16c   : > { %v1642_v44 = vsub.f32 %v8932_v45, %v10935_v8  ;;  %v10938_v49 = vand.u32 4294901760, %v8935_v6  ;;  %v10939_v20 = vsub.f32 %v8804_v33, %v8835_v57  ;;  %v10940_v32 = vsub.f32 %v8815_v42, %v8847_v5 }
 0x16d   : > { %v1649_v12 = vsub.f32 %v8930_v24, %v10936_v46  ;;  %6877 = vmatmul.mubr.f32.vlgmr.msra.gmra.mrb[0].mxu0 %v8808_v38  ;;  %7305 = vmatprep.subr.bf16.mxu1 %v8965_v28  ;;  %v818_v41 = vsub.f32 %v8946_v43, %v10937_v15  ;;  %v755_v8 = vsub.f32 %v8874_v31, %v8911_v48  ;;  %v10942_v48 = vand.u32 4294901760, %v8959_v26 }
 0x16e   : > { %v825_v25 = vsub.f32 %v8935_v6, %v10938_v49  ;;  %7215 = vmatpush3.bf16.msra.mxu0 %v7212_v29  ;;  %7307 = vmatpush3.bf16.msra.mxu1 %v8965_v28  ;;  %v736_v17 = vand.u32 4294901760, %v10939_v20  ;;  %v746_v18 = vand.u32 4294901760, %v10940_v32  ;;  %v765_v46 = vsub.f32 %v8885_v37, %v8963_v22 }
 0x16f   : > { %7217 = vmatprep.subr.bf16.mxu0 %v7216_v39  ;;  %7309 = vmatprep.subr.bf16.mxu1 %v7308_v30  ;;  %v7220_v29 = vpack.c.bf16 %v812_v9, %v805_v35  ;;  %v7312_v15 = vpack.c.bf16 %v1636_v34, %v1629_v21  ;;  %v1643_v49 = vand.u32 4294901760, %v1642_v44  ;;  %v1650_v14 = vand.u32 4294901760, %v1649_v12 }
 0x170   : > { %6879 = vmatprep.mubr.f32.mxu0 %v8824_v47  ;;  %v819_v20 = vand.u32 4294901760, %v818_v41  ;;  %v826_v52 = vand.u32 4294901760, %v825_v25  ;;  %v10941_v32 = vand.u32 4294901760, %v8967_v55  ;;  %v1663_v22 = vsub.f32 %v8959_v26, %v10942_v48  ;;  %v10944_v41 = vld [vmem:[#allocation34_spill] sm:$0xff]  ;;  %v10945_v25 = vld [vmem:[#allocation33_spill] sm:$0xff] }
 0x171   : > { %6880 = vmatmul.mubr.f32.gmra.mrb[2].mxu0 %v8866_v27  ;;  %7045 = vmatmul.mubr.f32.vlgmr.msra.gmra.mrb[0].mxu1 %v8808_v38  ;;  %v756_v9 = vand.u32 4294901760, %v755_v8  ;;  %v766_v35 = vand.u32 4294901760, %v765_v46  ;;  %v7316_v21 = vpack.c.bf16 %v1650_v14, %v1643_v49  ;;  %v7332_v12 = vpack.c.bf16 %v8930_v24, %v8932_v45 }
 0x172   : > { %v1656_v5 = vsub.f32 %v8967_v55, %v10941_v32  ;;  %7219 = vmatpush3.bf16.msra.mxu0 %v7216_v39  ;;  %7311 = vmatpush3.bf16.msra.mxu1 %v7308_v30  ;;  %v7224_v38 = vpack.c.bf16 %v826_v52, %v819_v20  ;;  %v1664_v44 = vand.u32 4294901760, %v1663_v22  ;;  %v7236_v30 = vpack.c.bf16 %v8899_v2, %v8907_v62  ;;  %v10943_v52 = vld [vmem:[#allocation24_spill] sm:$0xff]  ;;  %v10961_v20 = vld [vmem:[#allocation31_spill] sm:$0xff] }
 0x173   : > { %7221 = vmatprep.subr.bf16.mxu0 %v7220_v29  ;;  %7313 = vmatprep.subr.bf16.mxu1 %v7312_v15  ;;  %v7328_v22 = vpack.c.bf16 %v8891_v56, %v8893_v19  ;;  %v7240_v39 = vpack.c.bf16 %v8935_v6, %v8946_v43  ;;  %v7336_v14 = vpack.c.bf16 %v8959_v26, %v8967_v55  ;;  %v10953_v8 = vand.u32 4294901760, %v8837_v58 }
 0x174   : > { %6882 = vmatprep.mubr.f32.mxu0 %v736_v17  ;;  %7047 = vmatprep.mubr.f32.mxu1 %v8824_v47  ;;  %v1657_v34 = vand.u32 4294901760, %v1656_v5  ;;  %v7228_v47 = vpack.c.bf16 %v8856_v10, %v8829_v53  ;;  %v7232_v5 = vpack.c.bf16 %v8812_v40, %v8860_v13  ;;  %v10954_v46 = vand.u32 4294901760, %v8858_v11 }
 0x175   : > { %6883 = vmatmul.mubr.f32.gmra.mrb[4].mxu0 %v746_v18  ;;  %7048 = vmatmul.mubr.f32.gmra.mrb[2].mxu1 %v8866_v27  ;;  %v7324_v27 = vpack.c.bf16 %v8858_v11, %v8837_v58  ;;  %v10958_v58 = vand.u32 4294901760, %v8899_v2  ;;  %v10959_v11 = vand.u32 4294901760, %v8893_v19  ;;  %v10962_v2 = vand.u32 4294901760, %v8946_v43 }
 0x176   : > { %7223 = vmatpush3.bf16.msra.mxu0 %v7220_v29  ;;  %7315 = vmatpush3.bf16.msra.mxu1 %v7312_v15  ;;  %v7320_v48 = vpack.c.bf16 %v1664_v44, %v1657_v34  ;;  %v7356_v29 = vpack.c.bf16 %v10954_v46, %v10953_v8  ;;  %v10960_v15 = vand.u32 4294901760, %v8891_v56  ;;  %v10964_v56 = vand.u32 4294901760, %v8932_v45 }
 0x177   : > { %7225 = vmatprep.subr.bf16.mxu0 %v7224_v38  ;;  %7317 = vmatprep.subr.bf16.mxu1 %v7316_v21  ;;  %v10965_v32 = vand.u32 4294901760, %v8930_v24  ;;  %v10969_v43 = vand.u32 4294901760, %v8959_v26 }
 0x178   : > { %6885 = vmatprep.mubr.f32.mxu0 %v756_v9  ;;  %7050 = vmatprep.mubr.f32.mxu1 %v736_v17  ;;  %v7360_v49 = vpack.c.bf16 %v10960_v15, %v10959_v11 }
 0x179   : > { %6886 = vmatmul.mubr.f32.gmra.mrb[6].mxu0 %v766_v35  ;;  %7051 = vmatmul.mubr.f32.gmra.mrb[4].mxu1 %v746_v18  ;;  %v10949_v18 = vld [vmem:[#allocation22_spill] sm:$0xff] }
 0x17a   : > { %7227 = vmatpush3.bf16.msra.mxu0 %v7224_v38  ;;  %7319 = vmatpush3.bf16.msra.mxu1 %v7316_v21  ;;  %v10967_v38 = vld [vmem:[#allocation37_spill] sm:$0xff] }
 0x17b   : > { %7229 = vmatprep.subr.bf16.mxu0 %v7228_v47  ;;  %7321 = vmatprep.subr.bf16.mxu1 %v7320_v48 }
 0x17c   : > { %6904 = vmatprep.mubr.f32.mxu0 %v8737_v50  ;;  %7053 = vmatprep.mubr.f32.mxu1 %v756_v9  ;;  %v7364_v9 = vpack.c.bf16 %v10965_v32, %v10964_v56 }
 0x17d   : > { %6905 = vmatmul.mubr.f32.vlgmr.msra.gmra.mrb[0].mxu0 %v8749_v60  ;;  %7054 = vmatmul.mubr.f32.gmra.mrb[6].mxu1 %v766_v35  ;;  %v10966_v35 = vld [vmem:[#allocation35_spill] sm:$0xff] }
 0x17e   : > { %7231 = vmatpush3.bf16.msra.mxu0 %v7228_v47  ;;  %7323 = vmatpush3.bf16.msra.mxu1 %v7320_v48 }
 0x17f   : > { %7233 = vmatprep.subr.bf16.mxu0 %v7232_v5  ;;  %7325 = vmatprep.subr.bf16.mxu1 %v7324_v27 }
 0x180   : > { %6907 = vmatprep.mubr.f32.mxu0 %v8751_v61  ;;  %7072 = vmatprep.mubr.f32.mxu1 %v8737_v50 }
 0x181   : > { %6908 = vmatmul.mubr.f32.gmra.mrb[2].mxu0 %v8757_v0  ;;  %7073 = vmatmul.mubr.f32.vlgmr.msra.gmra.mrb[0].mxu1 %v8749_v60 }
 0x182   : > { %7235 = vmatpush3.bf16.msra.mxu0 %v7232_v5  ;;  %7327 = vmatpush3.bf16.msra.mxu1 %v7324_v27 }
 0x183   : > { %7237 = vmatprep.subr.bf16.mxu0 %v7236_v30  ;;  %7329 = vmatprep.subr.bf16.mxu1 %v7328_v22 }
 0x184   : > { %6910 = vmatprep.mubr.f32.mxu0 %v8778_v16  ;;  %7075 = vmatprep.mubr.f32.mxu1 %v8751_v61 }
 0x185   : > { %6911 = vmatmul.mubr.f32.gmra.mrb[4].mxu0 %v8791_v23  ;;  %7076 = vmatmul.mubr.f32.gmra.mrb[2].mxu1 %v8757_v0 }
 0x186   : > { %7239 = vmatpush3.bf16.msra.mxu0 %v7236_v30  ;;  %7331 = vmatpush3.bf16.msra.mxu1 %v7328_v22 }
 0x187   : > { %7241 = vmatprep.subr.bf16.mxu0 %v7240_v39  ;;  %7333 = vmatprep.subr.bf16.mxu1 %v7332_v12 }
 0x188   : > { %6913 = vmatprep.mubr.f32.mxu0 %v8841_v1  ;;  %7078 = vmatprep.mubr.f32.mxu1 %v8778_v16 }
 0x189   : > { %6914 = vmatmul.mubr.f32.gmra.mrb[6].mxu0 %v8849_v7  ;;  %7079 = vmatmul.mubr.f32.gmra.mrb[4].mxu1 %v8791_v23 }
 0x18a   : > { %7243 = vmatpush3.bf16.msra.mxu0 %v7240_v39  ;;  %7335 = vmatpush3.bf16.msra.mxu1 %v7332_v12 }
 0x18b   : > { %7245 = vmatprep.subr.bf16.mxu0 %v8806_v36  ;;  %7337 = vmatprep.subr.bf16.mxu1 %v7336_v14 }
 0x18c   : > { %6932 = vmatprep.mubr.f32.mxu0 %v8740_v51  ;;  %7081 = vmatprep.mubr.f32.mxu1 %v8841_v1 }
 0x18d   : > { %6933 = vmatmul.mubr.f32.vlgmr.msra.gmra.mrb[0].mxu0 %v8755_v63  ;;  %7082 = vmatmul.mubr.f32.gmra.mrb[6].mxu1 %v8849_v7 }
 0x18e   : > { %7247 = vmatpush3.bf16.msra.mxu0 %v8806_v36  ;;  %7339 = vmatpush3.bf16.msra.mxu1 %v7336_v14  ;;  %v2668_v14 = vlaneseq }
 0x18f   : > { %7249 = vmatprep.subr.bf16.mxu0 %v8839_v59  ;;  %7341 = vmatprep.subr.bf16.mxu1 %v8831_v54 }
 0x190   : > { %6935 = vmatprep.mubr.f32.mxu0 %v8760_v3  ;;  %7100 = vmatprep.mubr.f32.mxu1 %v8740_v51  ;;  %v10946_v51 = vld [vmem:[#allocation36_spill] sm:$0xff] }
 0x191   : > { %6936 = vmatmul.mubr.f32.gmra.mrb[2].mxu0 %v10943_v52  ;;  %7101 = vmatmul.mubr.f32.vlgmr.msra.gmra.mrb[0].mxu1 %v8755_v63  ;;  %v10947_v63 = vand.u32 4294901760, %v8829_v53  ;;  %v10952_v53 = vand.u32 4294901760, %v8812_v40  ;;  %v10957_v40 = vand.u32 4294901760, %v8907_v62  ;;  %v10963_v62 = vand.u32 4294901760, %v8935_v6 }
 0x192   : > { %7251 = vmatpush3.bf16.msra.mxu0 %v8839_v59  ;;  %7343 = vmatpush3.bf16.msra.mxu1 %v8831_v54  ;;  %v10968_v6 = vand.u32 4294901760, %v8967_v55 }
 0x193   : > { %7253 = vmatprep.subr.bf16.mxu0 %v10944_v41  ;;  %7345 = vmatprep.subr.bf16.mxu1 %v10945_v25  ;;  %v7272_v19 = vpack.c.bf16 %v10963_v62, %v10962_v2  ;;  %v10971_v62 = vld [vmem:[#allocation28_spill] sm:$0xff] }
 0x194   : > { %6938 = vmatprep.mubr.f32.mxu0 %v8804_v33  ;;  %7103 = vmatprep.mubr.f32.mxu1 %v8760_v3  ;;  %v10948_v3 = vand.u32 4294901760, %v8856_v10  ;;  %v7368_v45 = vpack.c.bf16 %v10969_v43, %v10968_v6 }
 0x195   : > { %6939 = vmatmul.mubr.f32.gmra.mrb[4].mxu0 %v8815_v42  ;;  %7104 = vmatmul.mubr.f32.gmra.mrb[2].mxu1 %v10943_v52 }
 0x196   : > { %7255 = vmatpush3.bf16.msra.mxu0 %v10944_v41  ;;  %7347 = vmatpush3.bf16.msra.mxu1 %v10945_v25  ;;  %v7260_v17 = vpack.c.bf16 %v10948_v3, %v10947_v63 }
 0x197   : > { %7257 = vmatprep.subr.bf16.mxu0 %v8944_v4  ;;  %7349 = vmatprep.subr.bf16.mxu1 %v10946_v51 }
 0x198   : > { %6941 = vmatprep.mubr.f32.mxu0 %v8874_v31  ;;  %7106 = vmatprep.mubr.f32.mxu1 %v8804_v33  ;;  %v10950_v33 = vld [vmem:[#allocation23_spill] sm:$0xff] }
 0x199   : > { %6942 = vmatmul.mubr.f32.gmra.mrb[6].mxu0 %v8885_v37  ;;  %7107 = vmatmul.mubr.f32.gmra.mrb[4].mxu1 %v8815_v42  ;;  %v10951_v42 = vand.u32 4294901760, %v8860_v13  ;;  %v7268_v13 = vpack.c.bf16 %v10958_v58, %v10957_v40  ;;  %v6579_v40 = vld [vmem:[%s10830_s8 + $0x1] ss:$2 sm:$0x3] }
 0x19a   : > { %7259 = vmatpush3.bf16.msra.mxu0 %v8944_v4  ;;  %7351 = vmatpush3.bf16.msra.mxu1 %v10946_v51  ;;  %vm449_vm2 = vcmp.ne.f32.partialorder %v6579_v40, 0.0 }
 0x19b   : > { %7261 = vmatprep.subr.bf16.mxu0 %v7260_v17  ;;  %7353 = vmatprep.subr.bf16.mxu1 %v8965_v28  ;;  %v7264_v10 = vpack.c.bf16 %v10952_v53, %v10951_v42 }
 0x19c   : > { %6960 = vmatprep.mubr.f32.mxu0 %v10949_v18  ;;  %7109 = vmatprep.mubr.f32.mxu1 %v8874_v31  ;;  %v10955_v31 = vld [vmem:[#allocation25_spill] sm:$0xff] }
 0x19d   : > { %6961 = vmatmul.mubr.f32.vlgmr.msra.gmra.mrb[0].mxu0 %v10950_v33  ;;  %7110 = vmatmul.mubr.f32.gmra.mrb[6].mxu1 %v8885_v37  ;;  %v10956_v37 = vld [vmem:[#allocation29_spill] sm:$0xff] }
 0x19e   : > { %7263 = vmatpush3.bf16.msra.mxu0 %v7260_v17  ;;  %7355 = vmatpush3.bf16.msra.mxu1 %v8965_v28 }
 0x19f   : > { %7265 = vmatprep.subr.bf16.mxu0 %v7264_v10  ;;  %7357 = vmatprep.subr.bf16.mxu1 %v7356_v29 }
 0x1a0   : > { %6963 = vmatprep.mubr.f32.mxu0 %v10955_v31  ;;  %7128 = vmatprep.mubr.f32.mxu1 %v10949_v18 }
 0x1a1   : > { %6964 = vmatmul.mubr.f32.gmra.mrb[2].mxu0 %v10956_v37  ;;  %7129 = vmatmul.mubr.f32.vlgmr.msra.gmra.mrb[0].mxu1 %v10950_v33  ;;  %v445_v33 = vld [vmem:[%s10830_s8] ss:$2 sm:$0x3] }
 0x1a2   : > { %7267 = vmatpush3.bf16.msra.mxu0 %v7264_v10  ;;  %7359 = vmatpush3.bf16.msra.mxu1 %v7356_v29  ;;  %v9170_v10 = vshrl.u32 %v2668_v14, 7  ;;  %vm446_vm1 = vcmp.ne.f32.partialorder %v445_v33, 0.0 }
 0x1a3   : > { %7269 = vmatprep.subr.bf16.mxu0 %v7268_v13  ;;  %7361 = vmatprep.subr.bf16.mxu1 %v7360_v49 }
 0x1a4   : > { %6966 = vmatprep.mubr.f32.mxu0 %v8835_v57  ;;  %7131 = vmatprep.mubr.f32.mxu1 %v10955_v31  ;;  %v2670_v58 = vsub.s32 0, %v9170_v10 }
 0x1a5   : > { %6967 = vmatmul.mubr.f32.gmra.mrb[4].mxu0 %v10961_v20  ;;  %7132 = vmatmul.mubr.f32.gmra.mrb[2].mxu1 %v10956_v37 }
 0x1a6   : > { %7271 = vmatpush3.bf16.msra.mxu0 %v7268_v13  ;;  %7363 = vmatpush3.bf16.msra.mxu1 %v7360_v49  ;;  %v2674_v13 = vsub.s32 1, %v9170_v10 }
 0x1a7   : > { %7273 = vmatprep.subr.bf16.mxu0 %v7272_v19  ;;  %7365 = vmatprep.subr.bf16.mxu1 %v7364_v9 }
 0x1a8   : > { %6969 = vmatprep.mubr.f32.mxu0 %v10966_v35  ;;  %7134 = vmatprep.mubr.f32.mxu1 %v8835_v57 }
 0x1a9   : > { %6970 = vmatmul.mubr.f32.gmra.mrb[6].mxu0 %v10967_v38  ;;  %7135 = vmatmul.mubr.f32.gmra.mrb[4].mxu1 %v10961_v20  ;;  %v10970_v20 = vmov 0  }
 0x1aa   : > { %7275 = vmatpush3.bf16.msra.mxu0 %v7272_v19  ;;  %7367 = vmatpush3.bf16.msra.mxu1 %v7364_v9  ;;  %v2667_v2 = vsel %vm446_vm1, 1, %v10970_v20  ;;  %v2855_v43 = vsel %vm449_vm2, 1, %v10970_v20 }
 0x1ab   : > { %7277 = vmatprep.subr.bf16.mxu0 %v8806_v36  ;;  %7369 = vmatprep.subr.bf16.mxu1 %v7368_v45  ;;  %v2671_v32 = vrot.slane %v2667_v2, %v2670_v58  ;;  %v2675_v9 = vrot.slane %v2667_v2, %v2674_v13 }
 0x1ac   : > { %6988 = vmatprep.mubr.f32.mxu0 %v8737_v50  ;;  %7137 = vmatprep.mubr.f32.mxu1 %v10966_v35 }
 0x1ad   : > { %6989 = vmatmul.mubr.f32.vlgmr.msra.gmra.mrb[0].mxu0 %v8749_v60  ;;  %7138 = vmatmul.mubr.f32.gmra.mrb[6].mxu1 %v10967_v38  ;;  %vm2676_vm3 = vcmp.eq.s32.totalorder %v2671_v32, 1  ;;  %vm2677_vm4 = vcmp.eq.s32.totalorder %v2675_v9, 1  ;;  %v8121_v9 = vld [vmem:[%s8698_s27 + $0x38] sm:$0xff] }
 0x1ae   : > { %7279 = vmatpush3.bf16.msra.mxu0 %v8806_v36  ;;  %7371 = vmatpush3.bf16.msra.mxu1 %v7368_v45  ;;  %v10972_v45 = vld [vmem:[#allocation26_spill] sm:$0xff]  ;;  %vm2678_vm5 = vmpackc.low %vm2677_vm4, %vm2676_vm3  ;;  %vm10877_vm3 = vcmask 7168  }
 0x1af   : > { %7281 = vmatprep.subr.bf16.mxu0 %v8839_v59  ;;  %7373 = vmatprep.subr.bf16.mxu1 %v8831_v54 }
 0x1b0   : > { %6991 = vmatprep.mubr.f32.mxu0 %v8751_v61  ;;  %7156 = vmatprep.mubr.f32.mxu1 %v8737_v50 }
 0x1b1   : > { %6992 = vmatmul.mubr.f32.gmra.mrb[2].mxu0 %v8757_v0  ;;  %7157 = vmatmul.mubr.f32.vlgmr.msra.gmra.mrb[0].mxu1 %v8749_v60 }
 0x1b2   : > { %7283 = vmatpush3.bf16.msra.mxu0 %v8839_v59  ;;  %7375 = vmatpush3.bf16.msra.mxu1 %v8831_v54 }
 0x1b3   : > { %7285 = vmatprep.subr.bf16.mxu0 %v10944_v41  ;;  %7377 = vmatprep.subr.bf16.mxu1 %v10945_v25 }
 0x1b4   : > { %6994 = vmatprep.mubr.f32.mxu0 %v8778_v16  ;;  %7159 = vmatprep.mubr.f32.mxu1 %v8751_v61 }
 0x1b5   : > { %6995 = vmatmul.mubr.f32.gmra.mrb[4].mxu0 %v8791_v23  ;;  %7160 = vmatmul.mubr.f32.gmra.mrb[2].mxu1 %v8757_v0 }
 0x1b6   : > { %7287 = vmatpush3.bf16.msra.mxu0 %v10944_v41  ;;  %7379 = vmatpush3.bf16.msra.mxu1 %v10945_v25 }
 0x1b7   : > { %7289 = vmatprep.subr.bf16.mxu0 %v8944_v4  ;;  %7381 = vmatprep.subr.bf16.mxu1 %v10946_v51 }
 0x1b8   : > { %6997 = vmatprep.mubr.f32.mxu0 %v8841_v1  ;;  %7162 = vmatprep.mubr.f32.mxu1 %v8778_v16 }
 0x1b9   : > { %6998 = vmatmul.mubr.f32.gmra.mrb[6].mxu0 %v8849_v7  ;;  %7163 = vmatmul.mubr.f32.gmra.mrb[4].mxu1 %v8791_v23 }
 0x1ba   : > { %7291 = vmatpush3.bf16.msra.mxu0 %v8944_v4  ;;  %7383 = vmatpush3.bf16.msra.mxu1 %v10946_v51 }
 0x1bb   : > { %7385 = vmatprep.subr.bf16.mxu1 %v8965_v28  ;;  %7016 = vmatprep.mubr.f32.mxu0 %v8737_v50 }
 0x1bc   : > { %7165 = vmatprep.mubr.f32.mxu1 %v8841_v1 }
 0x1bd   : > { %7017 = vmatmul.mubr.f32.vlgmr.msra.gmra.mrb[0].mxu0 %v8749_v60  ;;  %7166 = vmatmul.mubr.f32.gmra.mrb[6].mxu1 %v8849_v7 }
 0x1be   : > { %7387 = vmatpush3.bf16.msra.mxu1 %v8965_v28  ;;  %7019 = vmatprep.mubr.f32.mxu0 %v8751_v61 }
 0x1bf   : > { %7184 = vmatprep.mubr.f32.mxu1 %v8737_v50 }
 0x1c1   : > { %7020 = vmatmul.mubr.f32.gmra.mrb[2].mxu0 %v8757_v0  ;;  %7185 = vmatmul.mubr.f32.vlgmr.msra.gmra.mrb[0].mxu1 %v8749_v60 }
 0x1c2   : > { %7022 = vmatprep.mubr.f32.mxu0 %v8778_v16  ;;  %7187 = vmatprep.mubr.f32.mxu1 %v8751_v61 }
 0x1c5   : > { %7023 = vmatmul.mubr.f32.gmra.mrb[4].mxu0 %v8791_v23  ;;  %7188 = vmatmul.mubr.f32.gmra.mrb[2].mxu1 %v8757_v0 }
 0x1c6   : > { %7025 = vmatprep.mubr.f32.mxu0 %v8841_v1  ;;  %7190 = vmatprep.mubr.f32.mxu1 %v8778_v16 }
 0x1c9   : > { %7026 = vmatmul.mubr.f32.gmra.mrb[6].mxu0 %v8849_v7  ;;  %7191 = vmatmul.mubr.f32.gmra.mrb[4].mxu1 %v8791_v23 }
 0x1ca   : > { %7193 = vmatprep.mubr.f32.mxu1 %v8841_v1 }
 0x1cd   : > { %7194 = vmatmul.mubr.f32.gmra.mrb[6].mxu1 %v8849_v7 }
 0x290   : > { %v7018_v50 = vpop.f32.mrb[0].mxu0 }
 0x291   : > { %2342 = vperm.xlu1 %7697, %v7018_v50   ;;  %v1411_v60 = vpop.f32.mrb[1].mxu0  ;;  %v2296_v61 = vmul.f32 %v7018_v50, %v7018_v50 }
 0x292   : > { %2337 = vperm.xlu0 %7698, %v1411_v60   ;;  %v2295_v24 = vmul.f32 %v1411_v60, %v1411_v60  ;;  %v10973_v60 = vld [vmem:[#allocation27_spill] sm:$0xff] }
 0x294   : > { %v7021_v36 = vpop.f32.mrb[2].mxu0  ;;  %v7186_v0 = vpop.f32.mrb[0].mxu1 }
 0x295   : > { %v2304_v54 = vsub.f32 %v7186_v0, %v2296_v61  ;;  %2352 = vperm.xlu1 %7697, %v7021_v36   ;;  %v1423_v57 = vpop.f32.mrb[3].mxu0  ;;  %v2249_v16 = vpop.f32.mrb[1].mxu1  ;;  %v2298_v28 = vmul.f32 %v7021_v36, %v7021_v36  ;;  %v2859_v36 = vrot.slane %v2855_v43, %v2670_v58  ;;  %v2863_v0 = vrot.slane %v2855_v43, %v2674_v13 }
 0x296   : > { %v2303_v59 = vsub.f32 %v2249_v16, %v2295_v24  ;;  %v2297_v23 = vmul.f32 %v1423_v57, %v1423_v57 }
 0x297   : > { %v2312_v4 = vmax.f32 %v2304_v54, 0.0  ;;  %vm2864_vm6 = vcmp.eq.s32.totalorder %v2859_v36, 1  ;;  %vm2865_vm7 = vcmp.eq.s32.totalorder %v2863_v0, 1 }
 0x298   : > { %v2311_v26 = vmax.f32 %v2303_v59, 0.0  ;;  %v7024_v1 = vpop.f32.mrb[4].mxu0  ;;  %v7189_v55 = vpop.f32.mrb[2].mxu1  ;;  %vm2866_vm8 = vmpackc.low %vm2865_vm7, %vm2864_vm6  ;;  %vm10883_vm6 = vcmask 138240   ;;  %vm10884_vm7 = vcmask 130048  }
 0x299   : > { %v2320_v7 = vadd.f32 1e-06, %v2312_v4  ;;  %v2306_v21 = vsub.f32 %v7189_v55, %v2298_v28  ;;  %2347 = vperm.xlu1 %7697, %v1423_v57   ;;  %2362 = vperm.xlu0 %7698, %v7024_v1   ;;  %v1435_v34 = vpop.f32.mrb[5].mxu0  ;;  %v2261_v44 = vpop.f32.mrb[3].mxu1  ;;  %v2300_v5 = vmul.f32 %v7024_v1, %v7024_v1  ;;  %v10974_v57 = vld [vmem:[#allocation30_spill] sm:$0xff]  ;;  %v503_v28 = vld [vmem:[%s10824_s2 + $0x28] sm:$0xff] }
 0x29a   : > { %v2319_v47 = vadd.f32 1e-06, %v2311_v26  ;;  %v2305_v48 = vsub.f32 %v2261_v44, %v2297_v23  ;;  %v2299_v30 = vmul.f32 %v1435_v34, %v1435_v34  ;;  %v10975_v4 = vmov 1   ;;  %v504_v55 = vld [vmem:[%s10824_s2 + $0x30] sm:$0xff] }
 0x29b   : > { %7996 = vrsqrt.f32 %v2320_v7  ;;  %v2314_v27 = vmax.f32 %v2306_v21, 0.0  ;;  %v2679_v26 = vsel %vm2678_vm5, 65537, %v10970_v20  ;;  %v10976_v21 = vld [vmem:[#allocation32_spill] sm:$0xff]  ;;  %v2867_v44 = vsel %vm2866_vm8, 65537, %v10970_v20 }
 0x29c   : > { %v2313_v22 = vmax.f32 %v2305_v48, 0.0  ;;  %v7027_v39 = vpop.f32.mrb[6].mxu0  ;;  %v7192_v12 = vpop.f32.mrb[4].mxu1  ;;  %7998 = vrsqrt.f32 %v2319_v47  ;;  %v9191_v7 = vrot.slane %v2679_v26, %v2670_v58  ;;  %v505_v48 = vld [vmem:[%s10824_s2 + $0x38] sm:$0xff]  ;;  %vm10878_vm8 = vcmask 121856  }
 0x29d   : > { %v2322_v52 = vadd.f32 1e-06, %v2314_v27  ;;  %v2308_v41 = vsub.f32 %v7192_v12, %v2300_v5  ;;  %2357 = vperm.xlu1 %7697, %v1435_v34   ;;  %v1447_v25 = vpop.f32.mrb[7].mxu0  ;;  %v2273_v51 = vpop.f32.mrb[5].mxu1  ;;  %v2302_v17 = vmul.f32 %v7027_v39, %v7027_v39  ;;  %v9200_v5 = vrot.slane %v2867_v44, %v2670_v58 }
 0x29e   : > { %v2321_v63 = vadd.f32 1e-06, %v2313_v22  ;;  %v2307_v3 = vsub.f32 %v2273_v51, %v2299_v30  ;;  %2367 = vperm.xlu0 %7698, %v1447_v25   ;;  %v2301_v42 = vmul.f32 %v1447_v25, %v1447_v25 }
 0x29f   : > { %8000 = vrsqrt.f32 %v2322_v52  ;;  %v2316_v18 = vmax.f32 %v2308_v41, 0.0  ;;  %v2458_v52 = vpop.permute.xlu1 %2457 }
 0x2a0   : > { %v7195_v53 = vpop.f32.mrb[6].mxu1  ;;  %8002 = vrsqrt.f32 %v2321_v63  ;;  %v2315_v46 = vmax.f32 %v2307_v3, 0.0 }
 0x2a1   : > { %v2324_v8 = vadd.f32 1e-06, %v2316_v18  ;;  %v2310_v29 = vsub.f32 %v7195_v53, %v2302_v17  ;;  %2372 = vperm.xlu1 %7697, %v7027_v39   ;;  %v2285_v31 = vpop.f32.mrb[7].mxu1  ;;  %v2686_v39 = vsub.s32 4, %v9170_v10  ;;  %v2473_v17 = vpop.permute.xlu0 %2472 }
 0x2a2   : > { %v2309_v37 = vsub.f32 %v2285_v31, %v2301_v42  ;;  %v2323_v15 = vadd.f32 1e-06, %v2315_v46 }
 0x2a3   : > { %8004 = vrsqrt.f32 %v2324_v8  ;;  %v2318_v49 = vmax.f32 %v2310_v29, 0.0  ;;  %v9208_v12 = vrot.slane %v2679_v26, %v2686_v39  ;;  %v9214_v14 = vrot.slane %v2867_v44, %v2686_v39  ;;  %v2463_v41 = vpop.permute.xlu1 %2462  ;;  %v8116_v8 = vld [vmem:[%s8698_s27 + $0x10] sm:$0xff]  ;;  %v8117_v29 = vld [vmem:[%s8698_s27 + $0x18] sm:$0xff] }
 0x2a4   : > { %8006 = vrsqrt.f32 %v2323_v15  ;;  %v2317_v6 = vmax.f32 %v2309_v37, 0.0 }
 0x2a5   : > { %v7997_v11 = vpop.eup %7996  ;;  %v2326_v38 = vadd.f32 1e-06, %v2318_v49  ;;  %v8119_v49 = vld [vmem:[%s8698_s27 + $0x8] sm:$0xff] }
 0x2a6   : > { %v2392_v19 = vmul.f32 %v7997_v11, %v10971_v62  ;;  %v7999_v56 = vpop.eup %7998  ;;  %v2325_v54 = vadd.f32 1e-06, %v2317_v6  ;;  %v8118_v11 = vld [vmem:[%s8698_s27] sm:$0xff] }
 0x2a7   : > { %v2391_v50 = vmul.f32 %v7999_v56, %v10972_v45  ;;  %8008 = vrsqrt.f32 %v2326_v38  ;;  %v2468_v25 = vpop.permute.xlu1 %2467  ;;  %v8120_v56 = vld [vmem:[%s8698_s27 + $0x30] sm:$0xff] }
 0x2a8   : > { %2406 = vperm.xlu1 %7697, %v2392_v19   ;;  %8010 = vrsqrt.f32 %v2325_v54  ;;  %v8123_v54 = vld [vmem:[%s8698_s27 + $0x28] sm:$0xff] }
 0x2a9   : > { %v8001_v35 = vpop.eup %8000 }
 0x2aa   : > { %v2394_v61 = vmul.f32 %v8001_v35, %v10973_v60  ;;  %v8003_v24 = vpop.eup %8002 }
 0x2ab   : > { %v2393_v16 = vmul.f32 %v8003_v24, %v10974_v57  ;;  %v9230_v51 = vpop.permute.xlu1 %2477 }
 0x2ac   : > { %2401 = vperm.xlu1 %7697, %v2391_v50   ;;  %2416 = vperm.xlu0 %7698, %v2394_v61   ;;  %v8122_v61 = vld [vmem:[%s8698_s27 + $0x20] sm:$0xff] }
 0x2ad   : > { %v8005_v59 = vpop.eup %8004 }
 0x2ae   : > { %v2396_v23 = vmul.f32 %v8005_v59, %v503_v28  ;;  %v8007_v1 = vpop.eup %8006 }
 0x2af   : > { %v2395_v34 = vmul.f32 %v8007_v1, %v10976_v21 }
 0x2b0   : > { %2411 = vperm.xlu1 %7697, %v2393_v16   ;;  %7699 = vset.pattern.permute.xlu0 %v10975_v4 }
 0x2b1   : > { %2482 = vperm.xlu0 %7699, %v503_v28   ;;  %v8009_v47 = vpop.eup %8008 }
 0x2b2   : > { %v2398_v27 = vmul.f32 %v8009_v47, %v505_v48  ;;  %v8011_v30 = vpop.eup %8010  ;;  %v8124_v47 = vld [vmem:[%s8706_s21 + $0x10] sm:$0xff] }
 0x2b3   : > { %v2397_v22 = vmul.f32 %v8011_v30, %v504_v55 }
 0x2b4   : > { %2426 = vperm.xlu1 %7697, %v2396_v23  }
 0x2b5   : > { %2487 = vperm.xlu0 %7699, %v504_v55  }
 0x2b8   : > { %2421 = vperm.xlu1 %7697, %v2395_v34  }
 0x2b9   : > { %2688 = vrot.lane.b32.xlu0 %v9191_v7, %s10887_s16 }
 0x2bc   : > { %2436 = vperm.xlu1 %7697, %v2398_v27  }
 0x2bd   : > { %2876 = vrot.lane.b32.xlu0 %v9200_v5, %s10889_s29 }
 0x2c0   : > { %2431 = vperm.xlu1 %7697, %v2397_v22   ;;  %v8125_v22 = vld [vmem:[%s8706_s21 + $0x18] sm:$0xff] }
 0x2c1   : > { %2970 = vrot.lane.b32.xlu0 %v9191_v7, %s8387_s30 }
 0x2c4   : > { %7700 = vset.pattern.permute.xlu1 %v10975_v4 }
 0x2c5   : > { %2492 = vperm.xlu1 %7700, %v505_v48   ;;  %7702 = vrot.lane.b32.xlu0 %v10970_v20, %s8388_s14 }
 0x2c9   : > { %2690 = vrot.lane.b32.xlu1 %v9208_v12, %s10887_s16  ;;  %7712 = vrot.lane.b32.xlu0 %v10970_v20, %s8389_s4 }
 0x2cd   : > { %2878 = vrot.lane.b32.xlu1 %v9214_v14, %s10889_s29  ;;  %3082 = vrot.lane.b32.xlu0 %v9214_v14, %s8390_s19 }
 0x2d1   : > { %2972 = vrot.lane.b32.xlu1 %v9208_v12, %s8387_s30 }
 0x2d5   : > { %7707 = vrot.lane.b32.xlu1 %v10970_v20, %s8388_s14 }
 0x2d9   : > { %3080 = vrot.lane.b32.xlu1 %v9200_v5, %s8390_s19 }
 0x2dd   : > { %7717 = vrot.lane.b32.xlu1 %v10970_v20, %s8389_s4 }
 0x310   : > { %v2343_v63 = vpop.permute.xlu1 %2342 }
 0x311   : > { %v2338_v33 = vpop.permute.xlu0 %2337  ;;  %v2377_v46 = vsub.f32 %v8116_v8, %v2343_v63  ;;  %v2378_v31 = vsub.f32 %v8117_v29, %v2343_v63 }
 0x312   : > { %v2375_v15 = vsub.f32 %v8118_v11, %v2338_v33  ;;  %v2376_v2 = vsub.f32 %v8119_v49, %v2338_v33  ;;  %v8126_v33 = vld [vmem:[%s8706_s21] sm:$0xff] }
 0x314   : > { %v2353_v3 = vpop.permute.xlu1 %2352 }
 0x315   : > { %v2381_v32 = vsub.f32 %v8120_v56, %v2353_v3  ;;  %v2382_v35 = vsub.f32 %v8121_v9, %v2353_v3 }
 0x318   : > { %v2348_v18 = vpop.permute.xlu1 %2347  ;;  %v2363_v53 = vpop.permute.xlu0 %2362 }
 0x319   : > { %v2379_v24 = vsub.f32 %v8122_v61, %v2348_v18  ;;  %v2380_v57 = vsub.f32 %v8123_v54, %v2348_v18  ;;  %v2385_v48 = vsub.f32 %v8124_v47, %v2363_v53  ;;  %v2386_v39 = vsub.f32 %v8125_v22, %v2363_v53  ;;  %v8129_v61 = vld [vmem:[%s8706_s21 + $0x28] sm:$0xff]  ;;  %v8130_v54 = vld [vmem:[%s8706_s21 + $0x30] sm:$0xff] }
 0x31c   : > { %v9232_v42 = vpop.permute.xlu1 %2357 }
 0x31d   : > { %v9238_v37 = vpop.permute.xlu0 %2367  ;;  %v2383_v8 = vsub.f32 %v8126_v33, %v9232_v42 }
 0x320   : > { %v9234_v10 = vpop.permute.xlu1 %2372 }
 0x327   : > { %v2407_v40 = vpop.permute.xlu1 %2406 }
 0x328   : > { %v2441_v58 = vmul.f32 %v2407_v40, %v2377_v46  ;;  %v2442_v13 = vmul.f32 %v2407_v40, %v2378_v31  ;;  %v8127_v46 = vld [vmem:[%s8706_s21 + $0x8] sm:$0xff] }
 0x329   : > { %v2384_v53 = vsub.f32 %v8127_v46, %v9232_v42 }
 0x32a   : > { %v9242_v62 = vadd.f32 %v2463_v41, %v2441_v58  ;;  %v9244_v19 = vadd.f32 %v2463_v41, %v2442_v13 }
 0x32b   : > { %v2402_v38 = vpop.permute.xlu1 %2401  ;;  %v2417_v6 = vpop.permute.xlu0 %2416 }
 0x32c   : > { %v6582_v43 = vmul.f32 -1.442695, %v9242_v62  ;;  %v6583_v45 = vmul.f32 -1.442695, %v9244_v19  ;;  %v2439_v50 = vmul.f32 %v2402_v38, %v2375_v15  ;;  %v2440_v60 = vmul.f32 %v2402_v38, %v2376_v2 }
 0x32d   : > { %v2445_v36 = vmul.f32 %v2417_v6, %v2381_v32  ;;  %v2446_v0 = vmul.f32 %v2417_v6, %v2382_v35 }
 0x32e   : > { %8012 = vpow2.f32 %v6582_v43  ;;  %v9252_v16 = vadd.f32 %v2458_v52, %v2439_v50  ;;  %v9254_v59 = vadd.f32 %v2458_v52, %v2440_v60  ;;  %v8128_v50 = vld [vmem:[%s8706_s21 + $0x20] sm:$0xff] }
 0x32f   : > { %8014 = vpow2.f32 %v6583_v45  ;;  %v9256_v28 = vadd.f32 %v2473_v17, %v2445_v36  ;;  %v9258_v4 = vadd.f32 %v2473_v17, %v2446_v0  ;;  %v2412_v23 = vpop.permute.xlu1 %2411  ;;  %v2387_v60 = vsub.f32 %v8128_v50, %v9238_v37 }
 0x330   : > { %v6580_v26 = vmul.f32 -1.442695, %v9252_v16  ;;  %v6581_v1 = vmul.f32 -1.442695, %v9254_v59  ;;  %v2443_v55 = vmul.f32 %v2412_v23, %v2379_v24  ;;  %v2444_v21 = vmul.f32 %v2412_v23, %v2380_v57  ;;  %v2483_v41 = vpop.permute.xlu0 %2482 }
 0x331   : > { %v6586_v34 = vmul.f32 -1.442695, %v9256_v28  ;;  %v6587_v44 = vmul.f32 -1.442695, %v9258_v4  ;;  %v2388_v24 = vsub.f32 %v8129_v61, %v9238_v37  ;;  %v2389_v57 = vsub.f32 %v8130_v54, %v9234_v10 }
 0x332   : > { %8016 = vpow2.f32 %v6580_v26  ;;  %v9265_v27 = vadd.f32 %v2468_v25, %v2443_v55  ;;  %v9267_v30 = vadd.f32 %v2468_v25, %v2444_v21 }
 0x333   : > { %8018 = vpow2.f32 %v6581_v1  ;;  %v2427_v52 = vpop.permute.xlu1 %2426 }
 0x334   : > { %8020 = vpow2.f32 %v6586_v34  ;;  %v6584_v63 = vmul.f32 -1.442695, %v9265_v27  ;;  %v6585_v3 = vmul.f32 -1.442695, %v9267_v30  ;;  %v2449_v17 = vmul.f32 %v2427_v52, %v2385_v48  ;;  %v2488_v22 = vpop.permute.xlu0 %2487 }
 0x335   : > { %8022 = vpow2.f32 %v6587_v44  ;;  %v2450_v18 = vmul.f32 %v2427_v52, %v2386_v39  ;;  %v8131_v44 = vld [vmem:[%s8706_s21 + $0x38] sm:$0xff] }
 0x336   : > { %8024 = vpow2.f32 %v6584_v63  ;;  %v9274_v25 = vadd.f32 %v2483_v41, %v2449_v17  ;;  %v2390_v47 = vsub.f32 %v8131_v44, %v9234_v10 }
 0x337   : > { %8026 = vpow2.f32 %v6585_v3  ;;  %v9278_v29 = vadd.f32 %v2483_v41, %v2450_v18  ;;  %v2422_v31 = vpop.permute.xlu1 %2421 }
 0x338   : > { %v8013_v40 = vpop.eup %8012  ;;  %v6590_v58 = vmul.f32 -1.442695, %v9274_v25  ;;  %v2447_v13 = vmul.f32 %v2422_v31, %v2383_v8  ;;  %v2448_v2 = vmul.f32 %v2422_v31, %v2384_v53 }
 0x339   : > { %v8015_v11 = vpop.eup %8014  ;;  %v2561_v15 = vadd.f32 1.0, %v8013_v40  ;;  %v6591_v49 = vmul.f32 -1.442695, %v9278_v29 }
 0x33a   : > { %v2562_v56 = vadd.f32 1.0, %v8015_v11  ;;  %8028 = vpow2.f32 %v6590_v58  ;;  %v9283_v32 = vadd.f32 %v9230_v51, %v2447_v13  ;;  %v9287_v43 = vadd.f32 %v9230_v51, %v2448_v2 }
 0x33b   : > { %8030 = vrcp.f32 %v2561_v15  ;;  %v2437_v42 = vpop.permute.xlu1 %2436 }
 0x33c   : > { %v8017_v9 = vpop.eup %8016  ;;  %8032 = vrcp.f32 %v2562_v56  ;;  %v6588_v35 = vmul.f32 -1.442695, %v9283_v32  ;;  %v6589_v48 = vmul.f32 -1.442695, %v9287_v43  ;;  %v2453_v63 = vmul.f32 %v2437_v42, %v2389_v57 }
 0x33d   : > { %v8019_v38 = vpop.eup %8018  ;;  %v2559_v6 = vadd.f32 1.0, %v8017_v9  ;;  %8034 = vpow2.f32 %v6591_v49  ;;  %v2454_v3 = vmul.f32 %v2437_v42, %v2390_v47 }
 0x33e   : > { %v8021_v45 = vpop.eup %8020  ;;  %v2560_v36 = vadd.f32 1.0, %v8019_v38  ;;  %8036 = vpow2.f32 %v6588_v35  ;;  %v2689_v35 = vpop.permute.xlu0 %2688 }
 0x33f   : > { %v8023_v0 = vpop.eup %8022  ;;  %8038 = vrcp.f32 %v2559_v6  ;;  %v2565_v23 = vadd.f32 1.0, %v8021_v45  ;;  %v2432_v26 = vpop.permute.xlu1 %2431 }
 0x340   : > { %v8025_v1 = vpop.eup %8024  ;;  %8040 = vrcp.f32 %v2560_v36  ;;  %v2566_v51 = vadd.f32 1.0, %v8023_v0  ;;  %v2451_v55 = vmul.f32 %v2432_v26, %v2387_v60  ;;  %v2452_v21 = vmul.f32 %v2432_v26, %v2388_v24 }
 0x341   : > { %v8027_v34 = vpop.eup %8026  ;;  %8042 = vrcp.f32 %v2565_v23  ;;  %v2563_v37 = vadd.f32 1.0, %v8025_v1 }
 0x342   : > { %8044 = vrcp.f32 %v2566_v51  ;;  %v2564_v39 = vadd.f32 1.0, %v8027_v34  ;;  %v9298_v52 = vadd.f32 %v2488_v22, %v2451_v55  ;;  %v9300_v41 = vadd.f32 %v2488_v22, %v2452_v21 }
 0x343   : > { %8046 = vrcp.f32 %v2563_v37 }
 0x344   : > { %v8029_v17 = vpop.eup %8028  ;;  %8048 = vrcp.f32 %v2564_v39  ;;  %v6592_v18 = vmul.f32 -1.442695, %v9298_v52  ;;  %v6593_v10 = vmul.f32 -1.442695, %v9300_v41  ;;  %v2493_v33 = vpop.permute.xlu1 %2492 }
 0x345   : > { %v8031_v8 = vpop.eup %8030  ;;  %8050 = vpow2.f32 %v6589_v48  ;;  %v9304_v46 = vadd.f32 %v2493_v33, %v2453_v63  ;;  %v9306_v53 = vadd.f32 %v2493_v33, %v2454_v3  ;;  %v2569_v9 = vadd.f32 1.0, %v8029_v17 }
 0x346   : > { %v8033_v31 = vpop.eup %8032  ;;  %8052 = vpow2.f32 %v6592_v18  ;;  %v2609_v56 = vmul.f32 %v8031_v8, %v9242_v62 }
 0x347   : > { %v8035_v40 = vpop.eup %8034  ;;  %v6594_v58 = vmul.f32 -1.442695, %v9304_v46  ;;  %8054 = vpow2.f32 %v6593_v10  ;;  %v6595_v11 = vmul.f32 -1.442695, %v9306_v53  ;;  %v2610_v45 = vmul.f32 %v8033_v31, %v9244_v19 }
 0x348   : > { %v8037_v13 = vpop.eup %8036  ;;  %v9312_v38 = vpop.permute.xlu1 %2690  ;;  %v2570_v62 = vadd.f32 1.0, %v8035_v40 }
 0x349   : > { %v8039_v15 = vpop.eup %8038  ;;  %v2567_v49 = vadd.f32 1.0, %v8037_v13  ;;  %8056 = vpow2.f32 %v6594_v58  ;;  %v9318_v60 = vsel %vm2692_vm9, %v2689_v35, %v9312_v38  ;;  %vm10880_vm11 = vcmp.ne.s16.totalorder %v9312_v38, 0 }
 0x34a   : > { %v8041_v2 = vpop.eup %8040  ;;  %v2607_v42 = vmul.f32 %v8039_v15, %v9252_v16  ;;  %vm2695_vm10 = vcmp.ne.s16.totalorder %v9318_v60, 0 }
 0x34b   : > { %v8043_v6 = vpop.eup %8042  ;;  %v2608_v50 = vmul.f32 %v8041_v2, %v9254_v59  ;;  %8058 = vrcp.f32 %v2567_v49 }
 0x34c   : > { %v8045_v61 = vpop.eup %8044  ;;  %v9320_v24 = vpack.c.bf16 %v2609_v56, %v2607_v42  ;;  %8060 = vpow2.f32 %v6595_v11  ;;  %v2613_v34 = vmul.f32 %v8043_v6, %v9256_v28  ;;  %v9386_v42 = vpop.permute.xlu1 %2878 }
 0x34d   : > { %v8047_v16 = vpop.eup %8046  ;;  %v9322_v36 = vpack.c.bf16 %v2610_v45, %v2608_v50  ;;  %8062 = vrcp.f32 %v2569_v9  ;;  %v2614_v55 = vmul.f32 %v8045_v61, %v9258_v4  ;;  %vm10882_vm13 = vcmp.ne.s16.totalorder %v9386_v42, 0 }
 0x34e   : > { %v8049_v0 = vpop.eup %8048  ;;  %2796 = vrot.lane.b32.xlu0 %v9320_v24, %s8389_s4  ;;  %8064 = vrcp.f32 %v2570_v62  ;;  %v2611_v23 = vmul.f32 %v8047_v16, %v9265_v27  ;;  %v2698_v1 = vsel %vm2695_vm10, %v9320_v24, 0 }
 0x34f   : > { %v8051_v19 = vpop.eup %8050  ;;  %2798 = vrot.lane.b32.xlu1 %v9322_v36, %s8389_s4  ;;  %v2612_v54 = vmul.f32 %v8049_v0, %v9267_v30  ;;  %v2699_v21 = vsel %vm10880_vm11, %v9322_v36, 0  ;;  %v2887_v35 = vsel %vm10882_vm13, %v9322_v36, 0 }
 0x350   : > { %v8053_v59 = vpop.eup %8052  ;;  %v2568_v57 = vadd.f32 1.0, %v8051_v19  ;;  %v9344_v48 = vpack.c.bf16 %v2613_v34, %v2611_v23  ;;  %v9424_v50 = vpop.permute.xlu1 %2972 }
 0x351   : > { %v2571_v26 = vadd.f32 1.0, %v8053_v59  ;;  %v8055_v51 = vpop.eup %8054  ;;  %v9342_v27 = vpack.c.bf16 %v2614_v55, %v2612_v54  ;;  %vm10875_vm1 = vcmp.ne.s16.totalorder %v9424_v50, 0 }
 0x352   : > { %8066 = vrcp.f32 %v2568_v57  ;;  %2723 = vrot.lane.b32.xlu0 %v2698_v1, %s8388_s14  ;;  %v2572_v44 = vadd.f32 1.0, %v8055_v51  ;;  %v2701_v17 = vsel %vm2695_vm10, %v9344_v48, 0  ;;  %v2981_v0 = vsel %vm10875_vm1, %v9322_v36, 0 }
 0x353   : > { %v8057_v30 = vpop.eup %8056  ;;  %2725 = vrot.lane.b32.xlu1 %v2699_v21, %s8388_s14  ;;  %8068 = vrcp.f32 %v2571_v26  ;;  %v2702_v63 = vsel %vm10880_vm11, %v9342_v27, 0  ;;  %v2984_v1 = vsel %vm10875_vm1, %v9342_v27, 0 }
 0x354   : > { %v2573_v47 = vadd.f32 1.0, %v8057_v30  ;;  %v9475_v51 = vpop.permute.xlu1 %7707  ;;  %v7942_v30 = vld [vmem:[%s10825_s3 + $0x4] ss:$20 sps:$4 sm:$0xff]  }
 0x355   : > { %v8059_v37 = vpop.eup %8058  ;;  %3597 = vmatprep.mubr.bf16.mxu0 %v7942_v30 }
 0x356   : > { %v8061_v4 = vpop.eup %8060  ;;  %8070 = vrcp.f32 %v2573_v47  ;;  %2804 = vrot.lane.b32.xlu0 %v9342_v27, %s8389_s4  ;;  %v2615_v39 = vmul.f32 %v8059_v37, %v9283_v32 }
 0x357   : > { %8072 = vrcp.f32 %v2572_v44  ;;  %v2574_v22 = vadd.f32 1.0, %v8061_v4  ;;  %2802 = vrot.lane.b32.xlu1 %v9344_v48, %s8389_s4  ;;  %v8063_v28 = vpop.eup %8062 }
 0x358   : > { %v8065_v3 = vpop.eup %8064  ;;  %v2617_v18 = vmul.f32 %v8063_v28, %v9274_v25  ;;  %v9489_v34 = vpop.permute.xlu1 %3080 }
 0x359   : > { %8074 = vrcp.f32 %v2574_v22  ;;  %v2618_v33 = vmul.f32 %v8065_v3, %v9278_v29  ;;  %vm3085_vm5 = vcmp.ne.s16.totalorder %v9489_v34, 0 }
 0x35a   : > { %2731 = vrot.lane.b32.xlu0 %v2702_v63, %s8388_s14  ;;  %v9362_v8 = vpack.c.bf16 %v2617_v18, %v2615_v39  ;;  %v3088_v22 = vsel %vm3085_vm5, %v9320_v24, 0  ;;  %v3091_v39 = vsel %vm3085_vm5, %v9344_v48, 0 }
 0x35b   : > { %2729 = vrot.lane.b32.xlu1 %v2701_v17, %s8388_s14 }
 0x35c   : > { %v8067_v10 = vpop.eup %8066  ;;  %v2704_v25 = vsel %vm2695_vm10, %v9362_v8, 0  ;;  %v3094_v63 = vsel %vm3085_vm5, %v9362_v8, 0  ;;  %v9539_v3 = vpop.permute.xlu1 %7717 }
 0x35d   : > { %v2616_v32 = vmul.f32 %v8067_v10, %v9287_v43  ;;  %v8069_v31 = vpop.eup %8068 }
 0x35e   : > { %v2619_v43 = vmul.f32 %v8069_v31, %v9298_v52  ;;  %v2877_v52 = vpop.permute.xlu0 %2876 }
 0x35f   : > { %v9364_v40 = vpack.c.bf16 %v2618_v33, %v2616_v32  ;;  %2808 = vrot.lane.b32.xlu1 %v9362_v8, %s8389_s4 }
 0x360   : > { %v8071_v58 = vpop.eup %8070 }
 0x361   : > { %v8073_v13 = vpop.eup %8072  ;;  %v2621_v11 = vmul.f32 %v8071_v58, %v9304_v46  ;;  %2810 = vrot.lane.b32.xlu0 %v9364_v40, %s8389_s4  ;;  %v2705_v46 = vsel %vm10880_vm11, %v9364_v40, 0  ;;  %v2987_v21 = vsel %vm10875_vm1, %v9364_v40, 0 }
 0x362   : > { %v2620_v15 = vmul.f32 %v8073_v13, %v9300_v41  ;;  %v9394_v41 = vsel %vm2880_vm12, %v2877_v52, %v9386_v42  ;;  %v2971_v62 = vpop.permute.xlu0 %2970 }
 0x363   : > { %v8075_v29 = vpop.eup %8074  ;;  %2735 = vrot.lane.b32.xlu1 %v2704_v25, %s8388_s14  ;;  %v9381_v2 = vpack.c.bf16 %v2621_v11, %v2619_v43  ;;  %vm10881_vm14 = vcmp.ne.s16.totalorder %v9394_v41, 0  ;;  %v9436_v16 = vsel %vm10879_vm15, %v2971_v62, %v9424_v50  ;;  %v7710_v62 = vunpack.i.h.bf16 %v9475_v51 }
 0x364   : > { %v2622_v49 = vmul.f32 %v8075_v29, %v9306_v53  ;;  %v2886_v6 = vsel %vm10881_vm14, %v9320_v24, 0  ;;  %v2889_v45 = vsel %vm10881_vm14, %v9344_v48, 0  ;;  %v2892_v61 = vsel %vm10881_vm14, %v9362_v8, 0 }
 0x365   : > { %2737 = vrot.lane.b32.xlu0 %v2705_v46, %s8388_s14  ;;  %v2707_v9 = vsel %vm2695_vm10, %v9381_v2, 0  ;;  %vm10876_vm2 = vcmp.ne.s16.totalorder %v9436_v16, 0  ;;  %v2895_v23 = vsel %vm10881_vm14, %v9381_v2, 0 }
 0x366   : > { %v9384_v56 = vpack.c.bf16 %v2622_v49, %v2620_v15  ;;  %v2980_v19 = vsel %vm10876_vm2, %v9320_v24, 0  ;;  %v2983_v59 = vsel %vm10876_vm2, %v9344_v48, 0  ;;  %v7703_v54 = vpop.permute.xlu0 %7702  ;;  %v2986_v26 = vsel %vm10876_vm2, %v9362_v8, 0 }
 0x367   : > { %v2989_v4 = vsel %vm10876_vm2, %v9381_v2, 0  ;;  %v7704_v10 = vunpack.i.l.bf16 %v7703_v54  ;;  %v7705_v25 = vunpack.i.h.bf16 %v7703_v54 }
 0x368   : > { %2816 = vrot.lane.b32.xlu1 %v9384_v56, %s8389_s4  ;;  %v2708_v53 = vsel %vm10880_vm11, %v9384_v56, 0  ;;  %v2896_v57 = vsel %vm10882_vm13, %v9384_v56, 0  ;;  %v2990_v37 = vsel %vm10875_vm1, %v9384_v56, 0 }
 0x369   : > { %2814 = vrot.lane.b32.xlu0 %v9381_v2, %s8389_s4 }
 0x36a   : > { %v9477_v55 = vpop.permute.xlu0 %7712 }
 0x36b   : > { %v7715_v30 = vunpack.i.h.bf16 %v9477_v55 }
 0x36c   : > { %2743 = vrot.lane.b32.xlu1 %v2708_v53, %s8388_s14  ;;  %v7709_v53 = vunpack.i.l.bf16 %v9475_v51 }
 0x36d   : > { %2741 = vrot.lane.b32.xlu0 %v2707_v9, %s8388_s14 }
 0x36e   : > { %v3083_v44 = vpop.permute.xlu0 %3082 }
 0x36f   : > { %v9497_v47 = vsel %vm10877_vm3, %v9489_v34, %v3083_v44 }
 0x370   : > { %2913 = vrot.lane.b32.xlu1 %v2887_v35, %s8391_s0  ;;  %vm3086_vm4 = vcmp.ne.s16.totalorder %v9497_v47, 0 }
 0x371   : > { %2911 = vrot.lane.b32.xlu0 %v2886_v6, %s8391_s0  ;;  %v3095_v28 = vsel %vm3086_vm4, %v9364_v40, 0 }
 0x374   : > { %3172 = vrot.lane.b32.xlu1 %v9191_v7, %s8391_s0  ;;  %v2890_v7 = vsel %vm10882_vm13, %v9342_v27, 0 }
 0x375   : > { %7722 = vrot.lane.b32.xlu0 %v10970_v20, %s8391_s0 }
 0x378   : > { %2917 = vrot.lane.b32.xlu1 %v2889_v45, %s8391_s0 }
 0x379   : > { %3174 = vrot.lane.b32.xlu0 %v9208_v12, %s8391_s0  ;;  %v2893_v12 = vsel %vm10882_vm13, %v9364_v40, 0 }
 0x37c   : > { %2923 = vrot.lane.b32.xlu1 %v2892_v61, %s8391_s0 }
 0x37d   : > { %2919 = vrot.lane.b32.xlu0 %v2890_v7, %s8391_s0 }
 0x380   : > { %7727 = vrot.lane.b32.xlu1 %v10970_v20, %s8391_s0 }
 0x381   : > { %2925 = vrot.lane.b32.xlu0 %v2893_v12, %s8391_s0 }
 0x384   : > { %3007 = vrot.lane.b32.xlu1 %v2981_v0, %s8390_s19 }
 0x385   : > { %3005 = vrot.lane.b32.xlu0 %v2980_v19, %s8390_s19 }
 0x388   : > { %3011 = vrot.lane.b32.xlu1 %v2983_v59, %s8390_s19 }
 0x389   : > { %7732 = vrot.lane.b32.xlu0 %v10970_v20, %s8390_s19 }
 0x38c   : > { %2931 = vrot.lane.b32.xlu1 %v2896_v57, %s8391_s0 }
 0x38d   : > { %2929 = vrot.lane.b32.xlu0 %v2895_v23, %s8391_s0  ;;  %v7714_v23 = vunpack.i.l.bf16 %v9477_v55 }
 0x390   : > { %3017 = vrot.lane.b32.xlu1 %v2986_v26, %s8390_s19 }
 0x391   : > { %3013 = vrot.lane.b32.xlu0 %v2984_v1, %s8390_s19 }
 0x394   : > { %7737 = vrot.lane.b32.xlu1 %v10970_v20, %s8390_s19 }
 0x395   : > { %3019 = vrot.lane.b32.xlu0 %v2987_v21, %s8390_s19 }
 0x398   : > { %3339 = vrot.lane.b32.xlu1 %v9214_v14, %s8388_s14  ;;  %v3092_v14 = vsel %vm3086_vm4, %v9342_v27, 0 }
 0x399   : > { %3337 = vrot.lane.b32.xlu0 %v9200_v5, %s8388_s14  ;;  %v3089_v5 = vsel %vm3086_vm4, %v9322_v36, 0 }
 0x39c   : > { %3025 = vrot.lane.b32.xlu1 %v2990_v37, %s8390_s19 }
 0x39d   : > { %3023 = vrot.lane.b32.xlu0 %v2989_v4, %s8390_s19 }
 0x3a0   : > { %7742 = vrot.lane.b32.xlu1 %v10970_v20, %s8387_s30 }
 0x3a1   : > { %3114 = vrot.lane.b32.xlu0 %v3089_v5, %s8387_s30 }
 0x3a4   : > { %3120 = vrot.lane.b32.xlu1 %v3092_v14, %s8387_s30  ;;  %v7719_v14 = vunpack.i.l.bf16 %v9539_v3 }
 0x3a5   : > { %3112 = vrot.lane.b32.xlu0 %v3088_v22, %s8387_s30 }
 0x3a8   : > { %3126 = vrot.lane.b32.xlu1 %v3095_v28, %s8387_s30 }
 0x3a9   : > { %3118 = vrot.lane.b32.xlu0 %v3091_v39, %s8387_s30 }
 0x3ac   : > { %3124 = vrot.lane.b32.xlu1 %v3094_v63, %s8387_s30 }
 0x3ad   : > { %7747 = vrot.lane.b32.xlu0 %v10970_v20, %s8387_s30 }
 0x3b0   : > { %7752 = vrot.lane.b32.xlu1 %v10970_v20, %s10889_s29 }
 0x3c0   : > { %v2797_v17 = vpop.permute.xlu0 %2796 }
 0x3c1   : > { %v2799_v18 = vpop.permute.xlu1 %2798  ;;  %v2819_v1 = vsel %vm10884_vm7, %v7714_v23, %v2797_v17 }
 0x3c2   : > { %v2820_v57 = vsel %vm10884_vm7, %v2797_v17, %v2799_v18  ;;  %v7720_v18 = vunpack.i.h.bf16 %v9539_v3 }
 0x3c4   : > { %v2724_v33 = vpop.permute.xlu0 %2723 }
 0x3c5   : > { %v2726_v32 = vpop.permute.xlu1 %2725  ;;  %v2746_v31 = vsel %vm10883_vm6, %v7704_v10, %v2724_v33 }
 0x3c6   : > { %v2747_v58 = vsel %vm10883_vm6, %v2724_v33, %v2726_v32 }
 0x3c7   : > { %3565 = vmatprep.subr.bf16.mxu0 %v2747_v58 }
 0x3c8   : > { %3566 = vmatpush1.bf16.msra.mxu0 %v2746_v31  ;;  %v2805_v13 = vpop.permute.xlu0 %2804 }
 0x3c9   : > { %v2803_v11 = vpop.permute.xlu1 %2802 }
 0x3ca   : > { %v2822_v21 = vsel %vm10884_vm7, %v2803_v11, %v2805_v13  ;;  %v2821_v37 = vsel %vm10884_vm7, %v7715_v30, %v2803_v11 }
 0x3cc   : > { %v2732_v29 = vpop.permute.xlu0 %2731 }
 0x3cd   : > { %v2730_v43 = vpop.permute.xlu1 %2729 }
 0x3ce   : > { %v2749_v15 = vsel %vm10883_vm6, %v2730_v43, %v2732_v29  ;;  %v2748_v49 = vsel %vm10883_vm6, %v7705_v25, %v2730_v43 }
 0x3cf   : > { %3567 = vmatprep.subr.bf16.mxu0 %v2749_v15  ;;  %v3097_v15 = vsel %vm3085_vm5, %v9381_v2, 0 }
 0x3d0   : > { %3568 = vmatpush1.bf16.msra.mxu0 %v2748_v49 }
 0x3d1   : > { %v2809_v46 = vpop.permute.xlu1 %2808 }
 0x3d2   : > { %v2823_v55 = vsel %vm10884_vm7, %v7719_v14, %v2809_v46 }
 0x3d3   : > { %v2811_v52 = vpop.permute.xlu0 %2810 }
 0x3d4   : > { %v2824_v5 = vsel %vm10884_vm7, %v2809_v46, %v2811_v52 }
 0x3d5   : > { %v2736_v9 = vpop.permute.xlu1 %2735 }
 0x3d6   : > { %v2750_v6 = vsel %vm10883_vm6, %v7709_v53, %v2736_v9 }
 0x3d7   : > { %v2738_v35 = vpop.permute.xlu0 %2737 }
 0x3d8   : > { %v2751_v45 = vsel %vm10883_vm6, %v2736_v9, %v2738_v35 }
 0x3d9   : > { %3569 = vmatprep.subr.bf16.mxu0 %v2751_v45 }
 0x3da   : > { %3570 = vmatpush1.bf16.msra.mxu0 %v2750_v6  ;;  %v2817_v61 = vpop.permute.xlu1 %2816 }
 0x3db   : > { %v2815_v7 = vpop.permute.xlu0 %2814 }
 0x3dc   : > { %v2826_v33 = vsel %vm10884_vm7, %v2815_v7, %v2817_v61  ;;  %v2825_v31 = vsel %vm10884_vm7, %v7720_v18, %v2815_v7  ;;  %v3098_v61 = vsel %vm3086_vm4, %v9384_v56, 0 }
 0x3de   : > { %v2744_v12 = vpop.permute.xlu1 %2743 }
 0x3df   : > { %v2742_v0 = vpop.permute.xlu0 %2741 }
 0x3e0   : > { %v2753_v19 = vsel %vm10883_vm6, %v2742_v0, %v2744_v12  ;;  %v2752_v59 = vsel %vm10883_vm6, %v7710_v62, %v2742_v0 }
 0x3e1   : > { %3571 = vmatprep.subr.bf16.mxu0 %v2753_v19 }
 0x3e2   : > { %3572 = vmatpush1.bf16.msra.mxu0 %v2752_v59  ;;  %v2914_v54 = vpop.permute.xlu1 %2913 }
 0x3e3   : > { %v2912_v26 = vpop.permute.xlu0 %2911  ;;  %3573 = vmatprep.subr.bf16.mxu0 %v2820_v57 }
 0x3e4   : > { %v2935_v25 = vsel %vm10878_vm8, %v2912_v26, %v2914_v54 }
 0x3e6   : > { %3574 = vmatpush1.bf16.msra.mxu0 %v2819_v1  ;;  %v9554_v51 = vpop.permute.xlu1 %3172 }
 0x3e7   : > { %v7723_v44 = vpop.permute.xlu0 %7722  ;;  %3575 = vmatprep.subr.bf16.mxu0 %v2822_v21  ;;  %vm3177_vm2 = vcmp.ne.s16.totalorder %v9554_v51, 0 }
 0x3e8   : > { %v7724_v32 = vunpack.i.l.bf16 %v7723_v44  ;;  %v3180_v3 = vsel %vm3177_vm2, %v9320_v24, 0  ;;  %v3183_v49 = vsel %vm3177_vm2, %v9344_v48, 0  ;;  %v7725_v46 = vunpack.i.h.bf16 %v7723_v44 }
 0x3e9   : > { %v3186_v45 = vsel %vm3177_vm2, %v9362_v8, 0 }
 0x3ea   : > { %3576 = vmatpush1.bf16.msra.mxu0 %v2821_v37  ;;  %v2918_v4 = vpop.permute.xlu1 %2917  ;;  %v2934_v29 = vsel %vm10878_vm8, %v7724_v32, %v2912_v26 }
 0x3eb   : > { %v3175_v22 = vpop.permute.xlu0 %3174  ;;  %3577 = vmatprep.subr.bf16.mxu0 %v2824_v5  ;;  %v2936_v35 = vsel %vm10878_vm8, %v7725_v46, %v2918_v4 }
 0x3ec   : > { %v9563_v28 = vsel %vm10878_vm8, %v9554_v51, %v3175_v22 }
 0x3ed   : > { %vm3178_vm1 = vcmp.ne.s16.totalorder %v9563_v28, 0 }
 0x3ee   : > { %3578 = vmatpush1.bf16.msra.mxu0 %v2823_v55  ;;  %v2924_v39 = vpop.permute.xlu1 %2923  ;;  %v3184_v63 = vsel %vm3178_vm1, %v9342_v27, 0  ;;  %v3181_v17 = vsel %vm3178_vm1, %v9322_v36, 0  ;;  %v3187_v13 = vsel %vm3178_vm1, %v9364_v40, 0 }
 0x3ef   : > { %3212 = vrot.lane.b32.xlu1 %v3184_v63, %s10889_s29  ;;  %3206 = vrot.lane.b32.xlu0 %v3181_v17, %s10889_s29  ;;  %v2920_v10 = vpop.permute.xlu0 %2919  ;;  %v3190_v63 = vsel %vm3178_vm1, %v9384_v56, 0 }
 0x3f0   : > { %3579 = vmatprep.subr.bf16.mxu0 %v2826_v33  ;;  %v2937_v53 = vsel %vm10878_vm8, %v2918_v4, %v2920_v10  ;;  %v3189_v4 = vsel %vm3177_vm2, %v9381_v2, 0 }
 0x3f2   : > { %3580 = vmatpush1.bf16.msra.mxu0 %v2825_v31  ;;  %v7728_v58 = vpop.permute.xlu1 %7727 }
 0x3f3   : > { %3218 = vrot.lane.b32.xlu1 %v3187_v13, %s10889_s29  ;;  %3204 = vrot.lane.b32.xlu0 %v3180_v3, %s10889_s29  ;;  %v2926_v11 = vpop.permute.xlu0 %2925  ;;  %v7729_v9 = vunpack.i.l.bf16 %v7728_v58  ;;  %v7730_v12 = vunpack.i.h.bf16 %v7728_v58  ;;  %v7940_v3 = vld [vmem:[%s10825_s3] ss:$20 sps:$4 sm:$0xff]  }
 0x3f4   : > { %3581 = vmatprep.subr.bf16.mxu0 %v2935_v25  ;;  %v2939_v62 = vsel %vm10878_vm8, %v2924_v39, %v2926_v11  ;;  %v7943_v11 = vld [vmem:[%s10825_s3 + $0x2c] ss:$20 sps:$4 sm:$0xff]  }
 0x3f5   : > { %v2938_v0 = vsel %vm10878_vm8, %v7729_v9, %v2924_v39 }
 0x3f6   : > { %3582 = vmatpush1.bf16.msra.mxu0 %v2934_v29  ;;  %v3008_v43 = vpop.permute.xlu1 %3007 }
 0x3f7   : > { %3130 = vrot.lane.b32.xlu1 %v3097_v15, %s8387_s30  ;;  %3210 = vrot.lane.b32.xlu0 %v3183_v49, %s10889_s29  ;;  %v3006_v52 = vpop.permute.xlu0 %3005  ;;  %v7945_v49 = vld [vmem:[%s10825_s3 + $0x28] ss:$20 sps:$4 sm:$0xff]  }
 0x3f8   : > { %3583 = vmatprep.subr.bf16.mxu0 %v2937_v53  ;;  %v3029_v21 = vsel %vm10877_vm3, %v3006_v52, %v3008_v43  ;;  %v7948_v53 = vld [vmem:[%s10825_s3 + $0xc] ss:$20 sps:$4 sm:$0xff]  }
 0x3fa   : > { %3584 = vmatpush1.bf16.msra.mxu0 %v2936_v35  ;;  %v3012_v6 = vpop.permute.xlu1 %3011 }
 0x3fb   : > { %3216 = vrot.lane.b32.xlu1 %v3186_v45, %s10889_s29  ;;  %3132 = vrot.lane.b32.xlu0 %v3098_v61, %s8387_s30  ;;  %v7733_v7 = vpop.permute.xlu0 %7732 }
 0x3fc   : > { %3585 = vmatprep.subr.bf16.mxu0 %v2939_v62  ;;  %v7734_v23 = vunpack.i.l.bf16 %v7733_v7  ;;  %v7735_v30 = vunpack.i.h.bf16 %v7733_v7 }
 0x3fe   : > { %3586 = vmatpush1.bf16.msra.mxu0 %v2938_v0  ;;  %v2932_v19 = vpop.permute.xlu1 %2931  ;;  %v3028_v44 = vsel %vm10877_vm3, %v7734_v23, %v3006_v52  ;;  %v3030_v55 = vsel %vm10877_vm3, %v7735_v30, %v3012_v6 }
 0x3ff   : > { %7762 = vrot.lane.b32.xlu1 %v10970_v20, %s10885_s9  ;;  %7757 = vrot.lane.b32.xlu0 %v10970_v20, %s10889_s29  ;;  %v2930_v59 = vpop.permute.xlu0 %2929 }
 0x400   : > { %v2941_v54 = vsel %vm10878_vm8, %v2930_v59, %v2932_v19  ;;  %v2940_v57 = vsel %vm10878_vm8, %v7730_v12, %v2930_v59 }
 0x401   : > { %3587 = vmatprep.subr.bf16.mxu0 %v2941_v54 }
 0x402   : > { %3588 = vmatpush1.bf16.msra.mxu0 %v2940_v57  ;;  %v3018_v26 = vpop.permute.xlu1 %3017 }
 0x403   : > { %3284 = vrot.lane.b32.xlu1 %v9342_v27, %s10885_s9  ;;  %3278 = vrot.lane.b32.xlu0 %v9322_v36, %s10885_s9  ;;  %v3014_v1 = vpop.permute.xlu0 %3013 }
 0x404   : > { %3589 = vmatprep.subr.bf16.mxu0 %v3029_v21  ;;  %v3031_v14 = vsel %vm10877_vm3, %v3012_v6, %v3014_v1  ;;  %v9730_v1 = vld [vmem:[%s10824_s2 + $0x8] sm:$0xff]  ;;  %v9742_v21 = vld [vmem:[%s10824_s2 + $0x18] sm:$0xff] }
 0x406   : > { %3590 = vmatpush1.bf16.msra.mxu0 %v3028_v44  ;;  %v7738_v37 = vpop.permute.xlu1 %7737 }
 0x407   : > { %3222 = vrot.lane.b32.xlu1 %v3189_v4, %s10889_s29  ;;  %3276 = vrot.lane.b32.xlu0 %v9320_v24, %s10885_s9  ;;  %v3020_v5 = vpop.permute.xlu0 %3019  ;;  %v7739_v22 = vunpack.i.l.bf16 %v7738_v37  ;;  %v7740_v10 = vunpack.i.h.bf16 %v7738_v37 }
 0x408   : > { %3591 = vmatprep.subr.bf16.mxu0 %v3031_v14  ;;  %v3033_v18 = vsel %vm10877_vm3, %v3018_v26, %v3020_v5 }
 0x409   : > { %v3032_v33 = vsel %vm10877_vm3, %v7739_v22, %v3018_v26  ;;  %v9723_v26 = vld [vmem:[%s10824_s2] sm:$0xff] }
 0x40a   : > { %3592 = vmatpush1.bf16.msra.mxu0 %v3030_v55  ;;  %v3340_v39 = vpop.permute.xlu1 %3339 }
 0x40b   : > { %3290 = vrot.lane.b32.xlu1 %v9364_v40, %s10885_s9  ;;  %3224 = vrot.lane.b32.xlu0 %v3190_v63, %s10889_s29  ;;  %v9635_v17 = vpop.permute.xlu0 %3337 }
 0x40c   : > { %3593 = vmatprep.subr.bf16.mxu0 %v3033_v18  ;;  %v9657_v29 = vsel %vm10883_vm6, %v9635_v17, %v3340_v39  ;;  %vm3342_vm8 = vcmp.ne.s16.totalorder %v9635_v17, 0  ;;  %v6017_v17 = vld [vmem:[%s10824_s2 + $0x18] sm:$0xff] }
 0x40d   : > { %v3351_v61 = vsel %vm3342_vm8, %v9362_v8, 0  ;;  %v3354_v23 = vsel %vm3342_vm8, %v9381_v2, 0 }
 0x40e   : > { %3594 = vmatpush1.bf16.msra.mxu0 %v3032_v33  ;;  %v3026_v32 = vpop.permute.xlu1 %3025 }
 0x40f   : > { %3288 = vrot.lane.b32.xlu1 %v9362_v8, %s10885_s9  ;;  %3282 = vrot.lane.b32.xlu0 %v9344_v48, %s10885_s9  ;;  %v3024_v31 = vpop.permute.xlu0 %3023 }
 0x410   : > { %v3035_v58 = vsel %vm10877_vm3, %v3024_v31, %v3026_v32  ;;  %v3034_v13 = vsel %vm10877_vm3, %v7740_v10, %v3024_v31  ;;  %vm3343_vm3 = vcmp.ne.s16.totalorder %v9657_v29, 0  ;;  %v6015_v29 = vld [vmem:[%s10824_s2 + $0x8] sm:$0xff] }
 0x411   : > { %3595 = vmatprep.subr.bf16.mxu0 %v3035_v58  ;;  %v3349_v46 = vsel %vm3343_vm3, %v9342_v27, 0  ;;  %v3346_v52 = vsel %vm3343_vm3, %v9322_v36, 0  ;;  %v3355_v59 = vsel %vm3343_vm3, %v9384_v56, 0 }
 0x412   : > { %3596 = vmatpush1.bf16.msra.mxu0 %v3034_v13  ;;  %v7743_v15 = vpop.permute.xlu1 %7742 }
 0x413   : > { %3294 = vrot.lane.b32.xlu1 %v9381_v2, %s10885_s9  ;;  %7767 = vrot.lane.b32.xlu0 %v10970_v20, %s10885_s9  ;;  %v3115_v25 = vpop.permute.xlu0 %3114  ;;  %v7744_v6 = vunpack.i.l.bf16 %v7743_v15  ;;  %v7745_v45 = vunpack.i.h.bf16 %v7743_v15 }
 0x414   : > { %3618 = vmatprep.subr.bf16.mxu0 %v9322_v36  ;;  %v3352_v36 = vsel %vm3343_vm3, %v9364_v40, 0 }
 0x415   : > { %3598 = vmatmul.mubr.bf16.vlgmr.msra.gmra.mrb[8].mxu0 %v7940_v3  ;;  %v3137_v7 = vsel %vm10879_vm15, %v3115_v25, %v7744_v6 }
 0x416   : > { %3619 = vmatpush1.bf16.msra.mxu0 %v9320_v24  ;;  %3607 = vmatprep.mubr.bf16.mxu0 %v7943_v11  ;;  %v3121_v35 = vpop.permute.xlu1 %3120 }
 0x417   : > { %7772 = vrot.lane.b32.xlu1 %v10970_v20, %s10887_s16  ;;  %3296 = vrot.lane.b32.xlu0 %v9384_v56, %s10885_s9  ;;  %v3113_v43 = vpop.permute.xlu0 %3112  ;;  %v3139_v19 = vsel %vm10879_vm15, %v3121_v35, %v7745_v45 }
 0x418   : > { %3620 = vmatprep.subr.bf16.mxu0 %v9342_v27  ;;  %v3345_v27 = vsel %vm3342_vm8, %v9320_v24, 0  ;;  %v3136_v12 = vsel %vm10879_vm15, %v3113_v43, %v3115_v25 }
 0x41a   : > { %3621 = vmatpush1.bf16.msra.mxu0 %v9344_v48  ;;  %v3127_v62 = vpop.permute.xlu1 %3126 }
 0x41b   : > { %3377 = vrot.lane.b32.xlu1 %v3349_v46, %s10887_s16  ;;  %3371 = vrot.lane.b32.xlu0 %v3346_v52, %s10887_s16  ;;  %v3119_v9 = vpop.permute.xlu0 %3118 }
 0x41c   : > { %3622 = vmatprep.subr.bf16.mxu0 %v9364_v40  ;;  %v3348_v40 = vsel %vm3342_vm8, %v9344_v48, 0  ;;  %v3138_v48 = vsel %vm10879_vm15, %v3119_v9, %v3121_v35 }
 0x41d   : > { %3608 = vmatmul.mubr.bf16.gmra.mrb[12].mxu0 %v7945_v49 }
 0x41e   : > { %3623 = vmatpush1.bf16.msra.mxu0 %v9362_v8  ;;  %3650 = vmatprep.mubr.bf16.mxu0 %v7948_v53  ;;  %v3125_v8 = vpop.permute.xlu1 %3124 }
 0x41f   : > { %3383 = vrot.lane.b32.xlu1 %v3352_v36, %s10887_s16  ;;  %3369 = vrot.lane.b32.xlu0 %v3345_v27, %s10887_s16  ;;  %v7748_v24 = vpop.permute.xlu0 %7747  ;;  %v3140_v57 = vsel %vm10879_vm15, %v3125_v8, %v3127_v62 }
 0x420   : > { %3624 = vmatprep.subr.bf16.mxu0 %v9384_v56  ;;  %v7749_v0 = vunpack.i.l.bf16 %v7748_v24  ;;  %v8393_v56 = vmov 5   ;;  %v7750_v55 = vunpack.i.h.bf16 %v7748_v24 }
 0x421   : > { %7776 = vset.pattern.permute.xlu1 %v8393_v56  ;;  %7777 = vset.pattern.permute.xlu0 %v8393_v56 }
 0x422   : > { %3625 = vmatpush1.bf16.msra.mxu0 %v9381_v2  ;;  %v3141_v54 = vsel %vm10879_vm15, %v3127_v62, %v7749_v0  ;;  %v9735_v2 = vld [vmem:[%s10824_s2 + $0x10] sm:$0xff]  ;;  %v7753_v30 = vpop.permute.xlu1 %7752 }
 0x423   : > { %3381 = vrot.lane.b32.xlu1 %v3351_v61, %s10887_s16  ;;  %3375 = vrot.lane.b32.xlu0 %v3348_v40, %s10887_s16  ;;  %v7754_v39 = vunpack.i.l.bf16 %v7753_v30  ;;  %v7755_v32 = vunpack.i.h.bf16 %v7753_v30 }
 0x424   : > { %3626 = vmatprep.subr.bf16.mxu0 %v3137_v7 }
 0x426   : > { %3627 = vmatpush1.bf16.msra.mxu0 %v3136_v12 }
 0x427   : > { %3385 = vrot.lane.b32.xlu0 %v10970_v20, %s10887_s16  ;;  %3628 = vmatprep.subr.bf16.mxu0 %v3139_v19 }
 0x428   : > { %3391 = vrot.lane.b32.xlu1 %v10970_v20, %s10887_s16 }
 0x42a   : > { %3629 = vmatpush1.bf16.msra.mxu0 %v3138_v48 }
 0x42b   : > { %3389 = vrot.lane.b32.xlu0 %v3355_v59, %s10887_s16  ;;  %3630 = vmatprep.subr.bf16.mxu0 %v3141_v54 }
 0x42c   : > { %3491 = vperm.xlu1 %7776, %v9723_v26  }
 0x42e   : > { %3631 = vmatpush1.bf16.msra.mxu0 %v3140_v57 }
 0x42f   : > { %3387 = vrot.lane.b32.xlu0 %v3354_v23, %s10887_s16 }
 0x430   : > { %3501 = vperm.xlu1 %7776, %v9735_v2  }
 0x433   : > { %3496 = vperm.xlu0 %7777, %v9730_v1  }
 0x434   : > { %3506 = vperm.xlu1 %7776, %v9742_v21  }
 0x461   : > { %v3213_v44 = vpop.permute.xlu1 %3212  ;;  %v3207_v37 = vpop.permute.xlu0 %3206 }
 0x462   : > { %v3229_v31 = vsel %vm2880_vm12, %v3207_v37, %v7754_v39  ;;  %v3231_v25 = vsel %vm2880_vm12, %v3213_v44, %v7755_v32 }
 0x465   : > { %v3219_v4 = vpop.permute.xlu1 %3218  ;;  %v3205_v5 = vpop.permute.xlu0 %3204 }
 0x466   : > { %v3228_v3 = vsel %vm2880_vm12, %v3205_v5, %v3207_v37 }
 0x469   : > { %v3131_v14 = vpop.permute.xlu1 %3130  ;;  %v3211_v22 = vpop.permute.xlu0 %3210 }
 0x46a   : > { %v3230_v49 = vsel %vm2880_vm12, %v3211_v22, %v3213_v44  ;;  %v7946_v22 = vld [vmem:[%s10825_s3 + $0x8] ss:$20 sps:$4 sm:$0xff]  }
 0x46d   : > { %v3217_v63 = vpop.permute.xlu1 %3216  ;;  %v3133_v18 = vpop.permute.xlu0 %3132 }
 0x46e   : > { %v3143_v10 = vsel %vm10879_vm15, %v3133_v18, %v7750_v55  ;;  %v3142_v33 = vsel %vm10879_vm15, %v3131_v14, %v3133_v18  ;;  %v3232_v9 = vsel %vm2880_vm12, %v3217_v63, %v3219_v4  ;;  %vm3300_vm15 = vcmask 916480   ;;  %v7949_v63 = vld [vmem:[%s10825_s3 + $0x34] ss:$20 sps:$4 sm:$0xff]  }
 0x46f   : > { %3632 = vmatprep.subr.bf16.mxu0 %v3143_v10 }
 0x470   : > { %3633 = vmatpush1.bf16.msra.mxu0 %v3142_v33 }
 0x471   : > { %v7763_v58 = vpop.permute.xlu1 %7762  ;;  %v7758_v13 = vpop.permute.xlu0 %7757  ;;  %3634 = vmatprep.subr.bf16.mxu0 %v3229_v31 }
 0x472   : > { %v7759_v11 = vunpack.i.l.bf16 %v7758_v13  ;;  %v7764_v35 = vunpack.i.l.bf16 %v7763_v58  ;;  %v7760_v36 = vunpack.i.h.bf16 %v7758_v13  ;;  %v7765_v40 = vunpack.i.h.bf16 %v7763_v58 }
 0x474   : > { %3635 = vmatpush1.bf16.msra.mxu0 %v3228_v3  ;;  %v3233_v46 = vsel %vm2880_vm12, %v3219_v4, %v7759_v11  ;;  %v7951_v3 = vld [vmem:[%s10825_s3 + $0x30] ss:$20 sps:$4 sm:$0xff]  }
 0x475   : > { %v3285_v43 = vpop.permute.xlu1 %3284  ;;  %v3279_v15 = vpop.permute.xlu0 %3278  ;;  %3636 = vmatprep.subr.bf16.mxu0 %v3231_v25 }
 0x476   : > { %v3302_v24 = vsel %vm3300_vm15, %v3279_v15, %v7764_v35  ;;  %v3304_v0 = vsel %vm3300_vm15, %v3285_v43, %v7765_v40  ;;  %v7953_v35 = vld [vmem:[%s10825_s3 + $0x38] ss:$20 sps:$4 sm:$0xff]  }
 0x478   : > { %3637 = vmatpush1.bf16.msra.mxu0 %v3230_v49 }
 0x479   : > { %v3223_v52 = vpop.permute.xlu1 %3222  ;;  %v3277_v53 = vpop.permute.xlu0 %3276  ;;  %3638 = vmatprep.subr.bf16.mxu0 %v3233_v46 }
 0x47a   : > { %v3301_v12 = vsel %vm3300_vm15, %v3277_v53, %v3279_v15 }
 0x47c   : > { %3639 = vmatpush1.bf16.msra.mxu0 %v3232_v9  ;;  %v7952_v9 = vld [vmem:[%s10825_s3 + $0x10] ss:$20 sps:$4 sm:$0xff]  }
 0x47d   : > { %v3291_v27 = vpop.permute.xlu1 %3290  ;;  %v3225_v6 = vpop.permute.xlu0 %3224 }
 0x47e   : > { %v3235_v45 = vsel %vm2880_vm12, %v3225_v6, %v7760_v36  ;;  %v3234_v61 = vsel %vm2880_vm12, %v3223_v52, %v3225_v6 }
 0x47f   : > { %3640 = vmatprep.subr.bf16.mxu0 %v3235_v45 }
 0x480   : > { %3641 = vmatpush1.bf16.msra.mxu0 %v3234_v61 }
 0x481   : > { %v3289_v7 = vpop.permute.xlu1 %3288  ;;  %v3283_v62 = vpop.permute.xlu0 %3282  ;;  %3642 = vmatprep.subr.bf16.mxu0 %v3302_v24 }
 0x482   : > { %v3303_v59 = vsel %vm3300_vm15, %v3283_v62, %v3285_v43  ;;  %v3305_v30 = vsel %vm3300_vm15, %v3289_v7, %v3291_v27 }
 0x484   : > { %3643 = vmatpush1.bf16.msra.mxu0 %v3301_v12 }
 0x485   : > { %v3295_v19 = vpop.permute.xlu1 %3294  ;;  %v7768_v48 = vpop.permute.xlu0 %7767  ;;  %3644 = vmatprep.subr.bf16.mxu0 %v3304_v0 }
 0x486   : > { %v7769_v8 = vunpack.i.l.bf16 %v7768_v48  ;;  %v7770_v56 = vunpack.i.h.bf16 %v7768_v48 }
 0x488   : > { %3645 = vmatpush1.bf16.msra.mxu0 %v3303_v59  ;;  %v3306_v54 = vsel %vm3300_vm15, %v3291_v27, %v7769_v8 }
 0x489   : > { %v7773_v57 = vpop.permute.xlu1 %7772  ;;  %v3297_v23 = vpop.permute.xlu0 %3296  ;;  %3646 = vmatprep.subr.bf16.mxu0 %v3306_v54 }
 0x48a   : > { %v7774_v44 = vunpack.i.l.bf16 %v7773_v57  ;;  %v3308_v37 = vsel %vm3300_vm15, %v3297_v23, %v7770_v56  ;;  %v3307_v14 = vsel %vm3300_vm15, %v3295_v19, %v3297_v23  ;;  %v7775_v55 = vunpack.i.h.bf16 %v7773_v57 }
 0x48c   : > { %3647 = vmatpush1.bf16.msra.mxu0 %v3305_v30 }
 0x48d   : > { %v3378_v4 = vpop.permute.xlu1 %3377  ;;  %v3372_v5 = vpop.permute.xlu0 %3371  ;;  %3648 = vmatprep.subr.bf16.mxu0 %v3308_v37 }
 0x48e   : > { %v3394_v39 = vsel %vm2692_vm9, %v3372_v5, %v7774_v44  ;;  %v3396_v32 = vsel %vm2692_vm9, %v3378_v4, %v7775_v55 }
 0x490   : > { %3649 = vmatpush1.bf16.msra.mxu0 %v3307_v14 }
 0x491   : > { %v3384_v18 = vpop.permute.xlu1 %3383  ;;  %v3370_v10 = vpop.permute.xlu0 %3369  ;;  %3671 = vmatprep.subr.bf16.mxu0 %v3394_v39 }
 0x492   : > { %v3393_v33 = vsel %vm2692_vm9, %v3370_v10, %v3372_v5 }
 0x493   : > { %3651 = vmatmul.mubr.bf16.vlgmr.msra.gmra.mrb[8].mxu0 %v7946_v22 }
 0x494   : > { %3672 = vmatpush1.bf16.msra.mxu0 %v3393_v33  ;;  %3660 = vmatprep.mubr.bf16.mxu0 %v7949_v63 }
 0x495   : > { %v3376_v31 = vpop.permute.xlu0 %3375  ;;  %3673 = vmatprep.subr.bf16.mxu0 %v3396_v32  ;;  %v3382_v13 = vpop.permute.xlu1 %3381 }
 0x496   : > { %v3395_v58 = vsel %vm2692_vm9, %v3376_v31, %v3378_v4  ;;  %v3397_v43 = vsel %vm2692_vm9, %v3382_v13, %v3384_v18 }
 0x498   : > { %3674 = vmatpush1.bf16.msra.mxu0 %v3395_v58 }
 0x499   : > { %v3386_v11 = vpop.permute.xlu0 %3385 }
 0x49a   : > { %v3398_v25 = vsel %vm2692_vm9, %v3384_v18, %v3386_v11  ;;  %v3392_v15 = vpop.permute.xlu1 %3391 }
 0x49b   : > { %3675 = vmatprep.subr.bf16.mxu0 %v3398_v25  ;;  %3661 = vmatmul.mubr.bf16.gmra.mrb[12].mxu0 %v7951_v3  ;;  %v8394_v3 = vmov 3  }
 0x49c   : > { %3676 = vmatpush1.bf16.msra.mxu0 %v3397_v43  ;;  %3703 = vmatprep.mubr.bf16.mxu0 %v10970_v20 }
 0x49d   : > { %v3390_v49 = vpop.permute.xlu0 %3389  ;;  %7778 = vset.pattern.permute.xlu1 %v8394_v3  ;;  %7779 = vset.pattern.permute.xlu0 %v8394_v3 }
 0x49e   : > { %v3400_v46 = vsel %vm2692_vm9, %v3390_v49, %v3392_v15 }
 0x49f   : > { %3677 = vmatprep.subr.bf16.mxu0 %v3400_v46 }
 0x4a1   : > { %v3388_v52 = vpop.permute.xlu0 %3387 }
 0x4a2   : > { %v3399_v53 = vsel %vm2692_vm9, %v3388_v52, %v3390_v49 }
 0x4a3   : > { %3678 = vmatpush1.bf16.msra.mxu0 %v3399_v53 }
 0x4a6   : > { %6606 = vmatmul.mubr.msk.bf16.vlgmr.msra.gmra.mrb[8].mxu0 %vm594_vm0, %v7952_v9 }
 0x4a7   : > { %3713 = vmatprep.mubr.bf16.mxu0 %v10970_v20 }
 0x4ab   : > { %v3492_v36 = vpop.permute.xlu1 %3491 }
 0x4ae   : > { %6607 = vmatmul.mubr.msk.bf16.gmra.mrb[12].mxu0 %vm594_vm0, %v7953_v35 }
 0x4af   : > { %5201 = vmatprep.mubr.bf16.mxu0 %v10970_v20  ;;  %v3502_v8 = vpop.permute.xlu1 %3501 }
 0x4b2   : > { %v3497_v6 = vpop.permute.xlu0 %3496 }
 0x4b3   : > { %v3507_v5 = vpop.permute.xlu1 %3506 }
 0x579   : > { %v3705_v27 = vpop.f32.mrb[8].mxu0 }
 0x57a   : > { %v9791_v45 = vadd.f32 %v3705_v27, %v3492_v36  ;;  %v3707_v61 = vpop.f32.mrb[9].mxu0 }
 0x57b   : > { %v9793_v40 = vadd.f32 %v3707_v61, %v3492_v36  ;;  %v3709_v24 = vpop.f32.mrb[10].mxu0 }
 0x57c   : > { %v9795_v7 = vadd.f32 %v3709_v24, %v3497_v6  ;;  %v3711_v62 = vpop.f32.mrb[11].mxu0  ;;  %v3744_v12 = vmul.f32 %v9791_v45, %v9791_v45 }
 0x57d   : > { %v3745_v0 = vmul.f32 %v9793_v40, %v9793_v40  ;;  %v9801_v19 = vadd.f32 %v3711_v62, %v3497_v6  ;;  %v3728_v48 = vadd.f32 %v9793_v40, %v9791_v45 }
 0x57e   : > { %v3746_v54 = vmul.f32 %v9795_v7, %v9795_v7 }
 0x57f   : > { %3729 = vadd.xlane.f32.xlu0 %v3728_v48  ;;  %v3731_v59 = vadd.f32 %v9801_v19, %v9795_v7  ;;  %v3747_v57 = vmul.f32 %v9801_v19, %v9801_v19  ;;  %v3752_v56 = vadd.f32 %v3745_v0, %v3744_v12 }
 0x581   : > { %v3715_v23 = vpop.f32.mrb[12].mxu0  ;;  %3732 = vadd.xlane.f32.xlu1 %v3731_v59  ;;  %v3755_v55 = vadd.f32 %v3747_v57, %v3746_v54 }
 0x582   : > { %v9811_v30 = vadd.f32 %v3715_v23, %v3502_v8  ;;  %v3717_v44 = vpop.f32.mrb[13].mxu0 }
 0x583   : > { %v9813_v37 = vadd.f32 %v3717_v44, %v3502_v8  ;;  %v3719_v4 = vpop.f32.mrb[14].mxu0  ;;  %3753 = vadd.xlane.f32.xlu0 %v3752_v56 }
 0x584   : > { %v3748_v14 = vmul.f32 %v9811_v30, %v9811_v30  ;;  %v3721_v22 = vpop.f32.mrb[15].mxu0  ;;  %v9819_v63 = vadd.f32 %v3719_v4, %v3507_v5 }
 0x585   : > { %v3749_v39 = vmul.f32 %v9813_v37, %v9813_v37  ;;  %v9821_v18 = vadd.f32 %v3721_v22, %v3507_v5  ;;  %v3734_v10 = vadd.f32 %v9813_v37, %v9811_v30 }
 0x586   : > { %v3750_v33 = vmul.f32 %v9819_v63, %v9819_v63 }
 0x587   : > { %3735 = vadd.xlane.f32.xlu1 %v3734_v10  ;;  %3756 = vadd.xlane.f32.xlu0 %v3755_v55  ;;  %v3751_v32 = vmul.f32 %v9821_v18, %v9821_v18  ;;  %v3758_v31 = vadd.f32 %v3749_v39, %v3748_v14  ;;  %v3737_v58 = vadd.f32 %v9821_v18, %v9819_v63 }
 0x589   : > { %v3761_v13 = vadd.f32 %v3751_v32, %v3750_v33 }
 0x58b   : > { %3759 = vadd.xlane.f32.xlu1 %v3758_v31  ;;  %3738 = vadd.xlane.f32.xlu0 %v3737_v58  ;;  %v8395_v58 = vmov 4  }
 0x58f   : > { %3762 = vadd.xlane.f32.xlu0 %v3761_v13 }
 0x60c   : > { %v3730_v11 = vpop.xlane.xlu0 %3729 }
 0x60d   : > { %v3740_v25 = vmul.f32 0.00390625, %v3730_v11 }
 0x60e   : > { %v3733_v43 = vpop.xlane.xlu1 %3732 }
 0x60f   : > { %v9831_v49 = vmul.f32 0.00390625, %v3733_v43  ;;  %v3768_v46 = vmul.f32 %v3740_v25, %v3740_v25 }
 0x610   : > { %v3754_v15 = vpop.xlane.xlu0 %3753 }
 0x611   : > { %v3764_v52 = vmul.f32 0.00390625, %v3754_v15  ;;  %v3769_v27 = vmul.f32 %v9831_v49, %v9831_v49 }
 0x613   : > { %v3772_v53 = vsub.f32 %v3764_v52, %v3768_v46  ;;  %v3788_v52 = vsub.f32 %v9791_v45, %v3740_v25 }
 0x614   : > { %v3736_v9 = vpop.xlane.xlu1 %3735  ;;  %v3757_v35 = vpop.xlane.xlu0 %3756 }
 0x615   : > { %v3776_v36 = vmax.f32 %v3772_v53, 0.0  ;;  %v3765_v6 = vmul.f32 0.00390625, %v3757_v35  ;;  %v9835_v24 = vmul.f32 0.00390625, %v3736_v9  ;;  %v3789_v53 = vsub.f32 %v9793_v40, %v3740_v25 }
 0x617   : > { %v3780_v61 = vadd.f32 1e-06, %v3776_v36  ;;  %v3773_v62 = vsub.f32 %v3765_v6, %v3769_v27  ;;  %v3770_v54 = vmul.f32 %v9835_v24, %v9835_v24  ;;  %v3790_v27 = vsub.f32 %v9795_v7, %v9831_v49 }
 0x618   : > { %v3760_v12 = vpop.xlane.xlu1 %3759  ;;  %v3739_v0 = vpop.xlane.xlu0 %3738  ;;  %v3791_v6 = vsub.f32 %v9801_v19, %v9831_v49  ;;  %v3792_v7 = vsub.f32 %v9811_v30, %v9835_v24  ;;  %v3793_v19 = vsub.f32 %v9813_v37, %v9835_v24 }
 0x619   : > { %8076 = vrsqrt.f32 %v3780_v61  ;;  %v3777_v48 = vmax.f32 %v3773_v62, 0.0  ;;  %v3766_v8 = vmul.f32 0.00390625, %v3760_v12  ;;  %v9839_v57 = vmul.f32 0.00390625, %v3739_v0 }
 0x61b   : > { %v3781_v59 = vadd.f32 1e-06, %v3777_v48  ;;  %v3774_v56 = vsub.f32 %v3766_v8, %v3770_v54  ;;  %v3771_v4 = vmul.f32 %v9839_v57, %v9839_v57  ;;  %v3794_v30 = vsub.f32 %v9819_v63, %v9839_v57 }
 0x61c   : > { %v3763_v23 = vpop.xlane.xlu0 %3762  ;;  %v3795_v37 = vsub.f32 %v9821_v18, %v9839_v57 }
 0x61d   : > { %8078 = vrsqrt.f32 %v3781_v59  ;;  %v3767_v44 = vmul.f32 0.00390625, %v3763_v23  ;;  %v3778_v5 = vmax.f32 %v3774_v56, 0.0 }
 0x61f   : > { %v3775_v14 = vsub.f32 %v3767_v44, %v3771_v4  ;;  %v3782_v39 = vadd.f32 1e-06, %v3778_v5 }
 0x621   : > { %v3779_v10 = vmax.f32 %v3775_v14, 0.0  ;;  %8080 = vrsqrt.f32 %v3782_v39 }
 0x623   : > { %v8077_v22 = vpop.eup %8076  ;;  %v3783_v31 = vadd.f32 1e-06, %v3779_v10 }
 0x624   : > { %v3796_v55 = vmul.f32 %v8077_v22, %v9723_v26 }
 0x625   : > { %8082 = vrsqrt.f32 %v3783_v31 }
 0x626   : > { %3802 = vperm.xlu1 %7778, %v3796_v55  }
 0x627   : > { %v8079_v33 = vpop.eup %8078 }
 0x628   : > { %v3797_v32 = vmul.f32 %v8079_v33, %v9730_v1 }
 0x62a   : > { %7780 = vset.pattern.permute.xlu1 %v8395_v58  ;;  %3807 = vperm.xlu0 %7779, %v3797_v32  }
 0x62b   : > { %3830 = vperm.xlu1 %7780, %v9723_v26   ;;  %v8081_v13 = vpop.eup %8080 }
 0x62c   : > { %v3798_v11 = vmul.f32 %v8081_v13, %v9735_v2 }
 0x62e   : > { %7784 = vrot.lane.b32.xlu0 %v10970_v20, %s8388_s14 }
 0x62f   : > { %3835 = vperm.xlu1 %7780, %v9730_v1   ;;  %v8083_v43 = vpop.eup %8082 }
 0x630   : > { %v3799_v15 = vmul.f32 %v8083_v43, %v9742_v21 }
 0x633   : > { %3840 = vperm.xlu1 %7780, %v9735_v2  }
 0x637   : > { %7781 = vset.pattern.permute.xlu1 %v8394_v3 }
 0x638   : > { %3812 = vperm.xlu1 %7781, %v3798_v11  }
 0x63c   : > { %3817 = vperm.xlu1 %7781, %v3799_v15  }
 0x640   : > { %7782 = vset.pattern.permute.xlu1 %v8395_v58 }
 0x641   : > { %3845 = vperm.xlu1 %7782, %v9742_v21  }
 0x645   : > { %7789 = vrot.lane.b32.xlu1 %v10970_v20, %s8389_s4 }
 0x6a5   : > { %v3803_v46 = vpop.permute.xlu1 %3802 }
 0x6a6   : > { %v3820_v9 = vmul.f32 %v3803_v46, %v3788_v52  ;;  %v3821_v3 = vmul.f32 %v3803_v46, %v3789_v53 }
 0x6a9   : > { %v3808_v35 = vpop.permute.xlu0 %3807 }
 0x6aa   : > { %v3831_v36 = vpop.permute.xlu1 %3830  ;;  %v3822_v12 = vmul.f32 %v3808_v35, %v3790_v27  ;;  %v3823_v0 = vmul.f32 %v3808_v35, %v3791_v6 }
 0x6ab   : > { %v3848_v61 = vadd.f32 %v3831_v36, %v3820_v9  ;;  %v3849_v62 = vadd.f32 %v3831_v36, %v3821_v3 }
 0x6ad   : > { %v6608_v48 = vmul.f32 -1.442695, %v3848_v61  ;;  %v6609_v8 = vmul.f32 -1.442695, %v3849_v62 }
 0x6ae   : > { %v3836_v59 = vpop.permute.xlu1 %3835 }
 0x6af   : > { %8084 = vpow2.f32 %v6608_v48  ;;  %v3850_v45 = vadd.f32 %v3836_v59, %v3822_v12  ;;  %v3851_v40 = vadd.f32 %v3836_v59, %v3823_v0 }
 0x6b0   : > { %8086 = vpow2.f32 %v6609_v8 }
 0x6b1   : > { %v6610_v25 = vmul.f32 -1.442695, %v3850_v45  ;;  %v6611_v54 = vmul.f32 -1.442695, %v3851_v40 }
 0x6b2   : > { %v3841_v23 = vpop.permute.xlu1 %3840 }
 0x6b3   : > { %8088 = vpow2.f32 %v6610_v25 }
 0x6b4   : > { %8090 = vpow2.f32 %v6611_v54 }
 0x6b7   : > { %v3813_v49 = vpop.permute.xlu1 %3812 }
 0x6b8   : > { %v3824_v56 = vmul.f32 %v3813_v49, %v3792_v7  ;;  %v3825_v44 = vmul.f32 %v3813_v49, %v3793_v19 }
 0x6b9   : > { %v8085_v4 = vpop.eup %8084 }
 0x6ba   : > { %v8087_v5 = vpop.eup %8086  ;;  %v3880_v14 = vadd.f32 1.0, %v8085_v4  ;;  %v3852_v22 = vadd.f32 %v3841_v23, %v3824_v56  ;;  %v3853_v55 = vadd.f32 %v3841_v23, %v3825_v44 }
 0x6bb   : > { %v3881_v39 = vadd.f32 1.0, %v8087_v5  ;;  %v3818_v10 = vpop.permute.xlu1 %3817 }
 0x6bc   : > { %8092 = vrcp.f32 %v3880_v14  ;;  %v6612_v33 = vmul.f32 -1.442695, %v3852_v22  ;;  %v6613_v32 = vmul.f32 -1.442695, %v3853_v55  ;;  %v3826_v11 = vmul.f32 %v3818_v10, %v3794_v30 }
 0x6bd   : > { %v8089_v31 = vpop.eup %8088  ;;  %8094 = vrcp.f32 %v3881_v39  ;;  %v3827_v43 = vmul.f32 %v3818_v10, %v3795_v37 }
 0x6be   : > { %v8091_v24 = vpop.eup %8090  ;;  %v3882_v58 = vadd.f32 1.0, %v8089_v31  ;;  %8096 = vpow2.f32 %v6612_v33 }
 0x6bf   : > { %v3883_v13 = vadd.f32 1.0, %v8091_v24  ;;  %8098 = vpow2.f32 %v6613_v32 }
 0x6c0   : > { %8100 = vrcp.f32 %v3882_v58  ;;  %v3846_v15 = vpop.permute.xlu1 %3845 }
 0x6c1   : > { %8102 = vrcp.f32 %v3883_v13  ;;  %v3854_v46 = vadd.f32 %v3846_v15, %v3826_v11  ;;  %v3855_v52 = vadd.f32 %v3846_v15, %v3827_v43 }
 0x6c3   : > { %v6614_v53 = vmul.f32 -1.442695, %v3854_v46  ;;  %v6615_v9 = vmul.f32 -1.442695, %v3855_v52 }
 0x6c5   : > { %8104 = vpow2.f32 %v6614_v53 }
 0x6c6   : > { %v8093_v3 = vpop.eup %8092  ;;  %8106 = vpow2.f32 %v6615_v9 }
 0x6c7   : > { %v8095_v63 = vpop.eup %8094  ;;  %v3904_v27 = vmul.f32 %v8093_v3, %v3848_v61  ;;  %v7956_v3 = vld [vmem:[#allocation10 + $0x64] ss:$12 sps:$4 sm:$0xff]  }
 0x6c8   : > { %v8097_v35 = vpop.eup %8096  ;;  %v3905_v12 = vmul.f32 %v8095_v63, %v3849_v62  ;;  %4381 = vmatprep.mubr.bf16.mxu1 %v7956_v3 }
 0x6c9   : > { %v8099_v18 = vpop.eup %8098  ;;  %v3884_v48 = vadd.f32 1.0, %v8097_v35 }
 0x6ca   : > { %v8101_v57 = vpop.eup %8100  ;;  %v3885_v59 = vadd.f32 1.0, %v8099_v18 }
 0x6cb   : > { %v8103_v36 = vpop.eup %8102  ;;  %v3906_v6 = vmul.f32 %v8101_v57, %v3850_v45  ;;  %8108 = vrcp.f32 %v3884_v48 }
 0x6cc   : > { %v3907_v0 = vmul.f32 %v8103_v36, %v3851_v40  ;;  %8110 = vrcp.f32 %v3885_v59  ;;  %v7785_v59 = vpop.permute.xlu0 %7784 }
 0x6cd   : > { %v9869_v8 = vpack.c.bf16 %v3906_v6, %v3904_v27  ;;  %v7790_v27 = vpop.permute.xlu1 %7789  ;;  %v8396_v6 = vmov 6  }
 0x6ce   : > { %v9871_v25 = vpack.c.bf16 %v3907_v0, %v3905_v12  ;;  %7814 = vset.pattern.permute.xlu1 %v8396_v6  ;;  %7813 = vset.pattern.permute.xlu0 %v8396_v6  ;;  %v8397_v0 = vmov 7  }
 0x6cf   : > { %v8105_v54 = vpop.eup %8104  ;;  %3984 = vrot.lane.b32.xlu1 %v9869_v8, %s8389_s4  ;;  %v3935_v62 = vsel %vm2695_vm10, %v9869_v8, 0  ;;  %v4104_v15 = vsel %vm3085_vm5, %v9869_v8, 0  ;;  %v4224_v57 = vsel %vm3342_vm8, %v9869_v8, 0 }
 0x6d0   : > { %v8107_v23 = vpop.eup %8106  ;;  %v3886_v7 = vadd.f32 1.0, %v8105_v54  ;;  %3986 = vrot.lane.b32.xlu0 %v9871_v25, %s8389_s4  ;;  %v3936_v45 = vsel %vm10880_vm11, %v9871_v25, 0  ;;  %v4105_v11 = vsel %vm3086_vm4, %v9871_v25, 0  ;;  %v4147_v43 = vsel %vm3178_vm1, %v9871_v25, 0 }
 0x6d1   : > { %v3887_v61 = vadd.f32 1.0, %v8107_v23  ;;  %v4225_v35 = vsel %vm3343_vm3, %v9871_v25, 0  ;;  %v7786_v54 = vunpack.i.l.bf16 %v7785_v59 }
 0x6d2   : > { %8112 = vrcp.f32 %v3886_v7 }
 0x6d3   : > { %8114 = vrcp.f32 %v3887_v61  ;;  %3948 = vrot.lane.b32.xlu1 %v3935_v62, %s8388_s14 }
 0x6d5   : > { %v8109_v40 = vpop.eup %8108 }
 0x6d6   : > { %v8111_v19 = vpop.eup %8110  ;;  %v3908_v44 = vmul.f32 %v8109_v40, %v3852_v22  ;;  %v4014_v22 = vsel %vm10882_vm13, %v9871_v25, 0 }
 0x6d7   : > { %3950 = vrot.lane.b32.xlu1 %v3936_v45, %s8388_s14  ;;  %v3909_v5 = vmul.f32 %v8111_v19, %v3853_v55  ;;  %v4013_v55 = vsel %vm10881_vm14, %v9869_v8, 0  ;;  %v7791_v19 = vunpack.i.l.bf16 %v7790_v27 }
 0x6dc   : > { %v8113_v49 = vpop.eup %8112 }
 0x6dd   : > { %v8115_v56 = vpop.eup %8114  ;;  %v3910_v4 = vmul.f32 %v8113_v49, %v3854_v46 }
 0x6de   : > { %v3911_v14 = vmul.f32 %v8115_v56, %v3855_v52  ;;  %v4146_v52 = vsel %vm3177_vm2, %v9869_v8, 0 }
 0x6df   : > { %v9885_v39 = vpack.c.bf16 %v3910_v4, %v3908_v44 }
 0x6e0   : > { %v9887_v10 = vpack.c.bf16 %v3911_v14, %v3909_v5  ;;  %v7792_v14 = vunpack.i.h.bf16 %v7790_v27 }
 0x6e1   : > { %v3938_v33 = vsel %vm2695_vm10, %v9885_v39, 0  ;;  %v4016_v30 = vsel %vm10881_vm14, %v9885_v39, 0  ;;  %v4107_v53 = vsel %vm3085_vm5, %v9885_v39, 0  ;;  %v4149_v9 = vsel %vm3177_vm2, %v9885_v39, 0 }
 0x6e2   : > { %v3939_v32 = vsel %vm10880_vm11, %v9887_v10, 0  ;;  %3954 = vrot.lane.b32.xlu1 %v3938_v33, %s8388_s14  ;;  %vm10977_vm11 = vcmp.ne.s16.totalorder %v9436_v16, 0  ;;  %v4017_v37 = vsel %vm10882_vm13, %v9887_v10, 0  ;;  %vm10980_vm13 = vcmp.ne.s16.totalorder %v9436_v16, 0 }
 0x6e3   : > { %3956 = vrot.lane.b32.xlu0 %v3939_v32, %s8388_s14  ;;  %v4055_v31 = vsel %vm10977_vm11, %v9869_v8, 0  ;;  %vm10978_vm11 = vcmp.ne.s16.totalorder %v9424_v50, 0  ;;  %v4058_v13 = vsel %vm10980_vm13, %v9885_v39, 0  ;;  %v4108_v46 = vsel %vm3086_vm4, %v9887_v10, 0 }
 0x6e4   : > { %v4056_v24 = vsel %vm10978_vm11, %v9871_v25, 0  ;;  %vm10979_vm14 = vmmov %vm10978_vm11  ;;  %v4150_v63 = vsel %vm3178_vm1, %v9887_v10, 0  ;;  %v4228_v18 = vsel %vm3343_vm3, %v9887_v10, 0  ;;  %v4227_v36 = vsel %vm3342_vm8, %v9885_v39, 0 }
 0x6e5   : > { %v4059_v58 = vsel %vm10979_vm14, %v9887_v10, 0  ;;  %vm10981_vm13 = vcmask 121856  }
 0x6e6   : > { %3992 = vrot.lane.b32.xlu1 %v9887_v10, %s8389_s4  ;;  %vm10982_vm14 = vmmov %vm10981_vm13 }
 0x6e7   : > { %3990 = vrot.lane.b32.xlu0 %v9885_v39, %s8389_s4  ;;  %vm10983_vm11 = vmmov %vm10981_vm13 }
 0x6ea   : > { %4028 = vrot.lane.b32.xlu1 %v4014_v22, %s8391_s0 }
 0x6eb   : > { %4026 = vrot.lane.b32.xlu0 %v4013_v55, %s8391_s0 }
 0x6ee   : > { %4068 = vrot.lane.b32.xlu1 %v4055_v31, %s8390_s19 }
 0x6ef   : > { %7794 = vrot.lane.b32.xlu0 %v10970_v20, %s8391_s0 }
 0x6f2   : > { %4032 = vrot.lane.b32.xlu1 %v4016_v30, %s8391_s0 }
 0x6f3   : > { %4034 = vrot.lane.b32.xlu0 %v4017_v37, %s8391_s0 }
 0x6f6   : > { %7799 = vrot.lane.b32.xlu1 %v10970_v20, %s8390_s19 }
 0x6f7   : > { %4070 = vrot.lane.b32.xlu0 %v4056_v24, %s8390_s19 }
 0x6fa   : > { %4076 = vrot.lane.b32.xlu1 %v4059_v58, %s8390_s19 }
 0x6fb   : > { %4074 = vrot.lane.b32.xlu0 %v4058_v13, %s8390_s19 }
 0x6fe   : > { %7804 = vrot.lane.b32.xlu1 %v10970_v20, %s8387_s30 }
 0x6ff   : > { %4118 = vrot.lane.b32.xlu0 %v4105_v11, %s8387_s30 }
 0x702   : > { %4160 = vrot.lane.b32.xlu1 %v4147_v43, %s10889_s29 }
 0x703   : > { %4116 = vrot.lane.b32.xlu0 %v4104_v15, %s8387_s30 }
 0x706   : > { %4124 = vrot.lane.b32.xlu1 %v4108_v46, %s8387_s30 }
 0x707   : > { %7809 = vrot.lane.b32.xlu0 %v10970_v20, %s10889_s29 }
 0x70a   : > { %4158 = vrot.lane.b32.xlu1 %v4146_v52, %s10889_s29 }
 0x70b   : > { %4122 = vrot.lane.b32.xlu0 %v4107_v53, %s8387_s30 }
 0x70e   : > { %4198 = vrot.lane.b32.xlu1 %v10970_v20, %s10885_s9 }
 0x70f   : > { %4196 = vrot.lane.b32.xlu0 %v9871_v25, %s10885_s9 }
 0x712   : > { %4164 = vrot.lane.b32.xlu1 %v4149_v9, %s10889_s29 }
 0x713   : > { %4166 = vrot.lane.b32.xlu0 %v4150_v63, %s10889_s29 }
 0x716   : > { %4202 = vrot.lane.b32.xlu1 %v9887_v10, %s10885_s9 }
 0x717   : > { %4194 = vrot.lane.b32.xlu0 %v9869_v8, %s10885_s9 }
 0x71a   : > { %4200 = vrot.lane.b32.xlu1 %v9885_v39, %s10885_s9 }
 0x71b   : > { %4204 = vrot.lane.b32.xlu0 %v10970_v20, %s10885_s9 }
 0x71e   : > { %4240 = vrot.lane.b32.xlu1 %v10970_v20, %s10887_s16 }
 0x71f   : > { %4238 = vrot.lane.b32.xlu0 %v4225_v35, %s10887_s16 }
 0x722   : > { %4244 = vrot.lane.b32.xlu1 %v4228_v18, %s10887_s16 }
 0x723   : > { %4236 = vrot.lane.b32.xlu0 %v4224_v57, %s10887_s16 }
 0x726   : > { %4242 = vrot.lane.b32.xlu1 %v4227_v36, %s10887_s16 }
 0x727   : > { %4246 = vrot.lane.b32.xlu0 %v10970_v20, %s10887_s16 }
 0x72a   : > { %4301 = vperm.xlu1 %7814, %v9730_v1  }
 0x72b   : > { %4297 = vperm.xlu0 %7813, %v9723_v26  }
 0x72e   : > { %7815 = vset.pattern.permute.xlu1 %v8397_v0 }
 0x72f   : > { %7816 = vset.pattern.permute.xlu0 %v8397_v0  ;;  %4489 = vperm.xlu1 %7815, %v9723_v26  }
 0x730   : > { %4494 = vperm.xlu0 %7816, %v9730_v1   ;;  %v7787_v1 = vunpack.i.h.bf16 %v7785_v59 }
 0x733   : > { %7817 = vset.pattern.permute.xlu1 %v8396_v6 }
 0x734   : > { %4499 = vperm.xlu0 %7816, %v9735_v2   ;;  %4305 = vperm.xlu1 %7817, %v9735_v2  }
 0x738   : > { %4309 = vperm.xlu1 %7817, %v9742_v21   ;;  %7820 = vrot.lane.b32.xlu0 %v10970_v20, %s8388_s14 }
 0x73c   : > { %7818 = vset.pattern.permute.xlu1 %v8397_v0 }
 0x73d   : > { %4504 = vperm.xlu1 %7818, %v9742_v21  }
 0x741   : > { %v3985_v12 = vpop.permute.xlu1 %3984  ;;  %7825 = vrot.lane.b32.xlu1 %v10970_v20, %s8389_s4 }
 0x742   : > { %v3987_v26 = vpop.permute.xlu0 %3986  ;;  %v3994_v4 = vsel %vm10884_vm7, %v7791_v19, %v3985_v12 }
 0x743   : > { %v3995_v56 = vsel %vm10884_vm7, %v3985_v12, %v3987_v26 }
 0x745   : > { %v3949_v48 = vpop.permute.xlu1 %3948 }
 0x746   : > { %v3958_v61 = vsel %vm10883_vm6, %v7786_v54, %v3949_v48 }
 0x749   : > { %v3951_v23 = vpop.permute.xlu1 %3950 }
 0x74a   : > { %v3959_v7 = vsel %vm10883_vm6, %v3949_v48, %v3951_v23 }
 0x74b   : > { %4349 = vmatprep.subr.bf16.mxu1 %v3959_v7 }
 0x74c   : > { %4350 = vmatpush1.bf16.msra.mxu1 %v3958_v61 }
 0x754   : > { %v3955_v62 = vpop.permute.xlu1 %3954 }
 0x755   : > { %v3957_v45 = vpop.permute.xlu0 %3956  ;;  %v3960_v40 = vsel %vm10883_vm6, %v7787_v1, %v3955_v62 }
 0x756   : > { %v3961_v2 = vsel %vm10883_vm6, %v3955_v62, %v3957_v45  ;;  %vm10984_vm6 = vmmov %vm10983_vm11 }
 0x757   : > { %4351 = vmatprep.subr.bf16.mxu1 %v3961_v2 }
 0x758   : > { %4352 = vmatpush1.bf16.msra.mxu1 %v3960_v40  ;;  %v3993_v49 = vpop.permute.xlu1 %3992 }
 0x759   : > { %v3991_v44 = vpop.permute.xlu0 %3990  ;;  %4353 = vmatprep.subr.bf16.mxu1 %v3995_v56 }
 0x75a   : > { %v3997_v21 = vsel %vm10884_vm7, %v3991_v44, %v3993_v49  ;;  %v3996_v32 = vsel %vm10884_vm7, %v7792_v14, %v3991_v44  ;;  %vm10985_vm7 = vcmask 7168  }
 0x75c   : > { %4354 = vmatpush1.bf16.msra.mxu1 %v3994_v4  ;;  %v4029_v5 = vpop.permute.xlu1 %4028 }
 0x75d   : > { %v4027_v33 = vpop.permute.xlu0 %4026  ;;  %4355 = vmatprep.subr.bf16.mxu1 %v3997_v21 }
 0x75e   : > { %v4037_v55 = vsel %vm10981_vm13, %v4027_v33, %v4029_v5  ;;  %vm10986_vm13 = vmmov %vm10985_vm7 }
 0x760   : > { %4356 = vmatpush1.bf16.msra.mxu1 %v3996_v32  ;;  %v4069_v22 = vpop.permute.xlu1 %4068 }
 0x761   : > { %v7795_v31 = vpop.permute.xlu0 %7794  ;;  %4357 = vmatprep.subr.bf16.mxu1 %v4037_v55 }
 0x762   : > { %v7796_v30 = vunpack.i.l.bf16 %v7795_v31  ;;  %v7797_v13 = vunpack.i.h.bf16 %v7795_v31  ;;  %v7954_v31 = vld [vmem:[#allocation10 + $0x60] ss:$12 sps:$4 sm:$0xff]  }
 0x764   : > { %v4033_v37 = vpop.permute.xlu1 %4032  ;;  %v4036_v24 = vsel %vm10982_vm14, %v7796_v30, %v4027_v33  ;;  %vm10987_vm14 = vmmov %vm10985_vm7 }
 0x765   : > { %v4035_v58 = vpop.permute.xlu0 %4034  ;;  %4358 = vmatpush1.bf16.msra.mxu1 %v4036_v24  ;;  %v4038_v15 = vsel %vm10984_vm6, %v7797_v13, %v4033_v37  ;;  %vm10989_vm6 = vcmask 1039360  }
 0x766   : > { %v4039_v11 = vsel %vm10983_vm11, %v4033_v37, %v4035_v58  ;;  %vm10988_vm11 = vmmov %vm10985_vm7  ;;  %v7957_v37 = vld [vmem:[#allocation10 + $0x7c] ss:$12 sps:$4 sm:$0xff]  }
 0x767   : > { %4359 = vmatprep.subr.bf16.mxu1 %v4039_v11 }
 0x768   : > { %v7800_v43 = vpop.permute.xlu1 %7799 }
 0x769   : > { %v7801_v46 = vunpack.i.l.bf16 %v7800_v43  ;;  %v4071_v52 = vpop.permute.xlu0 %4070  ;;  %4360 = vmatpush1.bf16.msra.mxu1 %v4038_v15  ;;  %v7802_v35 = vunpack.i.h.bf16 %v7800_v43  ;;  %v7959_v15 = vld [vmem:[#allocation10 + $0x78] ss:$12 sps:$4 sm:$0xff]  }
 0x76a   : > { %v4079_v53 = vsel %vm10985_vm7, %v4069_v22, %v4071_v52  ;;  %vm10990_vm7 = vmmov %vm10989_vm6 }
 0x76b   : > { %4361 = vmatprep.subr.bf16.mxu1 %v4079_v53  ;;  %v4078_v9 = vsel %vm10986_vm13, %v7801_v46, %v4069_v22  ;;  %vm10991_vm13 = vmmov %vm10989_vm6 }
 0x76c   : > { %v4077_v3 = vpop.permute.xlu1 %4076 }
 0x76d   : > { %v4075_v63 = vpop.permute.xlu0 %4074  ;;  %4362 = vmatpush1.bf16.msra.mxu1 %v4078_v9  ;;  %v8132_v9 = vld [vmem:[%s8698_s27 + $0x8] sm:$0xff] }
 0x76e   : > { %v4081_v18 = vsel %vm10987_vm14, %v4075_v63, %v4077_v3  ;;  %v4080_v36 = vsel %vm10988_vm11, %v7802_v35, %v4075_v63  ;;  %vm10992_vm14 = vmmov %vm10989_vm6  ;;  %v8133_v3 = vld [vmem:[%s8698_s27 + $0x18] sm:$0xff]  ;;  %v7960_v35 = vld [vmem:[#allocation10 + $0x68] ss:$12 sps:$4 sm:$0xff]   ;;  %vm10891_vm11 = vcmask 261120  }
 0x76f   : > { %4363 = vmatprep.subr.bf16.mxu1 %v4081_v18  ;;  %v4476_v63 = vpack.c.bf16 %v8133_v3, %v8132_v9  ;;  %v8134_v18 = vld [vmem:[%s8698_s27] sm:$0xff] }
 0x770   : > { %v7805_v57 = vpop.permute.xlu1 %7804 }
 0x771   : > { %v4119_v27 = vpop.permute.xlu0 %4118  ;;  %4364 = vmatpush1.bf16.msra.mxu1 %v4080_v36  ;;  %v7806_v12 = vunpack.i.l.bf16 %v7805_v57  ;;  %v7807_v23 = vunpack.i.h.bf16 %v7805_v57  ;;  %v8135_v57 = vld [vmem:[%s8698_s27 + $0x10] sm:$0xff] }
 0x772   : > { %4365 = vmatprep.subr.bf16.mxu1 %v9871_v25  ;;  %v4475_v36 = vpack.c.bf16 %v8135_v57, %v8134_v18 }
 0x773   : > { %v4129_v54 = vsel %vm10989_vm6, %v4119_v27, %v7806_v12  ;;  %vm10994_vm6 = vcmp.ne.s16.totalorder %v9386_v42, 0 }
 0x774   : > { %v4161_v6 = vpop.permute.xlu1 %4160 }
 0x775   : > { %v4117_v0 = vpop.permute.xlu0 %4116  ;;  %4366 = vmatpush1.bf16.msra.mxu1 %v9869_v8 }
 0x776   : > { %4367 = vmatprep.subr.bf16.mxu1 %v9887_v10  ;;  %v4128_v7 = vsel %vm10990_vm7, %v4117_v0, %v4119_v27  ;;  %v8136_v27 = vld [vmem:[%s8698_s27 + $0x38] sm:$0xff]  ;;  %v8138_v0 = vld [vmem:[%s8698_s27 + $0x30] sm:$0xff]  ;;  %vm10995_vm7 = vcmp.ne.s16.totalorder %v9394_v41, 0 }
 0x778   : > { %v4125_v48 = vpop.permute.xlu1 %4124 }
 0x779   : > { %v7810_v59 = vpop.permute.xlu0 %7809  ;;  %4368 = vmatpush1.bf16.msra.mxu1 %v9885_v39  ;;  %v4131_v1 = vsel %vm10991_vm13, %v4125_v48, %v7807_v23  ;;  %v8141_v23 = vld [vmem:[%s8706_s21 + $0x8] sm:$0xff] }
 0x77a   : > { %4369 = vmatprep.subr.bf16.mxu1 %v4129_v54  ;;  %v7811_v26 = vunpack.i.l.bf16 %v7810_v59  ;;  %v7812_v45 = vunpack.i.h.bf16 %v7810_v59  ;;  %v8140_v54 = vld [vmem:[%s8706_s21 + $0x18] sm:$0xff] }
 0x77c   : > { %v4159_v61 = vpop.permute.xlu1 %4158  ;;  %v4171_v39 = vsel %vm2880_vm12, %v4161_v6, %v7811_v26  ;;  %v8142_v26 = vld [vmem:[%s8706_s21 + $0x10] sm:$0xff] }
 0x77d   : > { %v4123_v25 = vpop.permute.xlu0 %4122  ;;  %4370 = vmatpush1.bf16.msra.mxu1 %v4128_v7  ;;  %v4170_v40 = vsel %vm2880_vm12, %v4159_v61, %v4161_v6  ;;  %v8137_v6 = vld [vmem:[%s8698_s27 + $0x28] sm:$0xff]  ;;  %v4480_v7 = vpack.c.bf16 %v8140_v54, %v8141_v23 }
 0x77e   : > { %4371 = vmatprep.subr.bf16.mxu1 %v4131_v1  ;;  %v4130_v8 = vsel %vm10992_vm14, %v4123_v25, %v4125_v48  ;;  %v4478_v12 = vpack.c.bf16 %v8136_v27, %v8137_v6  ;;  %v8139_v48 = vld [vmem:[%s8698_s27 + $0x20] sm:$0xff]  ;;  %vm10997_vm14 = vmmov %vm10995_vm7  ;;  %s10757_s27 = scalar_lea.vmem [#allocation14], %s8694_s25  ;;  %s6667_s25 = sshll.u32 %s8474_s13, 10 }
 0x77f   : > { %v4477_v59 = vpack.c.bf16 %v8138_v0, %v8139_v48  ;;  %v7961_v61 = vld [vmem:[#allocation10 + $0x80] ss:$12 sps:$4 sm:$0xff]   ;;  %s6423_s13 = scalar_lea.sflag [#allocation7], %s8691_s6 }
 0x780   : > { %v4199_v10 = vpop.permute.xlu1 %4198  ;;  %v8143_v25 = vld [vmem:[%s8706_s21] sm:$0xff] }
 0x781   : > { %v4197_v62 = vpop.permute.xlu0 %4196  ;;  %4372 = vmatpush1.bf16.msra.mxu1 %v4130_v8  ;;  %v4479_v1 = vpack.c.bf16 %v8142_v26, %v8143_v25  ;;  %v8144_v8 = vld [vmem:[%s8706_s21 + $0x38] sm:$0xff] }
 0x782   : > { %4373 = vmatprep.subr.bf16.mxu1 %v4171_v39  ;;  %v4207_v5 = vsel %vm3300_vm15, %v4197_v62, %v4199_v10  ;;  %v8145_v10 = vld [vmem:[%s8706_s21 + $0x28] sm:$0xff]  ;;  %v8146_v39 = vld [vmem:[%s8706_s21 + $0x30] sm:$0xff] }
 0x784   : > { %v4165_v2 = vpop.permute.xlu1 %4164 }
 0x785   : > { %v4167_v19 = vpop.permute.xlu0 %4166  ;;  %4374 = vmatpush1.bf16.msra.mxu1 %v4170_v40 }
 0x786   : > { %v4173_v49 = vsel %vm2880_vm12, %v4167_v19, %v7812_v45  ;;  %v4172_v44 = vsel %vm2880_vm12, %v4165_v2, %v4167_v19  ;;  %v8147_v45 = vld [vmem:[%s8706_s21 + $0x20] sm:$0xff]  ;;  %v7963_v19 = vld [vmem:[%s10827_s5 + $0x8] sm:$0xff]  }
 0x787   : > { %4375 = vmatprep.subr.bf16.mxu1 %v4173_v49  ;;  %v4481_v40 = vpack.c.bf16 %v8146_v39, %v8147_v45  ;;  %v7962_v2 = vld [vmem:[%s10827_s5] sm:$0xff]  }
 0x788   : > { %v4203_v56 = vpop.permute.xlu1 %4202 }
 0x789   : > { %v4195_v4 = vpop.permute.xlu0 %4194  ;;  %4376 = vmatpush1.bf16.msra.mxu1 %v4172_v44 }
 0x78a   : > { %4377 = vmatprep.subr.bf16.mxu1 %v4207_v5  ;;  %v4206_v21 = vsel %vm3300_vm15, %v4195_v4, %v4197_v62  ;;  %v4482_v62 = vpack.c.bf16 %v8144_v8, %v8145_v10 }
 0x78c   : > { %v4201_v14 = vpop.permute.xlu1 %4200 }
 0x78d   : > { %v4205_v33 = vpop.permute.xlu0 %4204  ;;  %4378 = vmatpush1.bf16.msra.mxu1 %v4206_v21  ;;  %v4208_v22 = vsel %vm3300_vm15, %v4201_v14, %v4203_v56 }
 0x78e   : > { %v4209_v32 = vsel %vm3300_vm15, %v4203_v56, %v4205_v33 }
 0x78f   : > { %4379 = vmatprep.subr.bf16.mxu1 %v4209_v32 }
 0x790   : > { %v4241_v55 = vpop.permute.xlu1 %4240 }
 0x791   : > { %v4239_v30 = vpop.permute.xlu0 %4238  ;;  %4380 = vmatpush1.bf16.msra.mxu1 %v4208_v22 }
 0x792   : > { %v4249_v24 = vsel %vm2692_vm9, %v4239_v30, %v4241_v55 }
 0x793   : > { %4402 = vmatprep.subr.bf16.mxu1 %v4249_v24 }
 0x794   : > { %4382 = vmatmul.mubr.bf16.vlgmr.msra.gmra.mrb[8].mxu1 %v7954_v31  ;;  %v4245_v58 = vpop.permute.xlu1 %4244 }
 0x795   : > { %v4237_v13 = vpop.permute.xlu0 %4236  ;;  %4391 = vmatprep.mubr.bf16.mxu1 %v7957_v37 }
 0x796   : > { %v4248_v11 = vsel %vm2692_vm9, %v4237_v13, %v4239_v30 }
 0x797   : > { %4403 = vmatpush1.bf16.msra.mxu1 %v4248_v11 }
 0x798   : > { %v4243_v43 = vpop.permute.xlu1 %4242 }
 0x799   : > { %v4247_v46 = vpop.permute.xlu0 %4246  ;;  %v4250_v52 = vsel %vm2692_vm9, %v4243_v43, %v4245_v58 }
 0x79a   : > { %v4251_v53 = vsel %vm2692_vm9, %v4245_v58, %v4247_v46 }
 0x79b   : > { %4404 = vmatprep.subr.bf16.mxu1 %v4251_v53 }
 0x79c   : > { %4392 = vmatmul.mubr.bf16.gmra.mrb[12].mxu1 %v7959_v15 }
 0x79d   : > { %4405 = vmatpush1.bf16.msra.mxu1 %v4250_v52  ;;  %4434 = vmatprep.mubr.bf16.mxu1 %v10970_v20 }
 0x79e   : > { %4523 = vmatprep.subr.bf16.mxu1 %v4476_v63 }
 0x7a4   : > { %6622 = vmatmul.mubr.msk.bf16.vlgmr.msra.gmra.mrb[8].mxu1 %vm10891_vm11, %v7960_v35 }
 0x7a5   : > { %4524 = vmatpush1.bf16.msra.mxu1 %v4475_v36  ;;  %4444 = vmatprep.mubr.bf16.mxu1 %v10970_v20 }
 0x7a6   : > { %4525 = vmatprep.subr.bf16.mxu1 %v4478_v12 }
 0x7a9   : > { %4526 = vmatpush1.bf16.msra.mxu1 %v4477_v59  ;;  %v4302_v49 = vpop.permute.xlu1 %4301 }
 0x7aa   : > { %4527 = vmatprep.subr.bf16.mxu1 %v4480_v7  ;;  %v4298_v44 = vpop.permute.xlu0 %4297 }
 0x7ac   : > { %6623 = vmatmul.mubr.msk.bf16.gmra.mrb[12].mxu1 %vm10891_vm11, %v7961_v61 }
 0x7ad   : > { %4528 = vmatpush1.bf16.msra.mxu1 %v4479_v1  ;;  %4555 = vmatprep.mubr.bf16.mxu1 %v10970_v20 }
 0x7ae   : > { %4529 = vmatprep.subr.bf16.mxu1 %v4482_v62  ;;  %v4490_v56 = vpop.permute.xlu1 %4489 }
 0x7af   : > { %v4495_v5 = vpop.permute.xlu0 %4494  ;;  %v7396_v33 = vadd.f32 %v4490_v56, %v4298_v44 }
 0x7b0   : > { %v7400_v32 = vadd.f32 %v4495_v5, %v4302_v49 }
 0x7b1   : > { %4530 = vmatpush1.bf16.msra.mxu1 %v4481_v40 }
 0x7b3   : > { %v4306_v4 = vpop.permute.xlu1 %4305  ;;  %v4500_v11 = vpop.permute.xlu0 %4499 }
 0x7b4   : > { %6626 = vmatmul.mubr.msk.bf16.vlgmr.msra.gmra.mrb[8].mxu1 %vm594_vm0, %v7962_v2  ;;  %v7404_v53 = vadd.f32 %v4500_v11, %v4306_v4  ;;  %v7966_v4 = vld [vmem:[#allocation10 + $0x4] ss:$12 sps:$4 sm:$0xff]  }
 0x7b5   : > { %4565 = vmatprep.mubr.bf16.mxu1 %v10970_v20 }
 0x7b7   : > { %v4310_v21 = vpop.permute.xlu1 %4309  ;;  %v7821_v11 = vpop.permute.xlu0 %7820 }
 0x7bc   : > { %6627 = vmatmul.mubr.msk.bf16.gmra.mrb[12].mxu1 %vm594_vm0, %v7963_v19  ;;  %v4505_v15 = vpop.permute.xlu1 %4504  ;;  %vm10993_vm0 = vcmp.ne.s16.totalorder %v9312_v38, 0 }
 0x7bd   : > { %v7408_v9 = vadd.f32 %v4505_v15, %v4310_v21  ;;  %vm10996_vm13 = vmmov %vm10993_vm0  ;;  %5128 = vmatprep.mubr.bf16.mxu1 %v7966_v4 }
 0x887   : > { %v4557_v14 = vpop.f32.mrb[8].mxu1 }
 0x888   : > { %v4559_v22 = vpop.f32.mrb[9].mxu1  ;;  %v7397_v31 = vadd.f32 %v7396_v33, %v4557_v14  ;;  %v4600_v14 = vld [vmem:[%s10824_s2] sm:$0xff] }
 0x889   : > { %v4561_v55 = vpop.f32.mrb[10].mxu1  ;;  %v7399_v24 = vadd.f32 %v7396_v33, %v4559_v22  ;;  %v8398_v33 = vmov 2   ;;  %v4604_v22 = vld [vmem:[%s10824_s2 + $0x20] sm:$0xff] }
 0x88a   : > { %v7401_v30 = vadd.f32 %v7400_v32, %v4561_v55  ;;  %v4563_v37 = vpop.f32.mrb[11].mxu1  ;;  %7854 = vset.pattern.permute.xlu1 %v8398_v33  ;;  %7855 = vset.pattern.permute.xlu0 %v8398_v33  ;;  %v4602_v55 = vld [vmem:[%s10824_s2 + $0x10] sm:$0xff] }
 0x88b   : > { %v7403_v58 = vadd.f32 %v7400_v32, %v4563_v37  ;;  %v4601_v32 = vld [vmem:[%s10824_s2 + $0x8] sm:$0xff]  ;;  %v4603_v37 = vld [vmem:[%s10824_s2 + $0x18] sm:$0xff] }
 0x88c   : > { %v10083_v13 = vpack.c.bf16 %v7401_v30, %v7397_v31  ;;  %v4605_v31 = vld [vmem:[%s10824_s2 + $0x28] sm:$0xff]  ;;  %v4606_v30 = vld [vmem:[%s10824_s2 + $0x30] sm:$0xff] }
 0x88d   : > { %v10085_v43 = vpack.c.bf16 %v7403_v58, %v7399_v24  ;;  %v4607_v24 = vld [vmem:[%s10824_s2 + $0x38] sm:$0xff]  ;;  %v7826_v58 = vpop.permute.xlu1 %7825 }
 0x88e   : > { %4672 = vrot.lane.b32.xlu1 %v10083_v13, %s8389_s4  ;;  %v4623_v46 = vsel %vm2695_vm10, %v10083_v13, 0  ;;  %v4701_v59 = vsel %vm10995_vm7, %v10083_v13, 0  ;;  %v4792_v39 = vsel %vm3085_vm5, %v10083_v13, 0  ;;  %v4834_v45 = vsel %vm3177_vm2, %v10083_v13, 0 }
 0x88f   : > { %4636 = vrot.lane.b32.xlu0 %v4623_v46, %s8388_s14  ;;  %v4567_v52 = vpop.f32.mrb[12].mxu1  ;;  %v4624_v35 = vsel %vm10993_vm0, %v10085_v43, 0  ;;  %v4702_v48 = vsel %vm10994_vm6, %v10085_v43, 0  ;;  %vm10998_vm0 = vcmp.ne.s16.totalorder %v9436_v16, 0  ;;  %vm10999_vm6 = vcmp.ne.s16.totalorder %v9424_v50, 0 }
 0x890   : > { %v4569_v3 = vpop.f32.mrb[13].mxu1  ;;  %v7405_v18 = vadd.f32 %v7404_v53, %v4567_v52  ;;  %v4743_v61 = vsel %vm10998_vm0, %v10083_v13, 0  ;;  %v4744_v26 = vsel %vm10999_vm6, %v10085_v43, 0  ;;  %vm11000_vm7 = vmmov %vm10998_vm0  ;;  %v4793_v10 = vsel %vm3086_vm4, %v10085_v43, 0 }
 0x891   : > { %v4571_v63 = vpop.f32.mrb[14].mxu1  ;;  %v7407_v27 = vadd.f32 %v7404_v53, %v4569_v3  ;;  %v4835_v62 = vsel %vm3178_vm1, %v10085_v43, 0  ;;  %v4913_v49 = vsel %vm3343_vm3, %v10085_v43, 0  ;;  %v4912_v56 = vsel %vm3342_vm8, %v10083_v13, 0 }
 0x892   : > { %v7409_v57 = vadd.f32 %v7408_v9, %v4571_v63  ;;  %4638 = vrot.lane.b32.xlu1 %v4624_v35, %s8388_s14  ;;  %v4573_v36 = vpop.f32.mrb[15].mxu1  ;;  %v7822_v52 = vunpack.i.l.bf16 %v7821_v11  ;;  %vm11003_vm0 = vcmask 138240  }
 0x893   : > { %v7411_v6 = vadd.f32 %v7408_v9, %v4573_v36  ;;  %4674 = vrot.lane.b32.xlu0 %v10085_v43, %s8389_s4 }
 0x894   : > { %v10099_v12 = vpack.c.bf16 %v7409_v57, %v7405_v18 }
 0x895   : > { %v10101_v0 = vpack.c.bf16 %v7411_v6, %v7407_v27  ;;  %v7823_v6 = vunpack.i.h.bf16 %v7821_v11 }
 0x896   : > { %4716 = vrot.lane.b32.xlu1 %v4702_v48, %s8391_s0  ;;  %v4626_v54 = vsel %vm2695_vm10, %v10099_v12, 0  ;;  %v4704_v7 = vsel %vm10997_vm14, %v10099_v12, 0  ;;  %v4746_v25 = vsel %vm11000_vm7, %v10099_v12, 0  ;;  %vm11002_vm14 = vmmov %vm10999_vm6  ;;  %v4795_v40 = vsel %vm3085_vm5, %v10099_v12, 0 }
 0x897   : > { %4714 = vrot.lane.b32.xlu0 %v4701_v59, %s8391_s0  ;;  %v4627_v23 = vsel %vm10996_vm13, %v10101_v0, 0  ;;  %vm11001_vm13 = vcmp.ne.s16.totalorder %v9386_v42, 0  ;;  %v4747_v8 = vsel %vm11002_vm14, %v10101_v0, 0  ;;  %v4837_v2 = vsel %vm3177_vm2, %v10099_v12, 0  ;;  %vm11004_vm6 = vmmov %vm11003_vm0 }
 0x898   : > { %v4705_v1 = vsel %vm11001_vm13, %v10101_v0, 0  ;;  %v4796_v19 = vsel %vm3086_vm4, %v10101_v0, 0  ;;  %v4838_v44 = vsel %vm3178_vm1, %v10101_v0, 0  ;;  %v4916_v5 = vsel %vm3343_vm3, %v10101_v0, 0  ;;  %vm11005_vm7 = vmmov %vm11003_vm0 }
 0x899   : > { %v4915_v21 = vsel %vm3342_vm8, %v10099_v12, 0  ;;  %vm11006_vm13 = vmmov %vm11003_vm0  ;;  %vm11007_vm14 = vcmask 130048  }
 0x89a   : > { %4642 = vrot.lane.b32.xlu1 %v4626_v54, %s8388_s14  ;;  %v7827_v54 = vunpack.i.l.bf16 %v7826_v58 }
 0x89b   : > { %4678 = vrot.lane.b32.xlu0 %v10099_v12, %s8389_s4 }
 0x89e   : > { %4680 = vrot.lane.b32.xlu1 %v10101_v0, %s8389_s4 }
 0x89f   : > { %4644 = vrot.lane.b32.xlu0 %v4627_v23, %s8388_s14 }
 0x8a2   : > { %4720 = vrot.lane.b32.xlu1 %v4704_v7, %s8391_s0 }
 0x8a3   : > { %7830 = vrot.lane.b32.xlu0 %v10970_v20, %s8391_s0 }
 0x8a6   : > { %4756 = vrot.lane.b32.xlu1 %v4743_v61, %s8390_s19 }
 0x8a7   : > { %4758 = vrot.lane.b32.xlu0 %v4744_v26, %s8390_s19 }
 0x8aa   : > { %7835 = vrot.lane.b32.xlu1 %v10970_v20, %s8390_s19 }
 0x8ab   : > { %4762 = vrot.lane.b32.xlu0 %v4746_v25, %s8390_s19 }
 0x8ae   : > { %7840 = vrot.lane.b32.xlu1 %v10970_v20, %s8387_s30 }
 0x8af   : > { %4722 = vrot.lane.b32.xlu0 %v4705_v1, %s8391_s0 }
 0x8b2   : > { %4764 = vrot.lane.b32.xlu1 %v4747_v8, %s8390_s19 }
 0x8b3   : > { %4806 = vrot.lane.b32.xlu0 %v4793_v10, %s8387_s30  ;;  %v7828_v10 = vunpack.i.h.bf16 %v7826_v58 }
 0x8b6   : > { %4848 = vrot.lane.b32.xlu1 %v4835_v62, %s10889_s29 }
 0x8b7   : > { %4804 = vrot.lane.b32.xlu0 %v4792_v39, %s8387_s30 }
 0x8ba   : > { %4846 = vrot.lane.b32.xlu1 %v4834_v45, %s10889_s29 }
 0x8bb   : > { %4810 = vrot.lane.b32.xlu0 %v4795_v40, %s8387_s30 }
 0x8be   : > { %4852 = vrot.lane.b32.xlu1 %v4837_v2, %s10889_s29 }
 0x8bf   : > { %7845 = vrot.lane.b32.xlu0 %v10970_v20, %s10889_s29 }
 0x8c2   : > { %4812 = vrot.lane.b32.xlu1 %v4796_v19, %s8387_s30 }
 0x8c3   : > { %4884 = vrot.lane.b32.xlu0 %v10085_v43, %s10885_s9 }
 0x8c6   : > { %7850 = vrot.lane.b32.xlu1 %v10970_v20, %s10885_s9 }
 0x8c7   : > { %4882 = vrot.lane.b32.xlu0 %v10083_v13, %s10885_s9 }
 0x8ca   : > { %4926 = vrot.lane.b32.xlu1 %v4913_v49, %s10887_s16 }
 0x8cb   : > { %4928 = vrot.lane.b32.xlu0 %v10970_v20, %s10887_s16 }
 0x8ce   : > { %4924 = vrot.lane.b32.xlu1 %v4912_v56, %s10887_s16 }
 0x8cf   : > { %4854 = vrot.lane.b32.xlu0 %v4838_v44, %s10889_s29  ;;  %s11043_s29 = smov 112  }
 0x8d2   : > { %4888 = vrot.lane.b32.xlu1 %v10099_v12, %s10885_s9 }
 0x8d3   : > { %4890 = vrot.lane.b32.xlu0 %v10101_v0, %s10885_s9 }
 0x8d6   : > { %4934 = vrot.lane.b32.xlu1 %v10970_v20, %s10887_s16 }
 0x8d7   : > { %4932 = vrot.lane.b32.xlu0 %v4916_v5, %s10887_s16 }
 0x8da   : > { %4986 = vperm.xlu1 %7854, %v4600_v14  }
 0x8db   : > { %4930 = vrot.lane.b32.xlu0 %v4915_v21, %s10887_s16  ;;  %s11040_s16 = smov 113  }
 0x8de   : > { %5006 = vperm.xlu1 %7854, %v4604_v22  }
 0x8df   : > { %4991 = vperm.xlu0 %7855, %v4601_v32  }
 0x8e2   : > { %5011 = vperm.xlu1 %7854, %v4605_v31  }
 0x8e3   : > { %4996 = vperm.xlu0 %7855, %v4602_v55  }
 0x8e6   : > { %5001 = vperm.xlu1 %7854, %v4603_v37  }
 0x8e7   : > { %5016 = vperm.xlu0 %7855, %v4606_v30  }
 0x8ea   : > { %5021 = vperm.xlu1 %7854, %v4607_v24  }
 0x8eb   : > { %7857 = vrot.lane.b32.xlu0 %v10970_v20, %s8388_s14 }
 0x8ee   : > { %7862 = vrot.lane.b32.xlu1 %v10970_v20, %s8388_s14 }
 0x8ef   : > { %7867 = vrot.lane.b32.xlu0 %v10970_v20, %s8389_s4 }
 0x8f2   : > { %7872 = vrot.lane.b32.xlu1 %v10970_v20, %s8389_s4 }
 0x8f3   : > { %7877 = vrot.lane.b32.xlu0 %v10970_v20, %s8391_s0 }
 0x8f6   : > { %7882 = vrot.lane.b32.xlu1 %v10970_v20, %s8391_s0 }
 0x8f7   : > { %7887 = vrot.lane.b32.xlu0 %v10970_v20, %s8390_s19 }
 0x8fa   : > { %7892 = vrot.lane.b32.xlu1 %v10970_v20, %s8390_s19 }
 0x8fb   : > { %7902 = vrot.lane.b32.xlu0 %v10970_v20, %s8387_s30 }
 0x8fe   : > { %7897 = vrot.lane.b32.xlu1 %v10970_v20, %s8387_s30 }
 0x900   : > { %v4673_v15 = vpop.permute.xlu1 %4672 }
 0x901   : > { %v4637_v46 = vpop.permute.xlu0 %4636 }
 0x902   : > { %v4646_v63 = vsel %vm11004_vm6, %v7822_v52, %v4637_v46 }
 0x904   : > { %v4639_v53 = vpop.permute.xlu1 %4638 }
 0x905   : > { %v4675_v9 = vpop.permute.xlu0 %4674  ;;  %v4647_v3 = vsel %vm11003_vm0, %v4637_v46, %v4639_v53  ;;  %vm11008_vm0 = vmmov %vm11007_vm14 }
 0x906   : > { %5096 = vmatprep.subr.bf16.mxu1 %v4647_v3  ;;  %v4683_v61 = vsel %vm11007_vm14, %v4673_v15, %v4675_v9  ;;  %v4682_v25 = vsel %vm11008_vm0, %v7827_v54, %v4673_v15  ;;  %vm11009_vm6 = vmmov %vm11008_vm0 }
 0x907   : > { %5097 = vmatpush1.bf16.msra.mxu1 %v4646_v63 }
 0x908   : > { %v4717_v35 = vpop.permute.xlu1 %4716 }
 0x909   : > { %v4715_v18 = vpop.permute.xlu0 %4714 }
 0x90c   : > { %v4643_v57 = vpop.permute.xlu1 %4642 }
 0x90d   : > { %v4679_v36 = vpop.permute.xlu0 %4678  ;;  %v4648_v23 = vsel %vm11006_vm13, %v7823_v6, %v4643_v57  ;;  %vm11011_vm13 = vcmask 121856  }
 0x90e   : > { %v4725_v2 = vsel %vm11011_vm13, %v4715_v18, %v4717_v35  ;;  %vm11012_vm14 = vmmov %vm11011_vm13 }
 0x910   : > { %v4681_v27 = vpop.permute.xlu1 %4680 }
 0x911   : > { %v4645_v48 = vpop.permute.xlu0 %4644  ;;  %v4685_v8 = vsel %vm11009_vm6, %v4679_v36, %v4681_v27 }
 0x912   : > { %v4649_v59 = vsel %vm11005_vm7, %v4643_v57, %v4645_v48  ;;  %vm11010_vm7 = vmmov %vm11008_vm0 }
 0x913   : > { %5098 = vmatprep.subr.bf16.mxu1 %v4649_v59  ;;  %v4684_v45 = vsel %vm11010_vm7, %v7828_v10, %v4679_v36  ;;  %vm11013_vm0 = vmmov %vm11011_vm13  ;;  %vm11015_vm7 = vcmask 7168  }
 0x914   : > { %v4721_v7 = vpop.permute.xlu1 %4720  ;;  %5099 = vmatpush1.bf16.msra.mxu1 %v4648_v23  ;;  %vm11014_vm6 = vmmov %vm11013_vm0 }
 0x915   : > { %5100 = vmatprep.subr.bf16.mxu1 %v4683_v61  ;;  %v7831_v26 = vpop.permute.xlu0 %7830  ;;  %vm11016_vm13 = vmmov %vm11015_vm7 }
 0x916   : > { %v7832_v39 = vunpack.i.l.bf16 %v7831_v26  ;;  %v7833_v49 = vunpack.i.h.bf16 %v7831_v26 }
 0x918   : > { %v4757_v1 = vpop.permute.xlu1 %4756  ;;  %5101 = vmatpush1.bf16.msra.mxu1 %v4682_v25  ;;  %v4724_v56 = vsel %vm11012_vm14, %v7832_v39, %v4715_v18  ;;  %v4726_v14 = vsel %vm11014_vm6, %v7833_v49, %v4721_v7  ;;  %vm11017_vm14 = vmmov %vm11015_vm7  ;;  %vm11019_vm6 = vcmask 1039360  }
 0x919   : > { %5102 = vmatprep.subr.bf16.mxu1 %v4685_v8  ;;  %v4759_v62 = vpop.permute.xlu0 %4758 }
 0x91a   : > { %v4767_v32 = vsel %vm11015_vm7, %v4757_v1, %v4759_v62 }
 0x91c   : > { %v7836_v40 = vpop.permute.xlu1 %7835  ;;  %5103 = vmatpush1.bf16.msra.mxu1 %v4684_v45 }
 0x91d   : > { %5104 = vmatprep.subr.bf16.mxu1 %v4725_v2  ;;  %v4763_v19 = vpop.permute.xlu0 %4762  ;;  %v7837_v21 = vunpack.i.l.bf16 %v7836_v40  ;;  %v7838_v55 = vunpack.i.h.bf16 %v7836_v40 }
 0x91f   : > { %v4766_v31 = vsel %vm11016_vm13, %v7837_v21, %v4757_v1  ;;  %vm11021_vm13 = vmmov %vm11019_vm6 }
 0x920   : > { %v7841_v44 = vpop.permute.xlu1 %7840  ;;  %5105 = vmatpush1.bf16.msra.mxu1 %v4724_v56 }
 0x921   : > { %v4723_v4 = vpop.permute.xlu0 %4722  ;;  %v7842_v46 = vunpack.i.l.bf16 %v7841_v44  ;;  %v7843_v35 = vunpack.i.h.bf16 %v7841_v44  ;;  %v7964_v44 = vld [vmem:[#allocation10] ss:$12 sps:$4 sm:$0xff]  }
 0x922   : > { %v4727_v5 = vsel %vm11013_vm0, %v4721_v7, %v4723_v4  ;;  %vm11018_vm0 = vmmov %vm11015_vm7  ;;  %v7968_v4 = vld [vmem:[#allocation10 + $0x1c] ss:$12 sps:$4 sm:$0xff]  }
 0x923   : > { %5106 = vmatprep.subr.bf16.mxu1 %v4727_v5  ;;  %v4768_v58 = vsel %vm11018_vm0, %v7838_v55, %v4763_v19  ;;  %vm11020_vm7 = vmmov %vm11019_vm6  ;;  %v7974_v55 = vld [vmem:[#allocation10 + $0x30] ss:$12 sps:$4 sm:$0xff]  }
 0x924   : > { %v4765_v33 = vpop.permute.xlu1 %4764  ;;  %5107 = vmatpush1.bf16.msra.mxu1 %v4726_v14  ;;  %v7967_v14 = vld [vmem:[#allocation10 + $0x8] ss:$12 sps:$4 sm:$0xff]  }
 0x925   : > { %v4807_v22 = vpop.permute.xlu0 %4806  ;;  %5108 = vmatprep.subr.bf16.mxu1 %v4767_v32  ;;  %v4769_v37 = vsel %vm11017_vm14, %v4763_v19, %v4765_v33  ;;  %vm11022_vm14 = vmmov %vm11019_vm6  ;;  %v7970_v33 = vld [vmem:[#allocation10 + $0x18] ss:$12 sps:$4 sm:$0xff]   ;;  %v7972_v32 = vld [vmem:[#allocation10 + $0x34] ss:$12 sps:$4 sm:$0xff]  }
 0x926   : > { %v4817_v3 = vsel %vm11019_vm6, %v4807_v22, %v7842_v46 }
 0x928   : > { %v4849_v30 = vpop.permute.xlu1 %4848  ;;  %5109 = vmatpush1.bf16.msra.mxu1 %v4766_v31  ;;  %v7976_v31 = vld [vmem:[#allocation10 + $0x4c] ss:$12 sps:$4 sm:$0xff]  }
 0x929   : > { %v4805_v24 = vpop.permute.xlu0 %4804  ;;  %5110 = vmatprep.subr.bf16.mxu1 %v4769_v37  ;;  %v7978_v37 = vld [vmem:[#allocation10 + $0x48] ss:$12 sps:$4 sm:$0xff]  }
 0x92a   : > { %v4816_v18 = vsel %vm11020_vm7, %v4805_v24, %v4807_v22  ;;  %v7971_v22 = vld [vmem:[#allocation10 + $0x20] ss:$12 sps:$4 sm:$0xff]   ;;  %v7979_v24 = vld [vmem:[#allocation10 + $0x50] ss:$12 sps:$4 sm:$0xff]  }
 0x92c   : > { %v4847_v11 = vpop.permute.xlu1 %4846  ;;  %5111 = vmatpush1.bf16.msra.mxu1 %v4768_v58 }
 0x92d   : > { %v4811_v15 = vpop.permute.xlu0 %4810  ;;  %5112 = vmatprep.subr.bf16.mxu1 %v10085_v43  ;;  %v4858_v59 = vsel %vm2880_vm12, %v4847_v11, %v4849_v30 }
 0x930   : > { %v4853_v52 = vpop.permute.xlu1 %4852  ;;  %5113 = vmatpush1.bf16.msra.mxu1 %v10083_v13 }
 0x931   : > { %v7846_v53 = vpop.permute.xlu0 %7845  ;;  %5114 = vmatprep.subr.bf16.mxu1 %v10101_v0 }
 0x932   : > { %v7847_v57 = vunpack.i.l.bf16 %v7846_v53  ;;  %v7848_v54 = vunpack.i.h.bf16 %v7846_v53 }
 0x934   : > { %v4813_v9 = vpop.permute.xlu1 %4812  ;;  %5115 = vmatpush1.bf16.msra.mxu1 %v10099_v12  ;;  %v4859_v12 = vsel %vm2880_vm12, %v4849_v30, %v7847_v57  ;;  %v7975_v30 = vld [vmem:[#allocation10 + $0x38] ss:$12 sps:$4 sm:$0xff]  }
 0x935   : > { %v4885_v63 = vpop.permute.xlu0 %4884  ;;  %5116 = vmatprep.subr.bf16.mxu1 %v4817_v3  ;;  %v4819_v43 = vsel %vm11021_vm13, %v4813_v9, %v7843_v35  ;;  %v4818_v13 = vsel %vm11022_vm14, %v4811_v15, %v4813_v9 }
 0x938   : > { %v7851_v36 = vpop.permute.xlu1 %7850  ;;  %5117 = vmatpush1.bf16.msra.mxu1 %v4816_v18 }
 0x939   : > { %v4883_v27 = vpop.permute.xlu0 %4882  ;;  %5118 = vmatprep.subr.bf16.mxu1 %v4819_v43  ;;  %v7852_v23 = vunpack.i.l.bf16 %v7851_v36  ;;  %v7853_v39 = vunpack.i.h.bf16 %v7851_v36 }
 0x93a   : > { %v4894_v45 = vsel %vm3300_vm15, %v4883_v27, %v4885_v63 }
 0x93b   : > { %v4895_v10 = vsel %vm3300_vm15, %v4885_v63, %v7852_v23 }
 0x93c   : > { %v4927_v0 = vpop.permute.xlu1 %4926  ;;  %5119 = vmatpush1.bf16.msra.mxu1 %v4818_v13 }
 0x93d   : > { %v4929_v6 = vpop.permute.xlu0 %4928  ;;  %5120 = vmatprep.subr.bf16.mxu1 %v4859_v12 }
 0x93e   : > { %v4937_v48 = vsel %vm2692_vm9, %v4927_v0, %v4929_v6 }
 0x93f   : > { %5169 = vmatprep.subr.bf16.mxu0 %v4937_v48 }
 0x940   : > { %v4925_v7 = vpop.permute.xlu1 %4924  ;;  %5121 = vmatpush1.bf16.msra.mxu1 %v4858_v59 }
 0x941   : > { %v4936_v61 = vsel %vm2692_vm9, %v4925_v7, %v4927_v0  ;;  %v4855_v26 = vpop.permute.xlu0 %4854 }
 0x942   : > { %5170 = vmatpush1.bf16.msra.mxu0 %v4936_v61  ;;  %v4861_v25 = vsel %vm2880_vm12, %v4855_v26, %v7848_v54  ;;  %v4860_v1 = vsel %vm2880_vm12, %v4853_v52, %v4855_v26 }
 0x943   : > { %5122 = vmatprep.subr.bf16.mxu1 %v4861_v25 }
 0x944   : > { %v4889_v8 = vpop.permute.xlu1 %4888  ;;  %5123 = vmatpush1.bf16.msra.mxu1 %v4860_v1 }
 0x945   : > { %v4891_v62 = vpop.permute.xlu0 %4890  ;;  %5124 = vmatprep.subr.bf16.mxu1 %v4895_v10 }
 0x946   : > { %v4897_v2 = vsel %vm3300_vm15, %v4891_v62, %v7853_v39  ;;  %v4896_v56 = vsel %vm3300_vm15, %v4889_v8, %v4891_v62 }
 0x948   : > { %5125 = vmatpush1.bf16.msra.mxu1 %v4894_v45  ;;  %v4935_v40 = vpop.permute.xlu1 %4934 }
 0x949   : > { %v4933_v19 = vpop.permute.xlu0 %4932  ;;  %5126 = vmatprep.subr.bf16.mxu1 %v4897_v2 }
 0x94a   : > { %v4939_v49 = vsel %vm2692_vm9, %v4933_v19, %v4935_v40 }
 0x94b   : > { %5171 = vmatprep.subr.bf16.mxu0 %v4939_v49 }
 0x94c   : > { %5127 = vmatpush1.bf16.msra.mxu1 %v4896_v56 }
 0x94d   : > { %v4931_v5 = vpop.permute.xlu0 %4930 }
 0x94e   : > { %v4938_v21 = vsel %vm2692_vm9, %v4931_v5, %v4933_v19 }
 0x94f   : > { %5129 = vmatmul.mubr.bf16.vlgmr.msra.gmra.mrb[16].mxu1 %v7964_v44  ;;  %5172 = vmatpush1.bf16.msra.mxu0 %v4938_v21 }
 0x950   : > { %5138 = vmatprep.mubr.bf16.mxu1 %v7968_v4 }
 0x952   : > { %6640 = vmatmul.mubr.msk.bf16.vlgmr.msra.gmra.mrb[16].mxu0 %vm10891_vm11, %v7967_v14 }
 0x953   : > { %5211 = vmatprep.mubr.bf16.mxu0 %v10970_v20 }
 0x957   : > { %5139 = vmatmul.mubr.bf16.gmra.mrb[20].mxu1 %v7970_v33 }
 0x958   : > { %5148 = vmatprep.mubr.bf16.mxu1 %v7972_v32 }
 0x959   : > { %v4987_v58 = vpop.permute.xlu1 %4986 }
 0x95a   : > { %6641 = vmatmul.mubr.msk.bf16.gmra.mrb[20].mxu0 %vm10891_vm11, %v7971_v22 }
 0x95b   : > { %5221 = vmatprep.mubr.bf16.mxu0 %v10970_v20 }
 0x95d   : > { %v10304_v11 = vpop.permute.xlu1 %5006 }
 0x95e   : > { %v4992_v53 = vpop.permute.xlu0 %4991 }
 0x95f   : > { %5149 = vmatmul.mubr.bf16.gmra.mrb[24].mxu1 %v7974_v55 }
 0x960   : > { %5158 = vmatprep.mubr.bf16.mxu1 %v7976_v31 }
 0x961   : > { %v10306_v57 = vpop.permute.xlu1 %5011 }
 0x962   : > { %6642 = vmatmul.mubr.msk.bf16.gmra.mrb[24].mxu0 %vm10891_vm11, %v7975_v30  ;;  %v4997_v23 = vpop.permute.xlu0 %4996 }
 0x963   : > { %5231 = vmatprep.mubr.bf16.mxu0 %v10970_v20 }
 0x965   : > { %v5002_v8 = vpop.permute.xlu1 %5001 }
 0x967   : > { %5159 = vmatmul.mubr.bf16.gmra.mrb[28].mxu1 %v7978_v37 }
 0x96a   : > { %6643 = vmatmul.mubr.msk.bf16.gmra.mrb[28].mxu0 %vm10891_vm11, %v7979_v24 }
 0xa22   : > { %v5130_v15 = vpop.f32.mrb[16].mxu1 }
 0xa23   : > { %v5131_v46 = vadd.f32 %v5130_v15, %v4987_v58  ;;  %v5132_v52 = vpop.f32.mrb[17].mxu1 }
 0xa24   : > { %v5133_v9 = vadd.f32 %v5132_v52, %v4987_v58  ;;  %v5134_v3 = vpop.f32.mrb[18].mxu1 }
 0xa25   : > { %v5135_v63 = vadd.f32 %v5134_v3, %v4992_v53  ;;  %v5203_v35 = vpop.f32.mrb[16].mxu0  ;;  %v5136_v18 = vpop.f32.mrb[19].mxu1 }
 0xa26   : > { %v5204_v36 = vadd.f32 %v5203_v35, %v5131_v46  ;;  %v5137_v43 = vadd.f32 %v5136_v18, %v4992_v53  ;;  %v5205_v27 = vpop.f32.mrb[17].mxu0 }
 0xa27   : > { %v5206_v13 = vadd.f32 %v5205_v27, %v5133_v9  ;;  %v5207_v0 = vpop.f32.mrb[18].mxu0 }
 0xa28   : > { %v5258_v12 = vmul.f32 0.2, %v5204_v36  ;;  %v5208_v6 = vadd.f32 %v5207_v0, %v5135_v63  ;;  %v5209_v48 = vpop.f32.mrb[19].mxu0  ;;  %vm5242_vm0 = vcmp.ge.f32.partialorder %v5204_v36, 0.0 }
 0xa29   : > { %v5259_v59 = vmul.f32 0.2, %v5206_v13  ;;  %v5210_v54 = vadd.f32 %v5209_v48, %v5137_v43  ;;  %vm5243_vm6 = vcmp.ge.f32.partialorder %v5206_v13, 0.0 }
 0xa2a   : > { %vm5244_vm7 = vcmp.ge.f32.partialorder %v5208_v6, 0.0  ;;  %v5260_v7 = vmul.f32 0.2, %v5208_v6  ;;  %v5140_v61 = vpop.f32.mrb[20].mxu1  ;;  %v5274_v10 = vsel %vm5242_vm0, %v5204_v36, %v5258_v12 }
 0xa2b   : > { %vm5245_vm13 = vcmp.ge.f32.partialorder %v5210_v54, 0.0  ;;  %v5261_v26 = vmul.f32 0.2, %v5210_v54  ;;  %v5141_v25 = vadd.f32 %v5140_v61, %v4997_v23  ;;  %v5142_v1 = vpop.f32.mrb[21].mxu1  ;;  %v5275_v40 = vsel %vm5243_vm6, %v5206_v13, %v5259_v59 }
 0xa2c   : > { %v5276_v62 = vsel %vm5244_vm7, %v5208_v6, %v5260_v7  ;;  %v5143_v39 = vadd.f32 %v5142_v1, %v4997_v23  ;;  %v5144_v45 = vpop.f32.mrb[22].mxu1 }
 0xa2d   : > { %v10308_v2 = vpack.c.bf16 %v5276_v62, %v5274_v10  ;;  %v5277_v19 = vsel %vm5245_vm13, %v5210_v54, %v5261_v26  ;;  %v5145_v49 = vadd.f32 %v5144_v45, %v5002_v8  ;;  %v5146_v56 = vpop.f32.mrb[23].mxu1  ;;  %v5213_v44 = vpop.f32.mrb[20].mxu0  ;;  %vm11023_vm13 = vcmp.ne.s16.totalorder %v9312_v38, 0 }
 0xa2e   : > { %v10310_v4 = vpack.c.bf16 %v5277_v19, %v5275_v40  ;;  %v5147_v5 = vadd.f32 %v5146_v56, %v5002_v8  ;;  %v5214_v21 = vadd.f32 %v5213_v44, %v5141_v25  ;;  %v5215_v14 = vpop.f32.mrb[21].mxu0  ;;  %v5017_v10 = vpop.permute.xlu0 %5016 }
 0xa2f   : > { %v5216_v33 = vadd.f32 %v5215_v14, %v5143_v39  ;;  %v5217_v32 = vpop.f32.mrb[22].mxu0  ;;  %5362 = vrot.lane.b32.xlu0 %v10308_v2, %s8389_s4  ;;  %v5313_v15 = vsel %vm2695_vm10, %v10308_v2, 0  ;;  %v5022_v44 = vpop.permute.xlu1 %5021 }
 0xa30   : > { %v5262_v22 = vmul.f32 0.2, %v5214_v21  ;;  %v5218_v55 = vadd.f32 %v5217_v32, %v5145_v49  ;;  %v5219_v31 = vpop.f32.mrb[23].mxu0  ;;  %5364 = vrot.lane.b32.xlu1 %v10310_v4, %s8389_s4  ;;  %vm5246_vm14 = vcmp.ge.f32.partialorder %v5214_v21, 0.0  ;;  %v5314_v9 = vsel %vm11023_vm13, %v10310_v4, 0 }
 0xa31   : > { %v5263_v30 = vmul.f32 0.2, %v5216_v33  ;;  %v5220_v37 = vadd.f32 %v5219_v31, %v5147_v5  ;;  %vm5247_vm0 = vcmp.ge.f32.partialorder %v5216_v33, 0.0 }
 0xa32   : > { %vm5248_vm6 = vcmp.ge.f32.partialorder %v5218_v55, 0.0  ;;  %v5264_v24 = vmul.f32 0.2, %v5218_v55  ;;  %v5150_v58 = vpop.f32.mrb[24].mxu1  ;;  %v5278_v3 = vsel %vm5246_vm14, %v5214_v21, %v5262_v22  ;;  %vm11024_vm14 = vcmp.ne.s16.totalorder %v9394_v41, 0 }
 0xa33   : > { %vm5249_vm7 = vcmp.ge.f32.partialorder %v5220_v37, 0.0  ;;  %v5265_v46 = vmul.f32 0.2, %v5220_v37  ;;  %v5151_v52 = vadd.f32 %v5150_v58, %v10304_v11  ;;  %v5152_v53 = vpop.f32.mrb[25].mxu1  ;;  %5326 = vrot.lane.b32.xlu0 %v5313_v15, %s8388_s14  ;;  %v5279_v36 = vsel %vm5247_vm0, %v5216_v33, %v5263_v30 }
 0xa34   : > { %v5280_v63 = vsel %vm5248_vm6, %v5218_v55, %v5264_v24  ;;  %v5153_v35 = vadd.f32 %v5152_v53, %v10304_v11  ;;  %v5154_v18 = vpop.f32.mrb[26].mxu1  ;;  %5328 = vrot.lane.b32.xlu1 %v5314_v9, %s8388_s14  ;;  %v5391_v11 = vsel %vm11024_vm14, %v10308_v2, 0  ;;  %vm11025_vm0 = vcmp.ne.s16.totalorder %v9386_v42, 0 }
 0xa35   : > { %v10327_v43 = vpack.c.bf16 %v5280_v63, %v5278_v3  ;;  %v5281_v27 = vsel %vm5249_vm7, %v5220_v37, %v5265_v46  ;;  %v5155_v13 = vadd.f32 %v5154_v18, %v10306_v57  ;;  %v5156_v0 = vpop.f32.mrb[27].mxu1  ;;  %v5223_v12 = vpop.f32.mrb[24].mxu0  ;;  %v5392_v61 = vsel %vm11025_vm0, %v10310_v4, 0 }
 0xa36   : > { %v10330_v6 = vpack.c.bf16 %v5281_v27, %v5279_v36  ;;  %v5157_v48 = vadd.f32 %v5156_v0, %v10306_v57  ;;  %v5224_v59 = vadd.f32 %v5223_v12, %v5151_v52  ;;  %v5225_v54 = vpop.f32.mrb[25].mxu0  ;;  %vm11026_vm14 = vcmp.ne.s16.totalorder %v9436_v16, 0 }
 0xa37   : > { %v5226_v23 = vadd.f32 %v5225_v54, %v5153_v35  ;;  %v5227_v7 = vpop.f32.mrb[26].mxu0  ;;  %5404 = vrot.lane.b32.xlu0 %v5391_v11, %s8391_s0  ;;  %v5433_v45 = vsel %vm11026_vm14, %v10308_v2, 0  ;;  %vm11027_vm0 = vcmp.ne.s16.totalorder %v9424_v50, 0  ;;  %v5482_v52 = vsel %vm3085_vm5, %v10308_v2, 0 }
 0xa38   : > { %v5266_v26 = vmul.f32 0.2, %v5224_v59  ;;  %v5228_v25 = vadd.f32 %v5227_v7, %v5155_v13  ;;  %v5229_v1 = vpop.f32.mrb[27].mxu0  ;;  %5406 = vrot.lane.b32.xlu1 %v5392_v61, %s8391_s0  ;;  %vm5250_vm6 = vcmp.ge.f32.partialorder %v5224_v59, 0.0  ;;  %v5434_v56 = vsel %vm11027_vm0, %v10310_v4, 0 }
 0xa39   : > { %v5267_v57 = vmul.f32 0.2, %v5226_v23  ;;  %v5230_v8 = vadd.f32 %v5229_v1, %v5157_v48  ;;  %vm5251_vm7 = vcmp.ge.f32.partialorder %v5226_v23, 0.0  ;;  %v5483_v13 = vsel %vm3086_vm4, %v10310_v4, 0 }
 0xa3a   : > { %vm5252_vm13 = vcmp.ge.f32.partialorder %v5228_v25, 0.0  ;;  %v5268_v62 = vmul.f32 0.2, %v5228_v25  ;;  %v5160_v39 = vpop.f32.mrb[28].mxu1  ;;  %v5282_v5 = vsel %vm5250_vm6, %v5224_v59, %v5266_v26  ;;  %v5316_v12 = vsel %vm2695_vm10, %v10327_v43, 0 }
 0xa3b   : > { %vm5253_vm11 = vcmp.ge.f32.partialorder %v5230_v8, 0.0  ;;  %v5269_v40 = vmul.f32 0.2, %v5230_v8  ;;  %v5161_v19 = vadd.f32 %v5160_v39, %v5017_v10  ;;  %v5162_v49 = vpop.f32.mrb[29].mxu1  ;;  %5446 = vrot.lane.b32.xlu0 %v5433_v45, %s8390_s19  ;;  %v5283_v32 = vsel %vm5251_vm7, %v5226_v23, %v5267_v57 }
 0xa3c   : > { %v5284_v21 = vsel %vm5252_vm13, %v5228_v25, %v5268_v62  ;;  %v5163_v14 = vadd.f32 %v5162_v49, %v5017_v10  ;;  %v5164_v33 = vpop.f32.mrb[30].mxu1  ;;  %5448 = vrot.lane.b32.xlu1 %v5434_v56, %s8390_s19  ;;  %vm11028_vm14 = vcmp.ne.s16.totalorder %v9394_v41, 0  ;;  %vm11029_vm0 = vcmp.ne.s16.totalorder %v9312_v38, 0 }
 0xa3d   : > { %v10351_v22 = vpack.c.bf16 %v5284_v21, %v5282_v5  ;;  %v5285_v55 = vsel %vm5253_vm11, %v5230_v8, %v5269_v40  ;;  %v5165_v31 = vadd.f32 %v5164_v33, %v5022_v44  ;;  %v5166_v30 = vpop.f32.mrb[31].mxu1  ;;  %v5233_v37 = vpop.f32.mrb[28].mxu0  ;;  %v5394_v61 = vsel %vm11028_vm14, %v10327_v43, 0 }
 0xa3e   : > { %v10353_v24 = vpack.c.bf16 %v5285_v55, %v5283_v32  ;;  %v5167_v58 = vadd.f32 %v5166_v30, %v5022_v44  ;;  %v5234_v15 = vadd.f32 %v5233_v37, %v5161_v19  ;;  %v5235_v46 = vpop.f32.mrb[29].mxu0  ;;  %v5317_v26 = vsel %vm11029_vm0, %v10330_v6, 0  ;;  %v10488_v55 = vpop.permute.xlu0 %7857 }
 0xa3f   : > { %v5236_v53 = vadd.f32 %v5235_v46, %v5163_v14  ;;  %v5237_v9 = vpop.f32.mrb[30].mxu0  ;;  %5494 = vrot.lane.b32.xlu0 %v5482_v52, %s8387_s30  ;;  %v5486_v57 = vsel %vm3086_vm4, %v10330_v6, 0  ;;  %v5645_v10 = vsel %vm2695_vm10, %v10351_v22, 0  ;;  %v5814_v62 = vsel %vm3085_vm5, %v10351_v22, 0 }
 0xa40   : > { %v5270_v3 = vmul.f32 0.2, %v5234_v15  ;;  %v5238_v63 = vadd.f32 %v5237_v9, %v5165_v31  ;;  %v5239_v35 = vpop.f32.mrb[31].mxu0  ;;  %5368 = vrot.lane.b32.xlu1 %v10327_v43, %s8389_s4  ;;  %vm5254_vm11 = vcmp.ge.f32.partialorder %v5234_v15, 0.0  ;;  %v5815_v49 = vsel %vm3086_vm4, %v10353_v24, 0  ;;  %v10491_v31 = vpop.permute.xlu1 %7862 }
 0xa41   : > { %v5271_v18 = vmul.f32 0.2, %v5236_v53  ;;  %v5240_v36 = vadd.f32 %v5239_v35, %v5167_v58  ;;  %vm5255_vm6 = vcmp.ge.f32.partialorder %v5236_v53, 0.0  ;;  %v5485_v21 = vsel %vm3085_vm5, %v10327_v43, 0 }
 0xa42   : > { %vm5256_vm7 = vcmp.ge.f32.partialorder %v5238_v63, 0.0  ;;  %v5272_v27 = vmul.f32 0.2, %v5238_v63  ;;  %v5286_v48 = vsel %vm5254_vm11, %v5234_v15, %v5270_v3  ;;  %vm11030_vm11 = vcmp.ne.s16.totalorder %v9436_v16, 0  ;;  %v10499_v37 = vpop.permute.xlu0 %7867 }
 0xa43   : > { %vm5257_vm13 = vcmp.ge.f32.partialorder %v5240_v36, 0.0  ;;  %v5273_v0 = vmul.f32 0.2, %v5240_v36  ;;  %5496 = vrot.lane.b32.xlu0 %v5483_v13, %s8387_s30  ;;  %v5287_v54 = vsel %vm5255_vm6, %v5236_v53, %v5271_v18  ;;  %v5436_v25 = vsel %vm11030_vm11, %v10327_v43, 0  ;;  %v7985_v18 = vld [vmem:[#allocation10 + $0xc4] ss:$12 sps:$4 sm:$0xff]  }
 0xa44   : > { %v5288_v59 = vsel %vm5256_vm7, %v5238_v63, %v5272_v27  ;;  %5332 = vrot.lane.b32.xlu1 %v5316_v12, %s8388_s14  ;;  %vm11031_vm6 = vcmp.ne.s16.totalorder %v9386_v42, 0  ;;  %vm11032_vm7 = vcmp.ne.s16.totalorder %v9424_v50, 0  ;;  %v5525_v41 = vsel %vm3178_vm1, %v10310_v4, 0  ;;  %v10501_v58 = vpop.permute.xlu1 %7872  ;;  %v7982_v63 = vld [vmem:[#allocation10 + $0x94] ss:$12 sps:$4 sm:$0xff]   ;;  %6308 = vmatprep.mubr.bf16.mxu1 %v7985_v18 }
 0xa45   : > { %v10369_v11 = vpack.c.bf16 %v5288_v59, %v5286_v48  ;;  %v5289_v23 = vsel %vm5257_vm13, %v5240_v36, %v5273_v0  ;;  %v5395_v1 = vsel %vm11031_vm6, %v10330_v6, 0  ;;  %v5437_v8 = vsel %vm11032_vm7, %v10330_v6, 0  ;;  %vm11033_vm13 = vmmov %vm11028_vm14  ;;  %6106 = vmatprep.mubr.bf16.mxu0 %v7982_v63 }
 0xa46   : > { %v10371_v7 = vpack.c.bf16 %v5289_v23, %v5287_v54  ;;  %v5723_v39 = vsel %vm11033_vm13, %v10351_v22, 0  ;;  %vm11034_vm14 = vmmov %vm11029_vm0  ;;  %v5524_v16 = vsel %vm3177_vm2, %v10308_v2, 0  ;;  %v5857_v33 = vsel %vm3178_vm1, %v10353_v24, 0  ;;  %v10514_v46 = vpop.permute.xlu0 %7877 }
 0xa47   : > { %5370 = vrot.lane.b32.xlu0 %v10330_v6, %s8389_s4  ;;  %v5646_v45 = vsel %vm11034_vm14, %v10353_v24, 0  ;;  %vm11035_vm0 = vmmov %vm11030_vm11  ;;  %v5648_v5 = vsel %vm2695_vm10, %v10369_v11, 0  ;;  %v5726_v14 = vsel %vm11033_vm13, %v10369_v11, 0  ;;  %v5817_v38 = vsel %vm3085_vm5, %v10369_v11, 0 }
 0xa48   : > { %5410 = vrot.lane.b32.xlu1 %v5394_v61, %s8391_s0  ;;  %v5765_v40 = vsel %vm11035_vm0, %v10351_v22, 0  ;;  %vm11036_vm11 = vmmov %vm11031_vm6  ;;  %v5856_v32 = vsel %vm3177_vm2, %v10351_v22, 0  ;;  %v5528_v30 = vsel %vm3178_vm1, %v10330_v6, 0  ;;  %v5527_v50 = vsel %vm3177_vm2, %v10327_v43, 0  ;;  %v10517_v52 = vpop.permute.xlu1 %7882 }
 0xa49   : > { %v5724_v19 = vsel %vm11036_vm11, %v10353_v24, 0  ;;  %vm11037_vm6 = vmmov %vm11032_vm7  ;;  %v5859_v15 = vsel %vm3177_vm2, %v10369_v11, 0  ;;  %v5818_v9 = vsel %vm3086_vm4, %v10371_v7, 0  ;;  %v5860_v47 = vsel %vm3178_vm1, %v10371_v7, 0 }
 0xa4a   : > { %v5766_v56 = vsel %vm11037_vm6, %v10353_v24, 0  ;;  %vm11038_vm7 = vmmov %vm11034_vm14  ;;  %v10523_v53 = vpop.permute.xlu0 %7887  ;;  %v7859_v28 = vunpack.i.l.bf16 %v10488_v55  ;;  %v5603_v12 = vsel %vm3343_vm3, %v10310_v4, 0  ;;  %vm11045_vm1 = vcmask 138240  }
 0xa4b   : > { %5334 = vrot.lane.b32.xlu0 %v5317_v26, %s8388_s14  ;;  %v5649_v44 = vsel %vm11038_vm7, %v10371_v7, 0  ;;  %vm11039_vm10 = vmmov %vm11035_vm0  ;;  %v5602_v61 = vsel %vm3342_vm8, %v10308_v2, 0  ;;  %v5935_v26 = vsel %vm3343_vm3, %v10353_v24, 0  ;;  %v7874_v63 = vunpack.i.l.bf16 %v10501_v58 }
 0xa4c   : > { %5452 = vrot.lane.b32.xlu1 %v5436_v25, %s8390_s19  ;;  %v5768_v60 = vsel %vm11039_vm10, %v10369_v11, 0  ;;  %vm11041_vm5 = vmmov %vm11036_vm11  ;;  %v10528_v51 = vpop.permute.xlu1 %7892  ;;  %vm11053_vm7 = vcmask 121856  }
 0xa4d   : > { %v5727_v34 = vsel %vm11041_vm5, %v10371_v7, 0  ;;  %vm11042_vm14 = vmmov %vm11037_vm6 }
 0xa4e   : > { %v5769_v42 = vsel %vm11042_vm14, %v10371_v7, 0  ;;  %v10535_v3 = vpop.permute.xlu0 %7902  ;;  %vm11046_vm2 = vmmov %vm11045_vm1  ;;  %vm11057_vm14 = vcmask 7168  }
 0xa4f   : > { %5412 = vrot.lane.b32.xlu0 %v5395_v1, %s8391_s0  ;;  %vm11048_vm4 = vmmov %vm11045_vm1 }
 0xa50   : > { %5502 = vrot.lane.b32.xlu1 %v5486_v57, %s8387_s30  ;;  %v10539_v35 = vpop.permute.xlu1 %7897  ;;  %v5934_v57 = vsel %vm3342_vm8, %v10351_v22, 0  ;;  %vm11054_vm13 = vmmov %vm11053_vm7 }
 0xa51   : > { %vm11055_vm10 = vmmov %vm11053_vm7 }
 0xa52   : > { %vm11056_vm5 = vmmov %vm11053_vm7 }
 0xa53   : > { %5454 = vrot.lane.b32.xlu0 %v5437_v8, %s8390_s19  ;;  %v5606_v8 = vsel %vm3343_vm3, %v10330_v6, 0 }
 0xa54   : > { %5694 = vrot.lane.b32.xlu1 %v10351_v22, %s8389_s4 }
 0xa57   : > { %5696 = vrot.lane.b32.xlu0 %v10353_v24, %s8389_s4 }
 0xa58   : > { %5658 = vrot.lane.b32.xlu1 %v5645_v10, %s8388_s14 }
 0xa5b   : > { %5826 = vrot.lane.b32.xlu0 %v5814_v62, %s8387_s30 }
 0xa5c   : > { %5736 = vrot.lane.b32.xlu1 %v5723_v39, %s8391_s0  ;;  %v5605_v39 = vsel %vm3342_vm8, %v10327_v43, 0 }
 0xa5f   : > { %5660 = vrot.lane.b32.xlu0 %v5646_v45, %s8388_s14 }
 0xa60   : > { %5778 = vrot.lane.b32.xlu1 %v5765_v40, %s8390_s19 }
 0xa63   : > { %5738 = vrot.lane.b32.xlu0 %v5724_v19, %s8391_s0  ;;  %v5938_v19 = vsel %vm3343_vm3, %v10371_v7, 0  ;;  %vm11047_vm3 = vmmov %vm11045_vm1 }
 0xa64   : > { %5828 = vrot.lane.b32.xlu1 %v5815_v49, %s8387_s30  ;;  %v5937_v49 = vsel %vm3342_vm8, %v10369_v11, 0  ;;  %vm11049_vm8 = vcmask 130048  }
 0xa65   : > { %vm11050_vm0 = vmmov %vm11049_vm8 }
 0xa66   : > { %vm11051_vm11 = vmmov %vm11050_vm0 }
 0xa67   : > { %5780 = vrot.lane.b32.xlu0 %v5766_v56, %s8390_s19  ;;  %v8399_v56 = vmov 8   ;;  %vm11052_vm6 = vmmov %vm11050_vm0 }
 0xa68   : > { %5702 = vrot.lane.b32.xlu1 %v10371_v7, %s8389_s4  ;;  %7936 = vset.pattern.permute.xlu0 %v8399_v56 }
 0xa69   : > { %7937 = vset.pattern.permute.xlu1 %v8399_v56 }
 0xa6b   : > { %5700 = vrot.lane.b32.xlu0 %v10369_v11, %s8389_s4 }
 0xa6c   : > { %5666 = vrot.lane.b32.xlu1 %v5649_v44, %s8388_s14  ;;  %v6014_v44 = vld [vmem:[%s10824_s2] sm:$0xff] }
 0xa6f   : > { %5664 = vrot.lane.b32.xlu0 %v5648_v5, %s8388_s14  ;;  %s8401_s14 = smov [#allocation14]  }
 0xa70   : > { %5500 = vrot.lane.b32.xlu1 %v5485_v21, %s8387_s30 }
 0xa73   : > { %5742 = vrot.lane.b32.xlu0 %v5726_v14, %s8391_s0  ;;  %v7864_v14 = vunpack.i.l.bf16 %v10491_v31 }
 0xa74   : > { %5832 = vrot.lane.b32.xlu1 %v5817_v38, %s8387_s30 }
 0xa77   : > { %5784 = vrot.lane.b32.xlu0 %v5768_v60, %s8390_s19  ;;  %v6016_v60 = vld [vmem:[%s10824_s2 + $0x10] sm:$0xff] }
 0xa78   : > { %7907 = vrot.lane.b32.xlu1 %v10970_v20, %s11040_s16 }
 0xa7b   : > { %5538 = vrot.lane.b32.xlu0 %v5525_v41, %s11040_s16 }
 0xa7c   : > { %5744 = vrot.lane.b32.xlu1 %v5727_v34, %s8391_s0 }
 0xa7f   : > { %5536 = vrot.lane.b32.xlu0 %v5524_v16, %s11040_s16 }
 0xa80   : > { %5870 = vrot.lane.b32.xlu1 %v5857_v33, %s11040_s16 }
 0xa83   : > { %5868 = vrot.lane.b32.xlu0 %v5856_v32, %s11040_s16  ;;  %v7869_v32 = vunpack.i.l.bf16 %v10499_v37 }
 0xa84   : > { %5786 = vrot.lane.b32.xlu1 %v5769_v42, %s8390_s19  ;;  %s8296_s19 = sshll.u32 %s8401_s14, 4  ;;  %s8297_s19 = int_to_ptr.vmem [resolvable:$false] %s8296_s19 }
 0xa85   : > { %s8298_s0 = scalar_lea.vmem %s8297_s19, 2048 }
 0xa87   : > { %7912 = vrot.lane.b32.xlu0 %v10970_v20, %s11040_s16 }
 0xa88   : > { %5544 = vrot.lane.b32.xlu1 %v5528_v30, %s11040_s16 }
 0xa8b   : > { %5574 = vrot.lane.b32.xlu0 %v10310_v4, %s11043_s29 }
 0xa8c   : > { %5542 = vrot.lane.b32.xlu1 %v5527_v50, %s11040_s16 }
 0xa8f   : > { %5572 = vrot.lane.b32.xlu0 %v10308_v2, %s11043_s29 }
 0xa90   : > { %5874 = vrot.lane.b32.xlu1 %v5859_v15, %s11040_s16  ;;  %v8400_v15 = vmov 9  }
 0xa93   : > { %5904 = vrot.lane.b32.xlu0 %v10351_v22, %s11043_s29 }
 0xa94   : > { %7917 = vrot.lane.b32.xlu1 %v10970_v20, %s11043_s29 }
 0xa97   : > { %5834 = vrot.lane.b32.xlu0 %v5818_v9, %s8387_s30  ;;  %s11044_s30 = smov 111  }
 0xa98   : > { %5906 = vrot.lane.b32.xlu1 %v10353_v24, %s11043_s29 }
 0xa9b   : > { %7922 = vrot.lane.b32.xlu0 %v10970_v20, %s11043_s29 }
 0xa9c   : > { %5580 = vrot.lane.b32.xlu1 %v10330_v6, %s11043_s29 }
 0xa9f   : > { %5876 = vrot.lane.b32.xlu0 %v5860_v47, %s11040_s16  ;;  %s11088_s16 = sld [smem:[#allocation41_spill]] }
 0xaa0   : > { %5578 = vrot.lane.b32.xlu1 %v10327_v43, %s11043_s29 }
 0xaa1   : > { %v10547_v36 = vpop.permute.xlu0 %5362 }
 0xaa2   : > { %v5365_v27 = vpop.permute.xlu1 %5364  ;;  %v5372_v50 = vsel %vm11050_vm0, %v7869_v32, %v10547_v36  ;;  %vm11062_vm0 = vcmask 1039360  }
 0xaa3   : > { %5912 = vrot.lane.b32.xlu0 %v10371_v7, %s11043_s29  ;;  %v5373_v33 = vsel %vm11049_vm8, %v10547_v36, %v5365_v27 }
 0xaa4   : > { %5910 = vrot.lane.b32.xlu1 %v10369_v11, %s11043_s29 }
 0xaa5   : > { %v5327_v13 = vpop.permute.xlu0 %5326  ;;  %s10772_s29 = scalar_lea.hbm %s11088_s16, %s6667_s25 }
 0xaa6   : > { %v5329_v0 = vpop.permute.xlu1 %5328  ;;  %v5336_v59 = vsel %vm11046_vm2, %v7859_v28, %v5327_v13  ;;  %vm11058_vm2 = vmmov %vm11057_vm14 }
 0xaa7   : > { %5616 = vrot.lane.b32.xlu0 %v5603_v12, %s11044_s30  ;;  %v5337_v48 = vsel %vm11045_vm1, %v5327_v13, %v5329_v0  ;;  %v7879_v13 = vunpack.i.l.bf16 %v10514_v46  ;;  %vm11061_vm8 = vmmov %vm11058_vm2 }
 0xaa8   : > { %7927 = vrot.lane.b32.xlu1 %v10970_v20, %s11044_s30  ;;  %6074 = vmatprep.subr.bf16.mxu0 %v5337_v48 }
 0xaa9   : > { %6075 = vmatpush1.bf16.msra.mxu0 %v5336_v59  ;;  %v10562_v54 = vpop.permute.xlu0 %5404  ;;  %v7884_v59 = vunpack.i.l.bf16 %v10517_v52 }
 0xaaa   : > { %v5407_v23 = vpop.permute.xlu1 %5406  ;;  %v5414_v12 = vsel %vm11054_vm13, %v7879_v13, %v10562_v54  ;;  %vm11066_vm13 = vmmov %vm11062_vm0 }
 0xaab   : > { %5614 = vrot.lane.b32.xlu0 %v5602_v61, %s11044_s30  ;;  %v5415_v36 = vsel %vm11053_vm7, %v10562_v54, %v5407_v23  ;;  %v7860_v54 = vunpack.i.h.bf16 %v10488_v55  ;;  %v7894_v55 = vunpack.i.l.bf16 %v10528_v51  ;;  %vm11065_vm7 = vmmov %vm11062_vm0 }
 0xaac   : > { %5948 = vrot.lane.b32.xlu1 %v5935_v26, %s11044_s30 }
 0xaad   : > { %v10572_v25 = vpop.permute.xlu0 %5446 }
 0xaae   : > { %v10574_v1 = vpop.permute.xlu1 %5448 }
 0xaaf   : > { %5946 = vrot.lane.b32.xlu0 %v5934_v57, %s11044_s30  ;;  %v5457_v57 = vsel %vm11057_vm14, %v10572_v25, %v10574_v1  ;;  %vm11069_vm14 = vmmov %vm11062_vm0 }
 0xab0   : > { %5622 = vrot.lane.b32.xlu1 %v5606_v8, %s11044_s30  ;;  %v7889_v8 = vunpack.i.l.bf16 %v10523_v53 }
 0xab1   : > { %v10584_v10 = vpop.permute.xlu0 %5494 }
 0xab2   : > { %v5369_v62 = vpop.permute.xlu1 %5368 }
 0xab3   : > { %7932 = vrot.lane.b32.xlu0 %v10970_v20, %s11044_s30  ;;  %v5374_v27 = vsel %vm11052_vm6, %v7874_v63, %v5369_v62  ;;  %vm11064_vm6 = vmmov %vm11045_vm1 }
 0xab4   : > { %5620 = vrot.lane.b32.xlu1 %v5605_v39, %s11044_s30 }
 0xab5   : > { %v10592_v45 = vpop.permute.xlu0 %5496 }
 0xab6   : > { %v5333_v40 = vpop.permute.xlu1 %5332 }
 0xab7   : > { %5954 = vrot.lane.b32.xlu0 %v5938_v19, %s11044_s30  ;;  %v5338_v16 = vsel %vm11048_vm4, %v7864_v14, %v5333_v40  ;;  %v5456_v19 = vsel %vm11058_vm2, %v7889_v8, %v10572_v25  ;;  %vm11060_vm4 = vmmov %vm11058_vm2 }
 0xab8   : > { %5952 = vrot.lane.b32.xlu1 %v5937_v49, %s11044_s30 }
 0xab9   : > { %v5371_v5 = vpop.permute.xlu0 %5370 }
 0xaba   : > { %v5411_v21 = vpop.permute.xlu1 %5410  ;;  %v5375_v9 = vsel %vm11051_vm11, %v5369_v62, %v5371_v5  ;;  %vm11063_vm11 = vmmov %vm11045_vm1 }
 0xabb   : > { %6020 = vperm.xlu0 %7936, %v6014_v44   ;;  %v5416_v23 = vsel %vm11056_vm5, %v7884_v59, %v5411_v21 }
 0xabc   : > { %6025 = vperm.xlu1 %7937, %v6015_v29  }
 0xabd   : > { %v5335_v38 = vpop.permute.xlu0 %5334 }
 0xabe   : > { %v5453_v41 = vpop.permute.xlu1 %5452  ;;  %v5339_v34 = vsel %vm11047_vm3, %v5333_v40, %v5335_v38  ;;  %vm11059_vm3 = vmmov %vm11045_vm1  ;;  %v7865_v38 = vunpack.i.h.bf16 %v10491_v31 }
 0xabf   : > { %6076 = vmatprep.subr.bf16.mxu0 %v5339_v34  ;;  %6035 = vperm.xlu0 %7936, %v6017_v17   ;;  %v5458_v5 = vsel %vm11061_vm8, %v7894_v55, %v5453_v41 }
 0xac0   : > { %6077 = vmatpush1.bf16.msra.mxu0 %v5338_v16  ;;  %6030 = vperm.xlu1 %7937, %v6016_v60   ;;  %v5506_v16 = vsel %vm11065_vm7, %v10584_v10, %v10592_v45 }
 0xac1   : > { %6078 = vmatprep.subr.bf16.mxu0 %v5373_v33  ;;  %v5413_v42 = vpop.permute.xlu0 %5412  ;;  %v7870_v33 = vunpack.i.h.bf16 %v10499_v37 }
 0xac2   : > { %v10620_v30 = vpop.permute.xlu1 %5502  ;;  %v5417_v48 = vsel %vm11055_vm10, %v5411_v21, %v5413_v42  ;;  %vm11067_vm10 = vcmask 130048  }
 0xac3   : > { %7939 = vset.pattern.permute.xlu0 %v8400_v15  ;;  %vm11068_vm5 = vmmov %vm11067_vm10 }
 0xac4   : > { %6079 = vmatpush1.bf16.msra.mxu0 %v5372_v50  ;;  %7938 = vset.pattern.permute.xlu1 %v8400_v15  ;;  %v7875_v15 = vunpack.i.h.bf16 %v10501_v58 }
 0xac5   : > { %6080 = vmatprep.subr.bf16.mxu0 %v5375_v9  ;;  %v5455_v47 = vpop.permute.xlu0 %5454  ;;  %6225 = vperm.xlu1 %7938, %v6014_v44  }
 0xac6   : > { %v10626_v18 = vpop.permute.xlu1 %5694  ;;  %6229 = vperm.xlu0 %7939, %v6015_v29   ;;  %v5459_v1 = vsel %vm11060_vm4, %v5453_v41, %v5455_v47 }
 0xac7   : > { %v5704_v50 = vsel %vm11068_vm5, %v7870_v33, %v10626_v18 }
 0xac8   : > { %6081 = vmatpush1.bf16.msra.mxu0 %v5374_v27 }
 0xac9   : > { %6082 = vmatprep.subr.bf16.mxu0 %v5415_v36  ;;  %v5697_v28 = vpop.permute.xlu0 %5696  ;;  %6233 = vperm.xlu1 %7938, %v6016_v60  }
 0xaca   : > { %v5659_v0 = vpop.permute.xlu1 %5658  ;;  %v5705_v31 = vsel %vm11067_vm10, %v10626_v18, %v5697_v28  ;;  %vm11080_vm10 = vmmov %vm11069_vm14 }
 0xacb   : > { %v5668_v49 = vsel %vm11059_vm3, %v7860_v54, %v5659_v0  ;;  %vm11072_vm3 = vcmask 121856  }
 0xacc   : > { %6083 = vmatpush1.bf16.msra.mxu0 %v5414_v12  ;;  %vm11073_vm4 = vmmov %vm11072_vm3 }
 0xacd   : > { %6084 = vmatprep.subr.bf16.mxu0 %v5417_v48  ;;  %v10636_v61 = vpop.permute.xlu0 %5826  ;;  %6237 = vperm.xlu1 %7938, %v6017_v17   ;;  %v7899_v17 = vunpack.i.l.bf16 %v10539_v35  ;;  %vm11074_vm8 = vmmov %vm11072_vm3 }
 0xace   : > { %v10638_v26 = vpop.permute.xlu1 %5736 }
 0xacf   : > { %v5507_v60 = vsel %vm11062_vm0, %v10592_v45, %v7899_v17  ;;  %vm11075_vm0 = vmmov %vm11072_vm3 }
 0xad0   : > { %6085 = vmatpush1.bf16.msra.mxu0 %v5416_v23 }
 0xad1   : > { %6086 = vmatprep.subr.bf16.mxu0 %v5457_v57  ;;  %v5661_v62 = vpop.permute.xlu0 %5660 }
 0xad2   : > { %v10646_v39 = vpop.permute.xlu1 %5778  ;;  %v5669_v40 = vsel %vm11045_vm1, %v5659_v0, %v5661_v62  ;;  %vm11070_vm1 = vmmov %vm11068_vm5  ;;  %v7885_v0 = vunpack.i.h.bf16 %v10517_v52  ;;  %v7895_v62 = vunpack.i.h.bf16 %v10528_v51 }
 0xad3   : > { %6276 = vmatprep.subr.bf16.mxu1 %v5669_v40  ;;  %vm11071_vm2 = vmmov %vm11070_vm1 }
 0xad4   : > { %6087 = vmatpush1.bf16.msra.mxu0 %v5456_v19  ;;  %6277 = vmatpush1.bf16.msra.mxu1 %v5668_v49  ;;  %vm11081_vm5 = vmmov %vm11080_vm10 }
 0xad5   : > { %6088 = vmatprep.subr.bf16.mxu0 %v5459_v1  ;;  %v5739_v56 = vpop.permute.xlu0 %5738 }
 0xad6   : > { %v10654_v44 = vpop.permute.xlu1 %5828  ;;  %v5747_v18 = vsel %vm11072_vm3, %v10638_v26, %v5739_v56 }
 0xad7   : > { %v5838_v17 = vsel %vm11081_vm5, %v10636_v61, %v10654_v44 }
 0xad8   : > { %6089 = vmatpush1.bf16.msra.mxu0 %v5458_v5  ;;  %v7900_v5 = vunpack.i.h.bf16 %v10539_v35 }
 0xad9   : > { %6090 = vmatprep.subr.bf16.mxu0 %v10310_v4  ;;  %v5781_v29 = vpop.permute.xlu0 %5780  ;;  %v7904_v4 = vunpack.i.l.bf16 %v10535_v3 }
 0xada   : > { %v5703_v25 = vpop.permute.xlu1 %5702 }
 0xadc   : > { %6091 = vmatpush1.bf16.msra.mxu0 %v10308_v2 }
 0xadd   : > { %6092 = vmatprep.subr.bf16.mxu0 %v10330_v6  ;;  %v5701_v21 = vpop.permute.xlu0 %5700 }
 0xade   : > { %v5667_v14 = vpop.permute.xlu1 %5666  ;;  %v5707_v45 = vsel %vm11070_vm1, %v5701_v21, %v5703_v25  ;;  %v5706_v63 = vsel %vm11071_vm2, %v7875_v15, %v5701_v21  ;;  %v5839_v25 = vsel %vm11080_vm10, %v10654_v44, %v7900_v5  ;;  %vm11083_vm1 = vmmov %vm11081_vm5  ;;  %v7986_v15 = vld [vmem:[#allocation10 + $0xac] ss:$12 sps:$4 sm:$0xff]  }
 0xae0   : > { %6093 = vmatpush1.bf16.msra.mxu0 %v10327_v43  ;;  %v5509_v43 = vsel %vm11066_vm13, %v10620_v30, %v7904_v4 }
 0xae1   : > { %6094 = vmatprep.subr.bf16.mxu0 %v5507_v60  ;;  %v5665_v41 = vpop.permute.xlu0 %5664 }
 0xae2   : > { %v5670_v34 = vsel %vm11063_vm11, %v7865_v38, %v5665_v41  ;;  %v5501_v2 = vpop.permute.xlu1 %5500  ;;  %v5671_v6 = vsel %vm11064_vm6, %v5665_v41, %v5667_v14  ;;  %vm11076_vm11 = vcmask 7168  }
 0xae3   : > { %6278 = vmatprep.subr.bf16.mxu1 %v5671_v6  ;;  %v5508_v10 = vsel %vm11069_vm14, %v5501_v2, %v10620_v30  ;;  %v7880_v30 = vunpack.i.h.bf16 %v10514_v46  ;;  %v5789_v23 = vsel %vm11076_vm11, %v10646_v39, %v5781_v29  ;;  %vm11077_vm6 = vmmov %vm11076_vm11 }
 0xae4   : > { %6095 = vmatpush1.bf16.msra.mxu0 %v5506_v16  ;;  %6279 = vmatpush1.bf16.msra.mxu1 %v5670_v34  ;;  %vm11078_vm7 = vmmov %vm11077_vm6 }
 0xae5   : > { %6096 = vmatprep.subr.bf16.mxu0 %v5509_v43  ;;  %6280 = vmatprep.subr.bf16.mxu1 %v5705_v31  ;;  %v5743_v32 = vpop.permute.xlu0 %5742  ;;  %v5746_v58 = vsel %vm11073_vm4, %v7880_v30, %v10638_v26  ;;  %v7890_v26 = vunpack.i.h.bf16 %v10523_v53  ;;  %vm11079_vm13 = vmmov %vm11077_vm6 }
 0xae6   : > { %v10676_v42 = vpop.permute.xlu1 %5832  ;;  %v5748_v46 = vsel %vm11075_vm0, %v7885_v0, %v5743_v32  ;;  %vm11082_vm14 = vmmov %vm11081_vm5 }
 0xae7   : > { %v5788_v52 = vsel %vm11077_vm6, %v7890_v26, %v10646_v39 }
 0xae8   : > { %6097 = vmatpush1.bf16.msra.mxu0 %v5508_v10  ;;  %6281 = vmatpush1.bf16.msra.mxu1 %v5704_v50  ;;  %v7980_v10 = vld [vmem:[#allocation10 + $0x90] ss:$12 sps:$4 sm:$0xff]  }
 0xae9   : > { %6282 = vmatprep.subr.bf16.mxu1 %v5707_v45  ;;  %v5785_v9 = vpop.permute.xlu0 %5784 }
 0xaea   : > { %v10684_v37 = vpop.permute.xlu1 %7907  ;;  %v5790_v1 = vsel %vm11079_vm13, %v7895_v62, %v5785_v9 }
 0xaeb   : > { %v7909_v47 = vunpack.i.l.bf16 %v10684_v37  ;;  %v7910_v38 = vunpack.i.h.bf16 %v10684_v37 }
 0xaec   : > { %6283 = vmatpush1.bf16.msra.mxu1 %v5706_v63 }
 0xaed   : > { %6284 = vmatprep.subr.bf16.mxu1 %v5747_v18  ;;  %v5539_v27 = vpop.permute.xlu0 %5538 }
 0xaee   : > { %v5745_v36 = vpop.permute.xlu1 %5744  ;;  %v5549_v13 = vsel %vm2880_vm12, %v5539_v27, %v7909_v47 }
 0xaef   : > { %6098 = vmatprep.subr.bf16.mxu0 %v5549_v13  ;;  %v5749_v28 = vsel %vm11074_vm8, %v5743_v32, %v5745_v36 }
 0xaf0   : > { %6285 = vmatpush1.bf16.msra.mxu1 %v5746_v58  ;;  %v7983_v58 = vld [vmem:[#allocation10 + $0xc0] ss:$12 sps:$4 sm:$0xff]  }
 0xaf1   : > { %6286 = vmatprep.subr.bf16.mxu1 %v5749_v28  ;;  %v5537_v12 = vpop.permute.xlu0 %5536  ;;  %v7988_v28 = vld [vmem:[#allocation10 + $0xa8] ss:$12 sps:$4 sm:$0xff]  }
 0xaf2   : > { %v5548_v48 = vsel %vm2880_vm12, %v5537_v12, %v5539_v27  ;;  %v5871_v59 = vpop.permute.xlu1 %5870 }
 0xaf3   : > { %6099 = vmatpush1.bf16.msra.mxu0 %v5548_v48 }
 0xaf4   : > { %6287 = vmatpush1.bf16.msra.mxu1 %v5748_v46 }
 0xaf5   : > { %6288 = vmatprep.subr.bf16.mxu1 %v5789_v23  ;;  %v5869_v57 = vpop.permute.xlu0 %5868 }
 0xaf6   : > { %v5787_v54 = vpop.permute.xlu1 %5786  ;;  %v5880_v2 = vsel %vm2880_vm12, %v5869_v57, %v5871_v59 }
 0xaf7   : > { %v5791_v8 = vsel %vm11078_vm7, %v5785_v9, %v5787_v54 }
 0xaf8   : > { %6289 = vmatpush1.bf16.msra.mxu1 %v5788_v52 }
 0xaf9   : > { %6290 = vmatprep.subr.bf16.mxu1 %v5791_v8  ;;  %v7913_v40 = vpop.permute.xlu0 %7912  ;;  %v7991_v8 = vld [vmem:[#allocation10 + $0xd8] ss:$12 sps:$4 sm:$0xff]  }
 0xafa   : > { %v7914_v19 = vunpack.i.l.bf16 %v7913_v40  ;;  %v5545_v49 = vpop.permute.xlu1 %5544  ;;  %v7915_v6 = vunpack.i.h.bf16 %v7913_v40 }
 0xafc   : > { %6291 = vmatpush1.bf16.msra.mxu1 %v5790_v1  ;;  %v5551_v53 = vsel %vm2880_vm12, %v5545_v49, %v7914_v19 }
 0xafd   : > { %6292 = vmatprep.subr.bf16.mxu1 %v10353_v24  ;;  %v5575_v55 = vpop.permute.xlu0 %5574  ;;  %6100 = vmatprep.subr.bf16.mxu0 %v5551_v53 }
 0xafe   : > { %v5543_v56 = vpop.permute.xlu1 %5542 }
 0xaff   : > { %v5550_v39 = vsel %vm2880_vm12, %v5543_v56, %v5545_v49  ;;  %v7992_v56 = vld [vmem:[#allocation10 + $0x98] ss:$12 sps:$4 sm:$0xff]  }
 0xb00   : > { %6101 = vmatpush1.bf16.msra.mxu0 %v5550_v39  ;;  %6293 = vmatpush1.bf16.msra.mxu1 %v10351_v22  ;;  %v7905_v22 = vunpack.i.h.bf16 %v10535_v3  ;;  %v5881_v3 = vsel %vm2880_vm12, %v5871_v59, %v7910_v38  ;;  %v7989_v59 = vld [vmem:[#allocation10 + $0xdc] ss:$12 sps:$4 sm:$0xff]  }
 0xb01   : > { %6294 = vmatprep.subr.bf16.mxu1 %v10371_v7  ;;  %v5573_v51 = vpop.permute.xlu0 %5572 }
 0xb02   : > { %v5875_v29 = vpop.permute.xlu1 %5874 }
 0xb04   : > { %6295 = vmatpush1.bf16.msra.mxu1 %v10369_v11  ;;  %v5584_v11 = vsel %vm3300_vm15, %v5573_v51, %v5575_v55 }
 0xb05   : > { %6296 = vmatprep.subr.bf16.mxu1 %v5839_v25  ;;  %v5905_v24 = vpop.permute.xlu0 %5904  ;;  %v7994_v25 = vld [vmem:[#allocation10 + $0xb0] ss:$12 sps:$4 sm:$0xff]  }
 0xb06   : > { %v7918_v21 = vpop.permute.xlu1 %7917 }
 0xb07   : > { %v7919_v14 = vunpack.i.l.bf16 %v7918_v21  ;;  %v7920_v31 = vunpack.i.h.bf16 %v7918_v21 }
 0xb08   : > { %6297 = vmatpush1.bf16.msra.mxu1 %v5838_v17 }
 0xb09   : > { %v5835_v7 = vpop.permute.xlu0 %5834  ;;  %v5585_v35 = vsel %vm3300_vm15, %v5575_v55, %v7919_v14 }
 0xb0a   : > { %v5840_v60 = vsel %vm11082_vm14, %v10676_v42, %v5835_v7  ;;  %v5907_v41 = vpop.permute.xlu1 %5906  ;;  %6102 = vmatprep.subr.bf16.mxu0 %v5585_v35  ;;  %v5841_v4 = vsel %vm11083_vm1, %v5835_v7, %v7905_v22  ;;  %v6382_v35 = vld [vmem:[%s8706_s21] sm:$0xff] }
 0xb0b   : > { %6103 = vmatpush1.bf16.msra.mxu0 %v5584_v11  ;;  %6298 = vmatprep.subr.bf16.mxu1 %v5841_v4  ;;  %v5917_v45 = vsel %vm3300_vm15, %v5907_v41, %v7920_v31  ;;  %v5916_v47 = vsel %vm3300_vm15, %v5905_v24, %v5907_v41  ;;  %v7995_v24 = vld [vmem:[#allocation10 + $0xe0] ss:$12 sps:$4 sm:$0xff]  }
 0xb0c   : > { %6299 = vmatpush1.bf16.msra.mxu1 %v5840_v60  ;;  %v6383_v41 = vld [vmem:[%s8706_s21 + $0x8] sm:$0xff] }
 0xb0d   : > { %6300 = vmatprep.subr.bf16.mxu1 %v5881_v3  ;;  %v7923_v61 = vpop.permute.xlu0 %7922 }
 0xb0e   : > { %v7924_v44 = vunpack.i.l.bf16 %v7923_v61  ;;  %v5581_v34 = vpop.permute.xlu1 %5580  ;;  %v7925_v37 = vunpack.i.h.bf16 %v7923_v61  ;;  %v6384_v61 = vld [vmem:[%s8706_s21 + $0x10] sm:$0xff] }
 0xb10   : > { %6301 = vmatpush1.bf16.msra.mxu1 %v5880_v2  ;;  %v5587_v16 = vsel %vm3300_vm15, %v5581_v34, %v7924_v44 }
 0xb11   : > { %v5877_v43 = vpop.permute.xlu0 %5876  ;;  %6104 = vmatprep.subr.bf16.mxu0 %v5587_v16 }
 0xb12   : > { %v5882_v33 = vsel %vm2880_vm12, %v5875_v29, %v5877_v43  ;;  %v5579_v32 = vpop.permute.xlu1 %5578  ;;  %v5883_v42 = vsel %vm2880_vm12, %v5877_v43, %v7915_v6  ;;  %v7993_v29 = vld [vmem:[#allocation10 + $0xc8] ss:$12 sps:$4 sm:$0xff]   ;;  %vm11084_vm12 = vcmask 261120   ;;  %v6385_v43 = vld [vmem:[%s8706_s21 + $0x18] sm:$0xff] }
 0xb13   : > { %v5586_v50 = vsel %vm3300_vm15, %v5579_v32, %v5581_v34  ;;  %6302 = vmatprep.subr.bf16.mxu1 %v5883_v42  ;;  %vm11086_vm2 = vmmov %vm11084_vm12 }
 0xb14   : > { %6105 = vmatpush1.bf16.msra.mxu0 %v5586_v50  ;;  %6303 = vmatpush1.bf16.msra.mxu1 %v5882_v33  ;;  %vm11087_vm3 = vmmov %vm11086_vm2 }
 0xb15   : > { %v5913_v9 = vpop.permute.xlu0 %5912  ;;  %6304 = vmatprep.subr.bf16.mxu1 %v5917_v45 }
 0xb16   : > { %v5911_v63 = vpop.permute.xlu1 %5910  ;;  %v5919_v18 = vsel %vm3300_vm15, %v5913_v9, %v7925_v37 }
 0xb17   : > { %6107 = vmatmul.mubr.bf16.vlgmr.msra.gmra.mrb[32].mxu0 %v7980_v10  ;;  %v5918_v36 = vsel %vm3300_vm15, %v5911_v63, %v5913_v9  ;;  %vm11085_vm15 = vmmov %vm11084_vm12 }
 0xb18   : > { %6305 = vmatpush1.bf16.msra.mxu1 %v5916_v47  ;;  %6116 = vmatprep.mubr.bf16.mxu0 %v7986_v15 }
 0xb19   : > { %v5617_v30 = vpop.permute.xlu0 %5616  ;;  %6306 = vmatprep.subr.bf16.mxu1 %v5919_v18 }
 0xb1a   : > { %v7928_v27 = vpop.permute.xlu1 %7927 }
 0xb1b   : > { %v7929_v13 = vunpack.i.l.bf16 %v7928_v27  ;;  %v7930_v0 = vunpack.i.h.bf16 %v7928_v27 }
 0xb1c   : > { %6307 = vmatpush1.bf16.msra.mxu1 %v5918_v36 }
 0xb1d   : > { %v5615_v12 = vpop.permute.xlu0 %5614  ;;  %v5627_v48 = vsel %vm2692_vm9, %v5617_v30, %v7929_v13 }
 0xb1e   : > { %v5626_v46 = vsel %vm2692_vm9, %v5615_v12, %v5617_v30  ;;  %v5949_v23 = vpop.permute.xlu1 %5948  ;;  %6127 = vmatprep.subr.bf16.mxu0 %v5627_v48 }
 0xb1f   : > { %6128 = vmatpush1.bf16.msra.mxu0 %v5626_v46  ;;  %6309 = vmatmul.mubr.bf16.vlgmr.msra.gmra.mrb[32].mxu1 %v7983_v58  ;;  %v5959_v26 = vsel %vm2692_vm9, %v5949_v23, %v7930_v0 }
 0xb20   : > { %6329 = vmatprep.subr.bf16.mxu1 %v5959_v26  ;;  %6117 = vmatmul.mubr.bf16.gmra.mrb[36].mxu0 %v7988_v28  ;;  %v6386_v28 = vld [vmem:[%s8706_s21 + $0x20] sm:$0xff] }
 0xb21   : > { %v5947_v57 = vpop.permute.xlu0 %5946  ;;  %6318 = vmatprep.mubr.bf16.mxu1 %v7989_v59  ;;  %6159 = vmatprep.mubr.bf16.mxu0 %v10970_v20  ;;  %v6387_v59 = vld [vmem:[%s8706_s21 + $0x28] sm:$0xff] }
 0xb22   : > { %v5958_v54 = vsel %vm2692_vm9, %v5947_v57, %v5949_v23  ;;  %v5623_v52 = vpop.permute.xlu1 %5622  ;;  %v6388_v57 = vld [vmem:[%s8706_s21 + $0x30] sm:$0xff] }
 0xb23   : > { %6330 = vmatpush1.bf16.msra.mxu1 %v5958_v54 }
 0xb25   : > { %v7933_v62 = vpop.permute.xlu0 %7932 }
 0xb26   : > { %v7934_v40 = vunpack.i.l.bf16 %v7933_v62  ;;  %v5621_v19 = vpop.permute.xlu1 %5620  ;;  %v7935_v49 = vunpack.i.h.bf16 %v7933_v62 }
 0xb27   : > { %6319 = vmatmul.mubr.bf16.gmra.mrb[36].mxu1 %v7991_v8  ;;  %v5628_v53 = vsel %vm2692_vm9, %v5621_v19, %v5623_v52  ;;  %v6389_v19 = vld [vmem:[%s8706_s21 + $0x38] sm:$0xff]  ;;  %s6436_s21 = sshll.u32 %s10757_s27, 4  ;;  %s10775_s21 = int_to_ptr.vmem [resolvable:$true] %s6436_s21 }
 0xb28   : > { %v5629_v1 = vsel %vm2692_vm9, %v5623_v52, %v7934_v40  ;;  %6361 = vmatprep.mubr.bf16.mxu1 %v10970_v20  ;;  %s8292_s30 = scalar_lea.vmem %s10775_s21, 1024  ;;  %p8299_p8 = scmp.lt.s32.totalorder %s10775_s21, %s8297_s19 }
 0xb29   : > { %v5955_v55 = vpop.permute.xlu0 %5954  ;;  %6129 = vmatprep.subr.bf16.mxu0 %v5629_v1  ;;  %p8293_p1 = scmp.ne.s32.totalorder %s10775_s21, %s8292_s30  ;;  %p8300_p6 = scmp.lt.s32.totalorder %s8298_s0, %s8292_s30 }
 0xb2a   : > { %v5953_v39 = vpop.permute.xlu1 %5952  ;;  %6130 = vmatpush1.bf16.msra.mxu0 %v5628_v53  ;;  %v5961_v51 = vsel %vm2692_vm9, %v5955_v55, %v7935_v49 }
 0xb2b   : > { %v5960_v5 = vsel %vm2692_vm9, %v5953_v39, %v5955_v55  ;;  %6331 = vmatprep.subr.bf16.mxu1 %v5961_v51  ;;  %p8294_p4 = pnand %p8293_p1, %p8595_p5  ;;  %p8301_p10 = por %p8300_p6, %p8299_p8 }
 0xb2c   : > { %6332 = vmatpush1.bf16.msra.mxu1 %v5960_v5 }
 0xb2d   : > { %6650 = vmatmul.mubr.msk.bf16.vlgmr.msra.gmra.mrb[32].mxu0 %vm11084_vm12, %v7992_v56  ;;  %p8295_p0 = pneg %p8294_p4 }
 0xb2e   : > { %6169 = vmatprep.mubr.bf16.mxu0 %v10970_v20 }
 0xb2f   : > { %6658 = vmatmul.mubr.msk.bf16.vlgmr.msra.gmra.mrb[32].mxu1 %vm11085_vm15, %v7993_v29  ;;  %p8302_p3 = pnand %p8301_p10, %p8295_p0 }
 0xb30   : > { %6371 = vmatprep.mubr.bf16.mxu1 %v10970_v20 }
 0xb35   : > { %6651 = vmatmul.mubr.msk.bf16.gmra.mrb[36].mxu0 %vm11086_vm2, %v7994_v25 }
 0xb37   : > { %6659 = vmatmul.mubr.msk.bf16.gmra.mrb[36].mxu1 %vm11087_vm3, %v7995_v24 }
 0xb3a   : > { %v6021_v17 = vpop.permute.xlu0 %6020 }
 0xb3b   : > { %v6026_v21 = vpop.permute.xlu1 %6025 }
 0xb3e   : > { %v6036_v22 = vpop.permute.xlu0 %6035 }
 0xb3f   : > { %v6031_v14 = vpop.permute.xlu1 %6030 }
 0xb44   : > { %v6226_v38 = vpop.permute.xlu1 %6225 }
 0xb45   : > { %v6230_v4 = vpop.permute.xlu0 %6229 }
 0xb48   : > { %v6234_v18 = vpop.permute.xlu1 %6233 }
 0xb4c   : > { %v6238_v53 = vpop.permute.xlu1 %6237 }
 0xc00   : > { %v6161_v7 = vpop.f32.mrb[32].mxu0 }
 0xc01   : > { %v7444_v11 = vadd.f32 %v6161_v7, %v6021_v17  ;;  %v6163_v60 = vpop.f32.mrb[33].mxu0 }
 0xc02   : > { %v7445_v20 = vadd.f32 %v6163_v60, %v6021_v17  ;;  %v6165_v3 = vpop.f32.mrb[34].mxu0  ;;  %v6363_v44 = vpop.f32.mrb[32].mxu1 }
 0xc03   : > { %v6390_v34 = vmul.f32 %v7444_v11, %v6382_v35  ;;  %v7446_v2 = vadd.f32 %v6165_v3, %v6026_v21  ;;  %v7452_v6 = vadd.f32 %v6363_v44, %v6226_v38  ;;  %v6167_v16 = vpop.f32.mrb[35].mxu0  ;;  %v6365_v31 = vpop.f32.mrb[33].mxu1 }
 0xc04   : > { %v6391_v33 = vmul.f32 %v7445_v20, %v6383_v41  ;;  %v7447_v32 = vadd.f32 %v6167_v16, %v6026_v21  ;;  %v7453_v42 = vadd.f32 %v6365_v31, %v6226_v38  ;;  %v6367_v50 = vpop.f32.mrb[34].mxu1 }
 0xc05   : > { %v6392_v10 = vmul.f32 %v7446_v2, %v6384_v61  ;;  %v6398_v45 = vadd.f32 %v7452_v6, %v6390_v34  ;;  %v7454_v15 = vadd.f32 %v6367_v50, %v6230_v4  ;;  %v6369_v9 = vpop.f32.mrb[35].mxu1 }
 0xc06   : > { %v6393_v37 = vmul.f32 %v7447_v32, %v6385_v43  ;;  %v6399_v63 = vadd.f32 %v7453_v42, %v6391_v33  ;;  %v7455_v47 = vadd.f32 %v6369_v9, %v6230_v4 }
 0xc07   : > { %v6406_v30 = vadd.f32 %v6398_v45, %v6382_v35  ;;  %v6400_v27 = vadd.f32 %v7454_v15, %v6392_v10 }
 0xc08   : > { %v6407_v36 = vadd.f32 %v6399_v63, %v6383_v41  ;;  %v6401_v13 = vadd.f32 %v7455_v47, %v6393_v37  ;;  %v6171_v58 = vpop.f32.mrb[36].mxu0 }
 0xc09   : > { %6414 = vst [vmem:[%s10757_s27] sm:$0xff] %v6406_v30  ;;  %v6408_v0 = vadd.f32 %v6400_v27, %v6384_v61  ;;  %v7448_v12 = vadd.f32 %v6171_v58, %v6031_v14  ;;  %v6173_v48 = vpop.f32.mrb[37].mxu0 }
 0xc0a   : > { %6415 = vst [vmem:[%s10757_s27 + $0x8] sm:$0xff] %v6407_v36  ;;  %v6409_v46 = vadd.f32 %v6401_v13, %v6385_v43  ;;  %v7449_v23 = vadd.f32 %v6173_v48, %v6031_v14  ;;  %v6175_v26 = vpop.f32.mrb[38].mxu0  ;;  %v6373_v54 = vpop.f32.mrb[36].mxu1 }
 0xc0b   : > { %6416 = vst [vmem:[%s10757_s27 + $0x10] sm:$0xff] %v6408_v0  ;;  %v6394_v52 = vmul.f32 %v7448_v12, %v6386_v28  ;;  %v7450_v8 = vadd.f32 %v6175_v26, %v6036_v22  ;;  %v7456_v62 = vadd.f32 %v6373_v54, %v6234_v18  ;;  %v6177_v40 = vpop.f32.mrb[39].mxu0  ;;  %v6375_v49 = vpop.f32.mrb[37].mxu1 }
 0xc0c   : > { %6417 = vst [vmem:[%s10757_s27 + $0x18] sm:$0xff] %v6409_v46  ;;  %v6395_v1 = vmul.f32 %v7449_v23, %v6387_v59  ;;  %v7451_v55 = vadd.f32 %v6177_v40, %v6036_v22  ;;  %v7457_v56 = vadd.f32 %v6375_v49, %v6234_v18  ;;  %v6377_v39 = vpop.f32.mrb[38].mxu1 }
 0xc0d   : > { %v6396_v51 = vmul.f32 %v7450_v8, %v6388_v57  ;;  %v6402_v5 = vadd.f32 %v7456_v62, %v6394_v52  ;;  %v7458_v29 = vadd.f32 %v6377_v39, %v6238_v53  ;;  %v6379_v25 = vpop.f32.mrb[39].mxu1 }
 0xc0e   : > { %v6397_v24 = vmul.f32 %v7451_v55, %v6389_v19  ;;  %v6403_v21 = vadd.f32 %v7457_v56, %v6395_v1  ;;  %v7459_v17 = vadd.f32 %v6379_v25, %v6238_v53 }
 0xc0f   : > { %v6410_v14 = vadd.f32 %v6402_v5, %v6386_v28  ;;  %v6404_v7 = vadd.f32 %v7458_v29, %v6396_v51 }
 0xc10   : > { %v6411_v22 = vadd.f32 %v6403_v21, %v6387_v59  ;;  %v6405_v35 = vadd.f32 %v7459_v17, %v6397_v24 }
 0xc11   : > { %6418 = vst [vmem:[%s10757_s27 + $0x20] sm:$0xff] %v6410_v14  ;;  %v6412_v38 = vadd.f32 %v6404_v7, %v6388_v57 }
 0xc12   : > { %6419 = vst [vmem:[%s10757_s27 + $0x28] sm:$0xff] %v6411_v22  ;;  %v6413_v11 = vadd.f32 %v6405_v35, %v6389_v19 }
 0xc13   : > { %6420 = vst [vmem:[%s10757_s27 + $0x30] sm:$0xff] %v6412_v38 }
 0xc14   : > { %6421 = vst [vmem:[%s10757_s27 + $0x38] sm:$0xff] %v6413_v11 }
 0xc15   : > { %8305 = shalt.err (!%p8302_p3)
}
 0xc16   : > { %s8306_s22 = scalar_lea.hbm %s10772_s29, 1024  ;;  %s8310_s24 = scalar_lea.hbm %s11088_s16, 2048 }
 0xc17   : > { %p8307_p9 = scmp.ne.s32.totalorder %s10772_s29, %s8306_s22  ;;  %p8311_p7 = scmp.lt.u32.totalorder %s10772_s29, %s11088_s16 }
 0xc18   : > { %p8312_p12 = scmp.lt.u32.totalorder %s8310_s24, %s8306_s22  ;;  %p8314_p1 = scmp.lt.u32.totalorder %s8306_s22, %s10772_s29 }
 0xc19   : > { %p8308_p13 = pnand %p8307_p9, %p8595_p5 }
 0xc1a   : > { %p8313_p2 = por %p8312_p12, %p8311_p7 }
 0xc1b   : > { %p8309_p11 = pneg %p8308_p13 }
 0xc1c   : > { %p8315_p4 = por %p8314_p1, %p8313_p2 }
 0xc1e   : > { %p8316_p0 = pnand %p8315_p4, %p8309_p11 }
 0xc20   : > { %8319 = shalt.err (!%p8316_p0)
}
 0xc21   : > { %s8402_s25 = smov 256  }
 0xc22   : > { %7604 = dma.vmem_to_hbm [thread:$0]  (%p8595_p5), %s10775_s21, 1024, %s10772_s29, %s6423_s13, %s8402_s25, %s8402_s25, %s8389_s4  }
 0xc23 PF: > { %s11089_s9 = sld [smem:[#allocation20_spill]]  ;;  %s11090_s18 = sld [smem:[#allocation21_spill]] }
 0xc24   : > { %p11092_p6 = scmp.ge.s32.totalorder %s8370_s12, 2 }
 0xc29   : > { %s6451_s30 = sand.u32 1, %s11089_s9   ;;  %p11091_p8 = scmp.ne.s32.totalorder %s11090_s18, 0 }
 0xc2a   : > { %s6452_s14 = scalar_lea.sflag [#allocation7], %s6451_s30 }
 0xc2b   : > { %p7624_p10 = pnand %p11092_p6, %p11091_p8 }
 0xc2d   : > { %8353 = dma.done.wait (!%p7624_p10), %s6452_s14, 1024  }
 0xc2e   : > { %8355 = vsyncadd (!%p7624_p10), %s6452_s14, 4294966272  ;;  %p26_p3 = scmp.ge.s32.totalorder %s8563_s26, 4   ;;  %s11093_s30 = smov %s8362_s10 }
 0xc2f   : > { %s11094_s10 = smov %s8366_s11  ;;  %s11095_s11 = smov %s8591_s20 }
 0xc30   : > { %s11096_s12 = smov %s8563_s26  ;;  %28 = sbr.rel (!%p26_p3) target bundleno = 13 (0xd), region = 127 }
 0xc37   :  { %6457 = vsyncpa [#allocation6], 1 }
 0xc38   :  { %6459 = vsyncpa [#allocation6 + $0x1], 1 }
 0xc39   :  { %6460 = vsyncpa [#allocation9], 1 }
 0xc3a   :  { %6462 = vsyncpa [#allocation9 + $0x1], 1 }
 0xc3b   :  { %6463 = vsyncpa [#allocation12], 1 }
 0xc3c   :  { %6464 = vsyncpa [#allocation7], 1 }
 0xc3d   :  { %6466 = vsyncpa [#allocation7 + $0x1], 1 }

</bundles_post_ra>
